<compile_context>
chip_gen: v6e
topology: v6e:2x2x1
jax: 0.10.0
libtpu: 0.0.40
codegen_flags: <defaults>
</compile_context>

<pallas_src>
import numpy as np
import jax
import jax.numpy as jnp
from jax.experimental import pallas as pl
from jax.experimental.pallas import tpu as pltpu


# ----------------------------------------------------------------------------
# Fused forward kernel (one sample per grid step)
# ----------------------------------------------------------------------------
def _net_kernel(x_ref, cw1_ref, cb1_ref, cw2_ref, cb2_ref, se1_ref, se2_ref,
                g1_ref, fb1_ref, fw2_ref, fb2_ref, fw3_ref, fb3_ref,
                o_ref, h1_scr, h2_scr):
    f32 = jnp.float32
    x = x_ref[0]                       # (3, 1152)  flat 32-wide frame, zero padded
    cw1 = cw1_ref[...]                 # (6, 75)    columns ordered (kh, kw, c)

    # ---- conv1 (3->6, 5x5) as 25 lane-shifted matmuls; flat width-32 frame ----
    y1 = jnp.zeros((6, 928), f32)
    for kh in range(5):
        for kw in range(5):
            k = kh * 5 + kw
            s = kh * 32 + kw
            y1 = y1 + jnp.dot(cw1[:, 3 * k:3 * k + 3], x[:, s:s + 928],
                              preferred_element_type=f32)
    y1 = jnp.maximum(y1 + cb1_ref[...], 0.0)            # bias + ReLU  (6, 928)

    # ---- maxpool 2x2 on the VPU, then stride-2 compaction into a 16-wide frame
    vh = jnp.maximum(y1[:, 0:896], y1[:, 32:928])        # max over row pairs
    hh = jnp.maximum(vh[:, 0:864], vh[:, 1:865])         # max over col pairs
    se1 = se1_ref[...]                                   # (32, 16) even-col selector
    for pi in range(14):
        h1_scr[:, 16 * pi:16 * pi + 16] = jnp.dot(
            hh[:, 64 * pi:64 * pi + 32], se1, preferred_element_type=f32)
    h1_scr[:, 224:256] = jnp.zeros((6, 32), f32)         # zero the tail padding
    h1 = h1_scr[...]                                     # (6, 256), valid 14x14

    # ---- conv2 (6->16, 5x5), flat width-16 frame ----
    cw2 = cw2_ref[...]                                   # (16, 150)
    y2 = jnp.zeros((16, 176), f32)
    for kh in range(5):
        for kw in range(5):
            k = kh * 5 + kw
            s = kh * 16 + kw
            y2 = y2 + jnp.dot(cw2[:, 6 * k:6 * k + 6], h1[:, s:s + 176],
                              preferred_element_type=f32)
    y2 = jnp.maximum(y2 + cb2_ref[...], 0.0)             # (16, 176), valid 10x10

    # ---- maxpool 2x2 + compaction into a width-8 frame ----
    vh2 = jnp.maximum(y2[:, 0:160], y2[:, 16:176])
    hh2 = jnp.maximum(vh2[:, 0:144], vh2[:, 1:145])
    se2 = se2_ref[...]                                   # (16, 8) even-col selector
    for ph in range(5):
        h2_scr[:, 8 * ph:8 * ph + 8] = jnp.dot(
            hh2[:, 32 * ph:32 * ph + 16], se2, preferred_element_type=f32)
    h2 = h2_scr[...]                                     # (16, 40), valid 5x5 per row

    # ---- fc1: contraction folded over the 16 conv2 channels ----
    acc = fb1_ref[...]                                   # (1, 128)
    for o in range(16):
        acc = acc + jnp.dot(h2[o:o + 1, :], g1_ref[o],
                            preferred_element_type=f32)
    f = jnp.maximum(acc, 0.0)

    # ---- fc2 -> relu -> fc3 (all lane-padded to 128) ----
    f = jnp.maximum(jnp.dot(f, fw2_ref[...], preferred_element_type=f32)
                    + fb2_ref[...], 0.0)
    o_ref[0] = (jnp.dot(f, fw3_ref[...], preferred_element_type=f32)
                + fb3_ref[...])                          # (1, 128); cols >=2 are 0


# ----------------------------------------------------------------------------
# Host-side wrapper: weight re-layout (tiny) + one fused pallas_call
# ----------------------------------------------------------------------------
def _even_selector(n_in, n_out):
    rows = jnp.arange(n_in)
    cols = jnp.arange(n_out)
    return (rows[:, None] == 2 * cols[None, :]).astype(jnp.float32)


def _const_spec(shape):
    zeros = (0,) * len(shape)
    return pl.BlockSpec(shape, lambda i, _z=zeros: _z)


def net_forward(x, params):
    """x: (B, 3, 32, 32) float32 NCHW -> logits (B, 2)."""
    (w1, b1, w2, b2, fw1, fb1, fw2, fb2, fw3, fb3) = params
    B = x.shape[0]
    f32 = jnp.float32

    # Flattened, zero-padded input (width-32 frame, padded to 9*128 lanes).
    xp = jnp.pad(x.reshape(B, 3, 32 * 32), ((0, 0), (0, 0), (0, 128)))

    # Conv weights: (Cout, Cin, K, K) -> (Cout, K*K*Cin), columns (kh, kw, c).
    cw1 = jnp.transpose(w1, (0, 2, 3, 1)).reshape(6, 75)
    cb1 = b1.reshape(6, 1)
    cw2 = jnp.transpose(w2, (0, 2, 3, 1)).reshape(16, 150)
    cb2 = b2.reshape(16, 1)

    # Tiny even-column selectors for the pooled-value compaction.
    se1 = _even_selector(32, 16)
    se2 = _even_selector(16, 8)

    # fc1 weight, regrouped so each conv2 channel contributes a (40, 128) slab
    # matching the kernel's (16, 40) h2 layout (torch flatten order preserved).
    g1 = fw1.T.reshape(16, 5, 5, 120)
    g1 = jnp.pad(g1, ((0, 0), (0, 0), (0, 3), (0, 8))).reshape(16, 40, 128)
    fb1p = jnp.pad(fb1, (0, 8)).reshape(1, 128)
    fw2p = jnp.pad(fw2.T, ((0, 8), (0, 44)))             # (128, 128)
    fb2p = jnp.pad(fb2, (0, 44)).reshape(1, 128)
    fw3p = jnp.pad(fw3.T, ((0, 44), (0, 126)))           # (128, 128)
    fb3p = jnp.pad(fb3, (0, 126)).reshape(1, 128)

    in_specs = [
        pl.BlockSpec((1, 3, 1152), lambda i: (i, 0, 0)),
        _const_spec((6, 75)), _const_spec((6, 1)),
        _const_spec((16, 150)), _const_spec((16, 1)),
        _const_spec((32, 16)), _const_spec((16, 8)),
        _const_spec((16, 40, 128)),
        _const_spec((1, 128)), _const_spec((128, 128)), _const_spec((1, 128)),
        _const_spec((128, 128)), _const_spec((1, 128)),
    ]
    out_spec = pl.BlockSpec((1, 1, 128), lambda i: (i, 0, 0))

    out = pl.pallas_call(
        _net_kernel,
        out_shape=jax.ShapeDtypeStruct((B, 1, 128), f32),
        grid_spec=pltpu.PrefetchScalarGridSpec(
            num_scalar_prefetch=0,
            grid=(B,),
            in_specs=in_specs,
            out_specs=out_spec,
            scratch_shapes=[pltpu.VMEM((6, 256), f32),    # pooled conv1 (14x14)
                            pltpu.VMEM((16, 40), f32)]),  # pooled conv2 (5x5)
        compiler_params=pltpu.CompilerParams(
            dimension_semantics=("parallel",)),
    )(xp, cw1, cb1, cw2, cb2, se1, se2, g1, fb1p, fw2p, fb2p, fw3p, fb3p)
    return out[:, 0, :2]


# ----------------------------------------------------------------------------
# Params + pure-JAX reference (PyTorch semantics)
# ----------------------------------------------------------------------------
def init_params(key):
    """Deterministic init, PyTorch-style uniform(-1/sqrt(fan_in), 1/sqrt(fan_in))."""
    def uni(k, shape, fan_in):
        bound = 1.0 / np.sqrt(fan_in)
        return jax.random.uniform(k, shape, jnp.float32, -bound, bound)
    ks = jax.random.split(key, 10)
    w1 = uni(ks[0], (6, 3, 5, 5), 3 * 25);   b1 = uni(ks[1], (6,), 3 * 25)
    w2 = uni(ks[2], (16, 6, 5, 5), 6 * 25);  b2 = uni(ks[3], (16,), 6 * 25)
    fw1 = uni(ks[4], (120, 400), 400);       fb1 = uni(ks[5], (120,), 400)
    fw2 = uni(ks[6], (84, 120), 120);        fb2 = uni(ks[7], (84,), 120)
    fw3 = uni(ks[8], (2, 84), 84);           fb3 = uni(ks[9], (2,), 84)
    return (w1, b1, w2, b2, fw1, fb1, fw2, fb2, fw3, fb3)


def ref_forward(x, params):
    """Pure-JAX/XLA reference matching the PyTorch forward semantics."""
    (w1, b1, w2, b2, fw1, fb1, fw2, fb2, fw3, fb3) = params
    dn = ('NCHW', 'OIHW', 'NCHW')
    y = jax.lax.conv_general_dilated(x, w1, (1, 1), 'VALID',
                                     dimension_numbers=dn)
    y = jnp.maximum(y + b1[None, :, None, None], 0.0)
    y = jax.lax.reduce_window(y, -jnp.inf, jax.lax.max,
                              (1, 1, 2, 2), (1, 1, 2, 2), 'VALID')
    y = jax.lax.conv_general_dilated(y, w2, (1, 1), 'VALID',
                                     dimension_numbers=dn)
    y = jnp.maximum(y + b2[None, :, None, None], 0.0)
    y = jax.lax.reduce_window(y, -jnp.inf, jax.lax.max,
                              (1, 1, 2, 2), (1, 1, 2, 2), 'VALID')
    y = y.reshape(y.shape[0], -1)
    y = jnp.maximum(y @ fw1.T + fb1, 0.0)
    y = jnp.maximum(y @ fw2.T + fb2, 0.0)
    return y @ fw3.T + fb3


if __name__ == "__main__":
    key = jax.random.PRNGKey(0)
    kx, kp = jax.random.split(key)
    # Input must be 32x32 for fc1's 16*5*5 flatten (CIFAR-sized); batch=2.
    x = jax.random.normal(kx, (2, 3, 32, 32), jnp.float32)
    params = init_params(kp)

    out = jax.jit(net_forward)(x, params)
    out = jax.block_until_ready(out)
    assert out.shape == (2, 2)

    ref = ref_forward(x, params)
    np.testing.assert_allclose(np.asarray(out), np.asarray(ref),
                               rtol=2e-2, atol=2e-2)
    print("KERNEL_OK")
</pallas_src>

<mosaic_0001>
module attributes {stable_mosaic.version = 11 : i64} {
  func.func @_net_kernel(%arg0: i32, %arg1: memref<1x3x1152xf32, #tpu.memory_space<vmem>>, %arg2: memref<6x75xf32, #tpu.memory_space<vmem>>, %arg3: memref<6x1xf32, #tpu.memory_space<vmem>>, %arg4: memref<16x150xf32, #tpu.memory_space<vmem>>, %arg5: memref<16x1xf32, #tpu.memory_space<vmem>>, %arg6: memref<32x16xf32, #tpu.memory_space<vmem>>, %arg7: memref<16x8xf32, #tpu.memory_space<vmem>>, %arg8: memref<16x40x128xf32, #tpu.memory_space<vmem>>, %arg9: memref<1x128xf32, #tpu.memory_space<vmem>>, %arg10: memref<128x128xf32, #tpu.memory_space<vmem>>, %arg11: memref<1x128xf32, #tpu.memory_space<vmem>>, %arg12: memref<128x128xf32, #tpu.memory_space<vmem>>, %arg13: memref<1x128xf32, #tpu.memory_space<vmem>>, %arg14: memref<1x1x128xf32, #tpu.memory_space<vmem>>, %arg15: memref<6x256xf32, #tpu.memory_space<vmem>>, %arg16: memref<16x40xf32, #tpu.memory_space<vmem>>) attributes {dimension_semantics = [#tpu.dimension_semantics<parallel>], iteration_bounds = array<i64: 2>, scalar_prefetch = 0 : i64, scratch_operands = 2 : i64, tpu.core_type = #tpu.core_type<tc>, window_params = [{transform_indices = @transform_0, window_bounds = array<i64: 1, 3, 1152>}, {pipeline_mode = #tpu.pipeline_mode<synchronous>, transform_indices = @transform_1, window_bounds = array<i64: 6, 75>}, {pipeline_mode = #tpu.pipeline_mode<synchronous>, transform_indices = @transform_2, window_bounds = array<i64: 6, 1>}, {pipeline_mode = #tpu.pipeline_mode<synchronous>, transform_indices = @transform_3, window_bounds = array<i64: 16, 150>}, {pipeline_mode = #tpu.pipeline_mode<synchronous>, transform_indices = @transform_4, window_bounds = array<i64: 16, 1>}, {pipeline_mode = #tpu.pipeline_mode<synchronous>, transform_indices = @transform_5, window_bounds = array<i64: 32, 16>}, {pipeline_mode = #tpu.pipeline_mode<synchronous>, transform_indices = @transform_6, window_bounds = array<i64: 16, 8>}, {pipeline_mode = #tpu.pipeline_mode<synchronous>, transform_indices = @transform_7, window_bounds = array<i64: 16, 40, 128>}, {pipeline_mode = #tpu.pipeline_mode<synchronous>, transform_indices = @transform_8, window_bounds = array<i64: 1, 128>}, {pipeline_mode = #tpu.pipeline_mode<synchronous>, transform_indices = @transform_9, window_bounds = array<i64: 128, 128>}, {pipeline_mode = #tpu.pipeline_mode<synchronous>, transform_indices = @transform_10, window_bounds = array<i64: 1, 128>}, {pipeline_mode = #tpu.pipeline_mode<synchronous>, transform_indices = @transform_11, window_bounds = array<i64: 128, 128>}, {pipeline_mode = #tpu.pipeline_mode<synchronous>, transform_indices = @transform_12, window_bounds = array<i64: 1, 128>}, {transform_indices = @transform_13, window_bounds = array<i64: 1, 1, 128>}]} {
    %c0 = arith.constant 0 : index
    %c0_0 = arith.constant 0 : index
    %c0_1 = arith.constant 0 : index
    %0 = vector.load %arg1[%c0, %c0_0, %c0_1] : memref<1x3x1152xf32, #tpu.memory_space<vmem>>, vector<1x3x1152xf32>
    %1 = vector.shape_cast %0 : vector<1x3x1152xf32> to vector<3x1152xf32>
    %c0_2 = arith.constant 0 : index
    %c0_3 = arith.constant 0 : index
    %2 = vector.load %arg2[%c0_2, %c0_3] : memref<6x75xf32, #tpu.memory_space<vmem>>, vector<6x75xf32>
    %cst = arith.constant 0.000000e+00 : f32
    %3 = vector.broadcast %cst : f32 to vector<6x928xf32>
    %4 = vector.extract_strided_slice %2 {offsets = [0, 0], sizes = [6, 3], strides = [1, 1]} : vector<6x75xf32> to vector<6x3xf32>
    %5 = vector.extract_strided_slice %1 {offsets = [0, 0], sizes = [3, 928], strides = [1, 1]} : vector<3x1152xf32> to vector<3x928xf32>
    %cst_4 = arith.constant dense<0.000000e+00> : vector<6x928xf32>
    %6 = tpu.matmul %4, %5, %cst_4 {dimension_numbers = #tpu.dot_dimension_numbers<[1], [0], [0], [1], [0, 0, 1, 1], [], []>} : vector<6x3xf32>, vector<3x928xf32>, vector<6x928xf32> -> vector<6x928xf32>
    %7 = arith.addf %3, %6 : vector<6x928xf32>
    %8 = vector.extract_strided_slice %2 {offsets = [0, 3], sizes = [6, 3], strides = [1, 1]} : vector<6x75xf32> to vector<6x3xf32>
    %9 = vector.extract_strided_slice %1 {offsets = [0, 1], sizes = [3, 928], strides = [1, 1]} : vector<3x1152xf32> to vector<3x928xf32>
    %cst_5 = arith.constant dense<0.000000e+00> : vector<6x928xf32>
    %10 = tpu.matmul %8, %9, %cst_5 {dimension_numbers = #tpu.dot_dimension_numbers<[1], [0], [0], [1], [0, 0, 1, 1], [], []>} : vector<6x3xf32>, vector<3x928xf32>, vector<6x928xf32> -> vector<6x928xf32>
    %11 = arith.addf %7, %10 : vector<6x928xf32>
    %12 = vector.extract_strided_slice %2 {offsets = [0, 6], sizes = [6, 3], strides = [1, 1]} : vector<6x75xf32> to vector<6x3xf32>
    %13 = vector.extract_strided_slice %1 {offsets = [0, 2], sizes = [3, 928], strides = [1, 1]} : vector<3x1152xf32> to vector<3x928xf32>
    %cst_6 = arith.constant dense<0.000000e+00> : vector<6x928xf32>
    %14 = tpu.matmul %12, %13, %cst_6 {dimension_numbers = #tpu.dot_dimension_numbers<[1], [0], [0], [1], [0, 0, 1, 1], [], []>} : vector<6x3xf32>, vector<3x928xf32>, vector<6x928xf32> -> vector<6x928xf32>
    %15 = arith.addf %11, %14 : vector<6x928xf32>
    %16 = vector.extract_strided_slice %2 {offsets = [0, 9], sizes = [6, 3], strides = [1, 1]} : vector<6x75xf32> to vector<6x3xf32>
    %17 = vector.extract_strided_slice %1 {offsets = [0, 3], sizes = [3, 928], strides = [1, 1]} : vector<3x1152xf32> to vector<3x928xf32>
    %cst_7 = arith.constant dense<0.000000e+00> : vector<6x928xf32>
    %18 = tpu.matmul %16, %17, %cst_7 {dimension_numbers = #tpu.dot_dimension_numbers<[1], [0], [0], [1], [0, 0, 1, 1], [], []>} : vector<6x3xf32>, vector<3x928xf32>, vector<6x928xf32> -> vector<6x928xf32>
    %19 = arith.addf %15, %18 : vector<6x928xf32>
    %20 = vector.extract_strided_slice %2 {offsets = [0, 12], sizes = [6, 3], strides = [1, 1]} : vector<6x75xf32> to vector<6x3xf32>
    %21 = vector.extract_strided_slice %1 {offsets = [0, 4], sizes = [3, 928], strides = [1, 1]} : vector<3x1152xf32> to vector<3x928xf32>
    %cst_8 = arith.constant dense<0.000000e+00> : vector<6x928xf32>
    %22 = tpu.matmul %20, %21, %cst_8 {dimension_numbers = #tpu.dot_dimension_numbers<[1], [0], [0], [1], [0, 0, 1, 1], [], []>} : vector<6x3xf32>, vector<3x928xf32>, vector<6x928xf32> -> vector<6x928xf32>
    %23 = arith.addf %19, %22 : vector<6x928xf32>
    %24 = vector.extract_strided_slice %2 {offsets = [0, 15], sizes = [6, 3], strides = [1, 1]} : vector<6x75xf32> to vector<6x3xf32>
    %25 = vector.extract_strided_slice %1 {offsets = [0, 32], sizes = [3, 928], strides = [1, 1]} : vector<3x1152xf32> to vector<3x928xf32>
    %cst_9 = arith.constant dense<0.000000e+00> : vector<6x928xf32>
    %26 = tpu.matmul %24, %25, %cst_9 {dimension_numbers = #tpu.dot_dimension_numbers<[1], [0], [0], [1], [0, 0, 1, 1], [], []>} : vector<6x3xf32>, vector<3x928xf32>, vector<6x928xf32> -> vector<6x928xf32>
    %27 = arith.addf %23, %26 : vector<6x928xf32>
    %28 = vector.extract_strided_slice %2 {offsets = [0, 18], sizes = [6, 3], strides = [1, 1]} : vector<6x75xf32> to vector<6x3xf32>
    %29 = vector.extract_strided_slice %1 {offsets = [0, 33], sizes = [3, 928], strides = [1, 1]} : vector<3x1152xf32> to vector<3x928xf32>
    %cst_10 = arith.constant dense<0.000000e+00> : vector<6x928xf32>
    %30 = tpu.matmul %28, %29, %cst_10 {dimension_numbers = #tpu.dot_dimension_numbers<[1], [0], [0], [1], [0, 0, 1, 1], [], []>} : vector<6x3xf32>, vector<3x928xf32>, vector<6x928xf32> -> vector<6x928xf32>
    %31 = arith.addf %27, %30 : vector<6x928xf32>
    %32 = vector.extract_strided_slice %2 {offsets = [0, 21], sizes = [6, 3], strides = [1, 1]} : vector<6x75xf32> to vector<6x3xf32>
    %33 = vector.extract_strided_slice %1 {offsets = [0, 34], sizes = [3, 928], strides = [1, 1]} : vector<3x1152xf32> to vector<3x928xf32>
    %cst_11 = arith.constant dense<0.000000e+00> : vector<6x928xf32>
    %34 = tpu.matmul %32, %33, %cst_11 {dimension_numbers = #tpu.dot_dimension_numbers<[1], [0], [0], [1], [0, 0, 1, 1], [], []>} : vector<6x3xf32>, vector<3x928xf32>, vector<6x928xf32> -> vector<6x928xf32>
    %35 = arith.addf %31, %34 : vector<6x928xf32>
    %36 = vector.extract_strided_slice %2 {offsets = [0, 24], sizes = [6, 3], strides = [1, 1]} : vector<6x75xf32> to vector<6x3xf32>
    %37 = vector.extract_strided_slice %1 {offsets = [0, 35], sizes = [3, 928], strides = [1, 1]} : vector<3x1152xf32> to vector<3x928xf32>
    %cst_12 = arith.constant dense<0.000000e+00> : vector<6x928xf32>
    %38 = tpu.matmul %36, %37, %cst_12 {dimension_numbers = #tpu.dot_dimension_numbers<[1], [0], [0], [1], [0, 0, 1, 1], [], []>} : vector<6x3xf32>, vector<3x928xf32>, vector<6x928xf32> -> vector<6x928xf32>
    %39 = arith.addf %35, %38 : vector<6x928xf32>
    %40 = vector.extract_strided_slice %2 {offsets = [0, 27], sizes = [6, 3], strides = [1, 1]} : vector<6x75xf32> to vector<6x3xf32>
    %41 = vector.extract_strided_slice %1 {offsets = [0, 36], sizes = [3, 928], strides = [1, 1]} : vector<3x1152xf32> to vector<3x928xf32>
    %cst_13 = arith.constant dense<0.000000e+00> : vector<6x928xf32>
    %42 = tpu.matmul %40, %41, %cst_13 {dimension_numbers = #tpu.dot_dimension_numbers<[1], [0], [0], [1], [0, 0, 1, 1], [], []>} : vector<6x3xf32>, vector<3x928xf32>, vector<6x928xf32> -> vector<6x928xf32>
    %43 = arith.addf %39, %42 : vector<6x928xf32>
    %44 = vector.extract_strided_slice %2 {offsets = [0, 30], sizes = [6, 3], strides = [1, 1]} : vector<6x75xf32> to vector<6x3xf32>
    %45 = vector.extract_strided_slice %1 {offsets = [0, 64], sizes = [3, 928], strides = [1, 1]} : vector<3x1152xf32> to vector<3x928xf32>
    %cst_14 = arith.constant dense<0.000000e+00> : vector<6x928xf32>
    %46 = tpu.matmul %44, %45, %cst_14 {dimension_numbers = #tpu.dot_dimension_numbers<[1], [0], [0], [1], [0, 0, 1, 1], [], []>} : vector<6x3xf32>, vector<3x928xf32>, vector<6x928xf32> -> vector<6x928xf32>
    %47 = arith.addf %43, %46 : vector<6x928xf32>
    %48 = vector.extract_strided_slice %2 {offsets = [0, 33], sizes = [6, 3], strides = [1, 1]} : vector<6x75xf32> to vector<6x3xf32>
    %49 = vector.extract_strided_slice %1 {offsets = [0, 65], sizes = [3, 928], strides = [1, 1]} : vector<3x1152xf32> to vector<3x928xf32>
    %cst_15 = arith.constant dense<0.000000e+00> : vector<6x928xf32>
    %50 = tpu.matmul %48, %49, %cst_15 {dimension_numbers = #tpu.dot_dimension_numbers<[1], [0], [0], [1], [0, 0, 1, 1], [], []>} : vector<6x3xf32>, vector<3x928xf32>, vector<6x928xf32> -> vector<6x928xf32>
    %51 = arith.addf %47, %50 : vector<6x928xf32>
    %52 = vector.extract_strided_slice %2 {offsets = [0, 36], sizes = [6, 3], strides = [1, 1]} : vector<6x75xf32> to vector<6x3xf32>
    %53 = vector.extract_strided_slice %1 {offsets = [0, 66], sizes = [3, 928], strides = [1, 1]} : vector<3x1152xf32> to vector<3x928xf32>
    %cst_16 = arith.constant dense<0.000000e+00> : vector<6x928xf32>
    %54 = tpu.matmul %52, %53, %cst_16 {dimension_numbers = #tpu.dot_dimension_numbers<[1], [0], [0], [1], [0, 0, 1, 1], [], []>} : vector<6x3xf32>, vector<3x928xf32>, vector<6x928xf32> -> vector<6x928xf32>
    %55 = arith.addf %51, %54 : vector<6x928xf32>
    %56 = vector.extract_strided_slice %2 {offsets = [0, 39], sizes = [6, 3], strides = [1, 1]} : vector<6x75xf32> to vector<6x3xf32>
    %57 = vector.extract_strided_slice %1 {offsets = [0, 67], sizes = [3, 928], strides = [1, 1]} : vector<3x1152xf32> to vector<3x928xf32>
    %cst_17 = arith.constant dense<0.000000e+00> : vector<6x928xf32>
    %58 = tpu.matmul %56, %57, %cst_17 {dimension_numbers = #tpu.dot_dimension_numbers<[1], [0], [0], [1], [0, 0, 1, 1], [], []>} : vector<6x3xf32>, vector<3x928xf32>, vector<6x928xf32> -> vector<6x928xf32>
    %59 = arith.addf %55, %58 : vector<6x928xf32>
    %60 = vector.extract_strided_slice %2 {offsets = [0, 42], sizes = [6, 3], strides = [1, 1]} : vector<6x75xf32> to vector<6x3xf32>
    %61 = vector.extract_strided_slice %1 {offsets = [0, 68], sizes = [3, 928], strides = [1, 1]} : vector<3x1152xf32> to vector<3x928xf32>
    %cst_18 = arith.constant dense<0.000000e+00> : vector<6x928xf32>
    %62 = tpu.matmul %60, %61, %cst_18 {dimension_numbers = #tpu.dot_dimension_numbers<[1], [0], [0], [1], [0, 0, 1, 1], [], []>} : vector<6x3xf32>, vector<3x928xf32>, vector<6x928xf32> -> vector<6x928xf32>
    %63 = arith.addf %59, %62 : vector<6x928xf32>
    %64 = vector.extract_strided_slice %2 {offsets = [0, 45], sizes = [6, 3], strides = [1, 1]} : vector<6x75xf32> to vector<6x3xf32>
    %65 = vector.extract_strided_slice %1 {offsets = [0, 96], sizes = [3, 928], strides = [1, 1]} : vector<3x1152xf32> to vector<3x928xf32>
    %cst_19 = arith.constant dense<0.000000e+00> : vector<6x928xf32>
    %66 = tpu.matmul %64, %65, %cst_19 {dimension_numbers = #tpu.dot_dimension_numbers<[1], [0], [0], [1], [0, 0, 1, 1], [], []>} : vector<6x3xf32>, vector<3x928xf32>, vector<6x928xf32> -> vector<6x928xf32>
    %67 = arith.addf %63, %66 : vector<6x928xf32>
    %68 = vector.extract_strided_slice %2 {offsets = [0, 48], sizes = [6, 3], strides = [1, 1]} : vector<6x75xf32> to vector<6x3xf32>
    %69 = vector.extract_strided_slice %1 {offsets = [0, 97], sizes = [3, 928], strides = [1, 1]} : vector<3x1152xf32> to vector<3x928xf32>
    %cst_20 = arith.constant dense<0.000000e+00> : vector<6x928xf32>
    %70 = tpu.matmul %68, %69, %cst_20 {dimension_numbers = #tpu.dot_dimension_numbers<[1], [0], [0], [1], [0, 0, 1, 1], [], []>} : vector<6x3xf32>, vector<3x928xf32>, vector<6x928xf32> -> vector<6x928xf32>
    %71 = arith.addf %67, %70 : vector<6x928xf32>
    %72 = vector.extract_strided_slice %2 {offsets = [0, 51], sizes = [6, 3], strides = [1, 1]} : vector<6x75xf32> to vector<6x3xf32>
    %73 = vector.extract_strided_slice %1 {offsets = [0, 98], sizes = [3, 928], strides = [1, 1]} : vector<3x1152xf32> to vector<3x928xf32>
    %cst_21 = arith.constant dense<0.000000e+00> : vector<6x928xf32>
    %74 = tpu.matmul %72, %73, %cst_21 {dimension_numbers = #tpu.dot_dimension_numbers<[1], [0], [0], [1], [0, 0, 1, 1], [], []>} : vector<6x3xf32>, vector<3x928xf32>, vector<6x928xf32> -> vector<6x928xf32>
    %75 = arith.addf %71, %74 : vector<6x928xf32>
    %76 = vector.extract_strided_slice %2 {offsets = [0, 54], sizes = [6, 3], strides = [1, 1]} : vector<6x75xf32> to vector<6x3xf32>
    %77 = vector.extract_strided_slice %1 {offsets = [0, 99], sizes = [3, 928], strides = [1, 1]} : vector<3x1152xf32> to vector<3x928xf32>
    %cst_22 = arith.constant dense<0.000000e+00> : vector<6x928xf32>
    %78 = tpu.matmul %76, %77, %cst_22 {dimension_numbers = #tpu.dot_dimension_numbers<[1], [0], [0], [1], [0, 0, 1, 1], [], []>} : vector<6x3xf32>, vector<3x928xf32>, vector<6x928xf32> -> vector<6x928xf32>
    %79 = arith.addf %75, %78 : vector<6x928xf32>
    %80 = vector.extract_strided_slice %2 {offsets = [0, 57], sizes = [6, 3], strides = [1, 1]} : vector<6x75xf32> to vector<6x3xf32>
    %81 = vector.extract_strided_slice %1 {offsets = [0, 100], sizes = [3, 928], strides = [1, 1]} : vector<3x1152xf32> to vector<3x928xf32>
    %cst_23 = arith.constant dense<0.000000e+00> : vector<6x928xf32>
    %82 = tpu.matmul %80, %81, %cst_23 {dimension_numbers = #tpu.dot_dimension_numbers<[1], [0], [0], [1], [0, 0, 1, 1], [], []>} : vector<6x3xf32>, vector<3x928xf32>, vector<6x928xf32> -> vector<6x928xf32>
    %83 = arith.addf %79, %82 : vector<6x928xf32>
    %84 = vector.extract_strided_slice %2 {offsets = [0, 60], sizes = [6, 3], strides = [1, 1]} : vector<6x75xf32> to vector<6x3xf32>
    %85 = vector.extract_strided_slice %1 {offsets = [0, 128], sizes = [3, 928], strides = [1, 1]} : vector<3x1152xf32> to vector<3x928xf32>
    %cst_24 = arith.constant dense<0.000000e+00> : vector<6x928xf32>
    %86 = tpu.matmul %84, %85, %cst_24 {dimension_numbers = #tpu.dot_dimension_numbers<[1], [0], [0], [1], [0, 0, 1, 1], [], []>} : vector<6x3xf32>, vector<3x928xf32>, vector<6x928xf32> -> vector<6x928xf32>
    %87 = arith.addf %83, %86 : vector<6x928xf32>
    %88 = vector.extract_strided_slice %2 {offsets = [0, 63], sizes = [6, 3], strides = [1, 1]} : vector<6x75xf32> to vector<6x3xf32>
    %89 = vector.extract_strided_slice %1 {offsets = [0, 129], sizes = [3, 928], strides = [1, 1]} : vector<3x1152xf32> to vector<3x928xf32>
    %cst_25 = arith.constant dense<0.000000e+00> : vector<6x928xf32>
    %90 = tpu.matmul %88, %89, %cst_25 {dimension_numbers = #tpu.dot_dimension_numbers<[1], [0], [0], [1], [0, 0, 1, 1], [], []>} : vector<6x3xf32>, vector<3x928xf32>, vector<6x928xf32> -> vector<6x928xf32>
    %91 = arith.addf %87, %90 : vector<6x928xf32>
    %92 = vector.extract_strided_slice %2 {offsets = [0, 66], sizes = [6, 3], strides = [1, 1]} : vector<6x75xf32> to vector<6x3xf32>
    %93 = vector.extract_strided_slice %1 {offsets = [0, 130], sizes = [3, 928], strides = [1, 1]} : vector<3x1152xf32> to vector<3x928xf32>
    %cst_26 = arith.constant dense<0.000000e+00> : vector<6x928xf32>
    %94 = tpu.matmul %92, %93, %cst_26 {dimension_numbers = #tpu.dot_dimension_numbers<[1], [0], [0], [1], [0, 0, 1, 1], [], []>} : vector<6x3xf32>, vector<3x928xf32>, vector<6x928xf32> -> vector<6x928xf32>
    %95 = arith.addf %91, %94 : vector<6x928xf32>
    %96 = vector.extract_strided_slice %2 {offsets = [0, 69], sizes = [6, 3], strides = [1, 1]} : vector<6x75xf32> to vector<6x3xf32>
    %97 = vector.extract_strided_slice %1 {offsets = [0, 131], sizes = [3, 928], strides = [1, 1]} : vector<3x1152xf32> to vector<3x928xf32>
    %cst_27 = arith.constant dense<0.000000e+00> : vector<6x928xf32>
    %98 = tpu.matmul %96, %97, %cst_27 {dimension_numbers = #tpu.dot_dimension_numbers<[1], [0], [0], [1], [0, 0, 1, 1], [], []>} : vector<6x3xf32>, vector<3x928xf32>, vector<6x928xf32> -> vector<6x928xf32>
    %99 = arith.addf %95, %98 : vector<6x928xf32>
    %100 = vector.extract_strided_slice %2 {offsets = [0, 72], sizes = [6, 3], strides = [1, 1]} : vector<6x75xf32> to vector<6x3xf32>
    %101 = vector.extract_strided_slice %1 {offsets = [0, 132], sizes = [3, 928], strides = [1, 1]} : vector<3x1152xf32> to vector<3x928xf32>
    %cst_28 = arith.constant dense<0.000000e+00> : vector<6x928xf32>
    %102 = tpu.matmul %100, %101, %cst_28 {dimension_numbers = #tpu.dot_dimension_numbers<[1], [0], [0], [1], [0, 0, 1, 1], [], []>} : vector<6x3xf32>, vector<3x928xf32>, vector<6x928xf32> -> vector<6x928xf32>
    %103 = arith.addf %99, %102 : vector<6x928xf32>
    %c0_29 = arith.constant 0 : index
    %c0_30 = arith.constant 0 : index
    %104 = vector.load %arg3[%c0_29, %c0_30] : memref<6x1xf32, #tpu.memory_space<vmem>>, vector<6x1xf32>
    %105 = vector.broadcast %104 : vector<6x1xf32> to vector<6x928xf32>
    %106 = arith.addf %103, %105 : vector<6x928xf32>
    %cst_31 = arith.constant 0.000000e+00 : f32
    %107 = vector.broadcast %cst_31 : f32 to vector<6x928xf32>
    %108 = arith.maximumf %106, %107 : vector<6x928xf32>
    %109 = vector.extract_strided_slice %108 {offsets = [0, 0], sizes = [6, 896], strides = [1, 1]} : vector<6x928xf32> to vector<6x896xf32>
    %110 = vector.extract_strided_slice %108 {offsets = [0, 32], sizes = [6, 896], strides = [1, 1]} : vector<6x928xf32> to vector<6x896xf32>
    %111 = arith.maximumf %109, %110 : vector<6x896xf32>
    %112 = vector.extract_strided_slice %111 {offsets = [0, 0], sizes = [6, 864], strides = [1, 1]} : vector<6x896xf32> to vector<6x864xf32>
    %113 = vector.extract_strided_slice %111 {offsets = [0, 1], sizes = [6, 864], strides = [1, 1]} : vector<6x896xf32> to vector<6x864xf32>
    %114 = arith.maximumf %112, %113 : vector<6x864xf32>
    %c0_32 = arith.constant 0 : index
    %c0_33 = arith.constant 0 : index
    %115 = vector.load %arg6[%c0_32, %c0_33] : memref<32x16xf32, #tpu.memory_space<vmem>>, vector<32x16xf32>
    %116 = vector.extract_strided_slice %114 {offsets = [0, 0], sizes = [6, 32], strides = [1, 1]} : vector<6x864xf32> to vector<6x32xf32>
    %cst_34 = arith.constant dense<0.000000e+00> : vector<6x16xf32>
    %117 = tpu.matmul %116, %115, %cst_34 {dimension_numbers = #tpu.dot_dimension_numbers<[1], [0], [0], [1], [0, 0, 1, 1], [], []>} : vector<6x32xf32>, vector<32x16xf32>, vector<6x16xf32> -> vector<6x16xf32>
    %c0_35 = arith.constant 0 : index
    %c0_36 = arith.constant 0 : index
    %118 = vector.load %arg15[%c0_35, %c0_36] : memref<6x256xf32, #tpu.memory_space<vmem>>, vector<6x16xf32>
    tpu.vector_store %arg15[%c0_35, %c0_36], %117 {strides = array<i32>} : memref<6x256xf32, #tpu.memory_space<vmem>>, vector<6x16xf32>,
    %119 = vector.extract_strided_slice %114 {offsets = [0, 64], sizes = [6, 32], strides = [1, 1]} : vector<6x864xf32> to vector<6x32xf32>
    %cst_37 = arith.constant dense<0.000000e+00> : vector<6x16xf32>
    %120 = tpu.matmul %119, %115, %cst_37 {dimension_numbers = #tpu.dot_dimension_numbers<[1], [0], [0], [1], [0, 0, 1, 1], [], []>} : vector<6x32xf32>, vector<32x16xf32>, vector<6x16xf32> -> vector<6x16xf32>
    %c0_38 = arith.constant 0 : index
    %c16 = arith.constant 16 : index
    %121 = vector.load %arg15[%c0_38, %c16] : memref<6x256xf32, #tpu.memory_space<vmem>>, vector<6x16xf32>
    tpu.vector_store %arg15[%c0_38, %c16], %120 {strides = array<i32>} : memref<6x256xf32, #tpu.memory_space<vmem>>, vector<6x16xf32>,
    %122 = vector.extract_strided_slice %114 {offsets = [0, 128], sizes = [6, 32], strides = [1, 1]} : vector<6x864xf32> to vector<6x32xf32>
    %cst_39 = arith.constant dense<0.000000e+00> : vector<6x16xf32>
    %123 = tpu.matmul %122, %115, %cst_39 {dimension_numbers = #tpu.dot_dimension_numbers<[1], [0], [0], [1], [0, 0, 1, 1], [], []>} : vector<6x32xf32>, vector<32x16xf32>, vector<6x16xf32> -> vector<6x16xf32>
    %c0_40 = arith.constant 0 : index
    %c32 = arith.constant 32 : index
    %124 = vector.load %arg15[%c0_40, %c32] : memref<6x256xf32, #tpu.memory_space<vmem>>, vector<6x16xf32>
    tpu.vector_store %arg15[%c0_40, %c32], %123 {strides = array<i32>} : memref<6x256xf32, #tpu.memory_space<vmem>>, vector<6x16xf32>,
    %125 = vector.extract_strided_slice %114 {offsets = [0, 192], sizes = [6, 32], strides = [1, 1]} : vector<6x864xf32> to vector<6x32xf32>
    %cst_41 = arith.constant dense<0.000000e+00> : vector<6x16xf32>
    %126 = tpu.matmul %125, %115, %cst_41 {dimension_numbers = #tpu.dot_dimension_numbers<[1], [0], [0], [1], [0, 0, 1, 1], [], []>} : vector<6x32xf32>, vector<32x16xf32>, vector<6x16xf32> -> vector<6x16xf32>
    %c0_42 = arith.constant 0 : index
    %c48 = arith.constant 48 : index
    %127 = vector.load %arg15[%c0_42, %c48] : memref<6x256xf32, #tpu.memory_space<vmem>>, vector<6x16xf32>
    tpu.vector_store %arg15[%c0_42, %c48], %126 {strides = array<i32>} : memref<6x256xf32, #tpu.memory_space<vmem>>, vector<6x16xf32>,
    %128 = vector.extract_strided_slice %114 {offsets = [0, 256], sizes = [6, 32], strides = [1, 1]} : vector<6x864xf32> to vector<6x32xf32>
    %cst_43 = arith.constant dense<0.000000e+00> : vector<6x16xf32>
    %129 = tpu.matmul %128, %115, %cst_43 {dimension_numbers = #tpu.dot_dimension_numbers<[1], [0], [0], [1], [0, 0, 1, 1], [], []>} : vector<6x32xf32>, vector<32x16xf32>, vector<6x16xf32> -> vector<6x16xf32>
    %c0_44 = arith.constant 0 : index
    %c64 = arith.constant 64 : index
    %130 = vector.load %arg15[%c0_44, %c64] : memref<6x256xf32, #tpu.memory_space<vmem>>, vector<6x16xf32>
    tpu.vector_store %arg15[%c0_44, %c64], %129 {strides = array<i32>} : memref<6x256xf32, #tpu.memory_space<vmem>>, vector<6x16xf32>,
    %131 = vector.extract_strided_slice %114 {offsets = [0, 320], sizes = [6, 32], strides = [1, 1]} : vector<6x864xf32> to vector<6x32xf32>
    %cst_45 = arith.constant dense<0.000000e+00> : vector<6x16xf32>
    %132 = tpu.matmul %131, %115, %cst_45 {dimension_numbers = #tpu.dot_dimension_numbers<[1], [0], [0], [1], [0, 0, 1, 1], [], []>} : vector<6x32xf32>, vector<32x16xf32>, vector<6x16xf32> -> vector<6x16xf32>
    %c0_46 = arith.constant 0 : index
    %c80 = arith.constant 80 : index
    %133 = vector.load %arg15[%c0_46, %c80] : memref<6x256xf32, #tpu.memory_space<vmem>>, vector<6x16xf32>
    tpu.vector_store %arg15[%c0_46, %c80], %132 {strides = array<i32>} : memref<6x256xf32, #tpu.memory_space<vmem>>, vector<6x16xf32>,
    %134 = vector.extract_strided_slice %114 {offsets = [0, 384], sizes = [6, 32], strides = [1, 1]} : vector<6x864xf32> to vector<6x32xf32>
    %cst_47 = arith.constant dense<0.000000e+00> : vector<6x16xf32>
    %135 = tpu.matmul %134, %115, %cst_47 {dimension_numbers = #tpu.dot_dimension_numbers<[1], [0], [0], [1], [0, 0, 1, 1], [], []>} : vector<6x32xf32>, vector<32x16xf32>, vector<6x16xf32> -> vector<6x16xf32>
    %c0_48 = arith.constant 0 : index
    %c96 = arith.constant 96 : index
    %136 = vector.load %arg15[%c0_48, %c96] : memref<6x256xf32, #tpu.memory_space<vmem>>, vector<6x16xf32>
    tpu.vector_store %arg15[%c0_48, %c96], %135 {strides = array<i32>} : memref<6x256xf32, #tpu.memory_space<vmem>>, vector<6x16xf32>,
    %137 = vector.extract_strided_slice %114 {offsets = [0, 448], sizes = [6, 32], strides = [1, 1]} : vector<6x864xf32> to vector<6x32xf32>
    %cst_49 = arith.constant dense<0.000000e+00> : vector<6x16xf32>
    %138 = tpu.matmul %137, %115, %cst_49 {dimension_numbers = #tpu.dot_dimension_numbers<[1], [0], [0], [1], [0, 0, 1, 1], [], []>} : vector<6x32xf32>, vector<32x16xf32>, vector<6x16xf32> -> vector<6x16xf32>
    %c0_50 = arith.constant 0 : index
    %c112 = arith.constant 112 : index
    %139 = vector.load %arg15[%c0_50, %c112] : memref<6x256xf32, #tpu.memory_space<vmem>>, vector<6x16xf32>
    tpu.vector_store %arg15[%c0_50, %c112], %138 {strides = array<i32>} : memref<6x256xf32, #tpu.memory_space<vmem>>, vector<6x16xf32>,
    %140 = vector.extract_strided_slice %114 {offsets = [0, 512], sizes = [6, 32], strides = [1, 1]} : vector<6x864xf32> to vector<6x32xf32>
    %cst_51 = arith.constant dense<0.000000e+00> : vector<6x16xf32>
    %141 = tpu.matmul %140, %115, %cst_51 {dimension_numbers = #tpu.dot_dimension_numbers<[1], [0], [0], [1], [0, 0, 1, 1], [], []>} : vector<6x32xf32>, vector<32x16xf32>, vector<6x16xf32> -> vector<6x16xf32>
    %c0_52 = arith.constant 0 : index
    %c128 = arith.constant 128 : index
    %142 = vector.load %arg15[%c0_52, %c128] : memref<6x256xf32, #tpu.memory_space<vmem>>, vector<6x16xf32>
    tpu.vector_store %arg15[%c0_52, %c128], %141 {strides = array<i32>} : memref<6x256xf32, #tpu.memory_space<vmem>>, vector<6x16xf32>,
    %143 = vector.extract_strided_slice %114 {offsets = [0, 576], sizes = [6, 32], strides = [1, 1]} : vector<6x864xf32> to vector<6x32xf32>
    %cst_53 = arith.constant dense<0.000000e+00> : vector<6x16xf32>
    %144 = tpu.matmul %143, %115, %cst_53 {dimension_numbers = #tpu.dot_dimension_numbers<[1], [0], [0], [1], [0, 0, 1, 1], [], []>} : vector<6x32xf32>, vector<32x16xf32>, vector<6x16xf32> -> vector<6x16xf32>
    %c0_54 = arith.constant 0 : index
    %c144 = arith.constant 144 : index
    %145 = vector.load %arg15[%c0_54, %c144] : memref<6x256xf32, #tpu.memory_space<vmem>>, vector<6x16xf32>
    tpu.vector_store %arg15[%c0_54, %c144], %144 {strides = array<i32>} : memref<6x256xf32, #tpu.memory_space<vmem>>, vector<6x16xf32>,
    %146 = vector.extract_strided_slice %114 {offsets = [0, 640], sizes = [6, 32], strides = [1, 1]} : vector<6x864xf32> to vector<6x32xf32>
    %cst_55 = arith.constant dense<0.000000e+00> : vector<6x16xf32>
    %147 = tpu.matmul %146, %115, %cst_55 {dimension_numbers = #tpu.dot_dimension_numbers<[1], [0], [0], [1], [0, 0, 1, 1], [], []>} : vector<6x32xf32>, vector<32x16xf32>, vector<6x16xf32> -> vector<6x16xf32>
    %c0_56 = arith.constant 0 : index
    %c160 = arith.constant 160 : index
    %148 = vector.load %arg15[%c0_56, %c160] : memref<6x256xf32, #tpu.memory_space<vmem>>, vector<6x16xf32>
    tpu.vector_store %arg15[%c0_56, %c160], %147 {strides = array<i32>} : memref<6x256xf32, #tpu.memory_space<vmem>>, vector<6x16xf32>,
    %149 = vector.extract_strided_slice %114 {offsets = [0, 704], sizes = [6, 32], strides = [1, 1]} : vector<6x864xf32> to vector<6x32xf32>
    %cst_57 = arith.constant dense<0.000000e+00> : vector<6x16xf32>
    %150 = tpu.matmul %149, %115, %cst_57 {dimension_numbers = #tpu.dot_dimension_numbers<[1], [0], [0], [1], [0, 0, 1, 1], [], []>} : vector<6x32xf32>, vector<32x16xf32>, vector<6x16xf32> -> vector<6x16xf32>
    %c0_58 = arith.constant 0 : index
    %c176 = arith.constant 176 : index
    %151 = vector.load %arg15[%c0_58, %c176] : memref<6x256xf32, #tpu.memory_space<vmem>>, vector<6x16xf32>
    tpu.vector_store %arg15[%c0_58, %c176], %150 {strides = array<i32>} : memref<6x256xf32, #tpu.memory_space<vmem>>, vector<6x16xf32>,
    %152 = vector.extract_strided_slice %114 {offsets = [0, 768], sizes = [6, 32], strides = [1, 1]} : vector<6x864xf32> to vector<6x32xf32>
    %cst_59 = arith.constant dense<0.000000e+00> : vector<6x16xf32>
    %153 = tpu.matmul %152, %115, %cst_59 {dimension_numbers = #tpu.dot_dimension_numbers<[1], [0], [0], [1], [0, 0, 1, 1], [], []>} : vector<6x32xf32>, vector<32x16xf32>, vector<6x16xf32> -> vector<6x16xf32>
    %c0_60 = arith.constant 0 : index
    %c192 = arith.constant 192 : index
    %154 = vector.load %arg15[%c0_60, %c192] : memref<6x256xf32, #tpu.memory_space<vmem>>, vector<6x16xf32>
    tpu.vector_store %arg15[%c0_60, %c192], %153 {strides = array<i32>} : memref<6x256xf32, #tpu.memory_space<vmem>>, vector<6x16xf32>,
    %155 = vector.extract_strided_slice %114 {offsets = [0, 832], sizes = [6, 32], strides = [1, 1]} : vector<6x864xf32> to vector<6x32xf32>
    %cst_61 = arith.constant dense<0.000000e+00> : vector<6x16xf32>
    %156 = tpu.matmul %155, %115, %cst_61 {dimension_numbers = #tpu.dot_dimension_numbers<[1], [0], [0], [1], [0, 0, 1, 1], [], []>} : vector<6x32xf32>, vector<32x16xf32>, vector<6x16xf32> -> vector<6x16xf32>
    %c0_62 = arith.constant 0 : index
    %c208 = arith.constant 208 : index
    %157 = vector.load %arg15[%c0_62, %c208] : memref<6x256xf32, #tpu.memory_space<vmem>>, vector<6x16xf32>
    tpu.vector_store %arg15[%c0_62, %c208], %156 {strides = array<i32>} : memref<6x256xf32, #tpu.memory_space<vmem>>, vector<6x16xf32>,
    %cst_63 = arith.constant 0.000000e+00 : f32
    %158 = vector.broadcast %cst_63 : f32 to vector<6x32xf32>
    %c0_64 = arith.constant 0 : index
    %c224 = arith.constant 224 : index
    %159 = vector.load %arg15[%c0_64, %c224] : memref<6x256xf32, #tpu.memory_space<vmem>>, vector<6x32xf32>
    tpu.vector_store %arg15[%c0_64, %c224], %158 {strides = array<i32>} : memref<6x256xf32, #tpu.memory_space<vmem>>, vector<6x32xf32>,
    %c0_65 = arith.constant 0 : index
    %c0_66 = arith.constant 0 : index
    %160 = vector.load %arg15[%c0_65, %c0_66] : memref<6x256xf32, #tpu.memory_space<vmem>>, vector<6x256xf32>
    %c0_67 = arith.constant 0 : index
    %c0_68 = arith.constant 0 : index
    %161 = vector.load %arg4[%c0_67, %c0_68] : memref<16x150xf32, #tpu.memory_space<vmem>>, vector<16x150xf32>
    %cst_69 = arith.constant 0.000000e+00 : f32
    %162 = vector.broadcast %cst_69 : f32 to vector<16x176xf32>
    %163 = vector.extract_strided_slice %161 {offsets = [0, 0], sizes = [16, 6], strides = [1, 1]} : vector<16x150xf32> to vector<16x6xf32>
    %164 = vector.extract_strided_slice %160 {offsets = [0, 0], sizes = [6, 176], strides = [1, 1]} : vector<6x256xf32> to vector<6x176xf32>
    %cst_70 = arith.constant dense<0.000000e+00> : vector<16x176xf32>
    %165 = tpu.matmul %163, %164, %cst_70 {dimension_numbers = #tpu.dot_dimension_numbers<[1], [0], [0], [1], [0, 0, 1, 1], [], []>} : vector<16x6xf32>, vector<6x176xf32>, vector<16x176xf32> -> vector<16x176xf32>
    %166 = arith.addf %162, %165 : vector<16x176xf32>
    %167 = vector.extract_strided_slice %161 {offsets = [0, 6], sizes = [16, 6], strides = [1, 1]} : vector<16x150xf32> to vector<16x6xf32>
    %168 = vector.extract_strided_slice %160 {offsets = [0, 1], sizes = [6, 176], strides = [1, 1]} : vector<6x256xf32> to vector<6x176xf32>
    %cst_71 = arith.constant dense<0.000000e+00> : vector<16x176xf32>
    %169 = tpu.matmul %167, %168, %cst_71 {dimension_numbers = #tpu.dot_dimension_numbers<[1], [0], [0], [1], [0, 0, 1, 1], [], []>} : vector<16x6xf32>, vector<6x176xf32>, vector<16x176xf32> -> vector<16x176xf32>
    %170 = arith.addf %166, %169 : vector<16x176xf32>
    %171 = vector.extract_strided_slice %161 {offsets = [0, 12], sizes = [16, 6], strides = [1, 1]} : vector<16x150xf32> to vector<16x6xf32>
    %172 = vector.extract_strided_slice %160 {offsets = [0, 2], sizes = [6, 176], strides = [1, 1]} : vector<6x256xf32> to vector<6x176xf32>
    %cst_72 = arith.constant dense<0.000000e+00> : vector<16x176xf32>
    %173 = tpu.matmul %171, %172, %cst_72 {dimension_numbers = #tpu.dot_dimension_numbers<[1], [0], [0], [1], [0, 0, 1, 1], [], []>} : vector<16x6xf32>, vector<6x176xf32>, vector<16x176xf32> -> vector<16x176xf32>
    %174 = arith.addf %170, %173 : vector<16x176xf32>
    %175 = vector.extract_strided_slice %161 {offsets = [0, 18], sizes = [16, 6], strides = [1, 1]} : vector<16x150xf32> to vector<16x6xf32>
    %176 = vector.extract_strided_slice %160 {offsets = [0, 3], sizes = [6, 176], strides = [1, 1]} : vector<6x256xf32> to vector<6x176xf32>
    %cst_73 = arith.constant dense<0.000000e+00> : vector<16x176xf32>
    %177 = tpu.matmul %175, %176, %cst_73 {dimension_numbers = #tpu.dot_dimension_numbers<[1], [0], [0], [1], [0, 0, 1, 1], [], []>} : vector<16x6xf32>, vector<6x176xf32>, vector<16x176xf32> -> vector<16x176xf32>
    %178 = arith.addf %174, %177 : vector<16x176xf32>
    %179 = vector.extract_strided_slice %161 {offsets = [0, 24], sizes = [16, 6], strides = [1, 1]} : vector<16x150xf32> to vector<16x6xf32>
    %180 = vector.extract_strided_slice %160 {offsets = [0, 4], sizes = [6, 176], strides = [1, 1]} : vector<6x256xf32> to vector<6x176xf32>
    %cst_74 = arith.constant dense<0.000000e+00> : vector<16x176xf32>
    %181 = tpu.matmul %179, %180, %cst_74 {dimension_numbers = #tpu.dot_dimension_numbers<[1], [0], [0], [1], [0, 0, 1, 1], [], []>} : vector<16x6xf32>, vector<6x176xf32>, vector<16x176xf32> -> vector<16x176xf32>
    %182 = arith.addf %178, %181 : vector<16x176xf32>
    %183 = vector.extract_strided_slice %161 {offsets = [0, 30], sizes = [16, 6], strides = [1, 1]} : vector<16x150xf32> to vector<16x6xf32>
    %184 = vector.extract_strided_slice %160 {offsets = [0, 16], sizes = [6, 176], strides = [1, 1]} : vector<6x256xf32> to vector<6x176xf32>
    %cst_75 = arith.constant dense<0.000000e+00> : vector<16x176xf32>
    %185 = tpu.matmul %183, %184, %cst_75 {dimension_numbers = #tpu.dot_dimension_numbers<[1], [0], [0], [1], [0, 0, 1, 1], [], []>} : vector<16x6xf32>, vector<6x176xf32>, vector<16x176xf32> -> vector<16x176xf32>
    %186 = arith.addf %182, %185 : vector<16x176xf32>
    %187 = vector.extract_strided_slice %161 {offsets = [0, 36], sizes = [16, 6], strides = [1, 1]} : vector<16x150xf32> to vector<16x6xf32>
    %188 = vector.extract_strided_slice %160 {offsets = [0, 17], sizes = [6, 176], strides = [1, 1]} : vector<6x256xf32> to vector<6x176xf32>
    %cst_76 = arith.constant dense<0.000000e+00> : vector<16x176xf32>
    %189 = tpu.matmul %187, %188, %cst_76 {dimension_numbers = #tpu.dot_dimension_numbers<[1], [0], [0], [1], [0, 0, 1, 1], [], []>} : vector<16x6xf32>, vector<6x176xf32>, vector<16x176xf32> -> vector<16x176xf32>
    %190 = arith.addf %186, %189 : vector<16x176xf32>
    %191 = vector.extract_strided_slice %161 {offsets = [0, 42], sizes = [16, 6], strides = [1, 1]} : vector<16x150xf32> to vector<16x6xf32>
    %192 = vector.extract_strided_slice %160 {offsets = [0, 18], sizes = [6, 176], strides = [1, 1]} : vector<6x256xf32> to vector<6x176xf32>
    %cst_77 = arith.constant dense<0.000000e+00> : vector<16x176xf32>
    %193 = tpu.matmul %191, %192, %cst_77 {dimension_numbers = #tpu.dot_dimension_numbers<[1], [0], [0], [1], [0, 0, 1, 1], [], []>} : vector<16x6xf32>, vector<6x176xf32>, vector<16x176xf32> -> vector<16x176xf32>
    %194 = arith.addf %190, %193 : vector<16x176xf32>
    %195 = vector.extract_strided_slice %161 {offsets = [0, 48], sizes = [16, 6], strides = [1, 1]} : vector<16x150xf32> to vector<16x6xf32>
    %196 = vector.extract_strided_slice %160 {offsets = [0, 19], sizes = [6, 176], strides = [1, 1]} : vector<6x256xf32> to vector<6x176xf32>
    %cst_78 = arith.constant dense<0.000000e+00> : vector<16x176xf32>
    %197 = tpu.matmul %195, %196, %cst_78 {dimension_numbers = #tpu.dot_dimension_numbers<[1], [0], [0], [1], [0, 0, 1, 1], [], []>} : vector<16x6xf32>, vector<6x176xf32>, vector<16x176xf32> -> vector<16x176xf32>
    %198 = arith.addf %194, %197 : vector<16x176xf32>
    %199 = vector.extract_strided_slice %161 {offsets = [0, 54], sizes = [16, 6], strides = [1, 1]} : vector<16x150xf32> to vector<16x6xf32>
    %200 = vector.extract_strided_slice %160 {offsets = [0, 20], sizes = [6, 176], strides = [1, 1]} : vector<6x256xf32> to vector<6x176xf32>
    %cst_79 = arith.constant dense<0.000000e+00> : vector<16x176xf32>
    %201 = tpu.matmul %199, %200, %cst_79 {dimension_numbers = #tpu.dot_dimension_numbers<[1], [0], [0], [1], [0, 0, 1, 1], [], []>} : vector<16x6xf32>, vector<6x176xf32>, vector<16x176xf32> -> vector<16x176xf32>
    %202 = arith.addf %198, %201 : vector<16x176xf32>
    %203 = vector.extract_strided_slice %161 {offsets = [0, 60], sizes = [16, 6], strides = [1, 1]} : vector<16x150xf32> to vector<16x6xf32>
    %204 = vector.extract_strided_slice %160 {offsets = [0, 32], sizes = [6, 176], strides = [1, 1]} : vector<6x256xf32> to vector<6x176xf32>
    %cst_80 = arith.constant dense<0.000000e+00> : vector<16x176xf32>
    %205 = tpu.matmul %203, %204, %cst_80 {dimension_numbers = #tpu.dot_dimension_numbers<[1], [0], [0], [1], [0, 0, 1, 1], [], []>} : vector<16x6xf32>, vector<6x176xf32>, vector<16x176xf32> -> vector<16x176xf32>
    %206 = arith.addf %202, %205 : vector<16x176xf32>
    %207 = vector.extract_strided_slice %161 {offsets = [0, 66], sizes = [16, 6], strides = [1, 1]} : vector<16x150xf32> to vector<16x6xf32>
    %208 = vector.extract_strided_slice %160 {offsets = [0, 33], sizes = [6, 176], strides = [1, 1]} : vector<6x256xf32> to vector<6x176xf32>
    %cst_81 = arith.constant dense<0.000000e+00> : vector<16x176xf32>
    %209 = tpu.matmul %207, %208, %cst_81 {dimension_numbers = #tpu.dot_dimension_numbers<[1], [0], [0], [1], [0, 0, 1, 1], [], []>} : vector<16x6xf32>, vector<6x176xf32>, vector<16x176xf32> -> vector<16x176xf32>
    %210 = arith.addf %206, %209 : vector<16x176xf32>
    %211 = vector.extract_strided_slice %161 {offsets = [0, 72], sizes = [16, 6], strides = [1, 1]} : vector<16x150xf32> to vector<16x6xf32>
    %212 = vector.extract_strided_slice %160 {offsets = [0, 34], sizes = [6, 176], strides = [1, 1]} : vector<6x256xf32> to vector<6x176xf32>
    %cst_82 = arith.constant dense<0.000000e+00> : vector<16x176xf32>
    %213 = tpu.matmul %211, %212, %cst_82 {dimension_numbers = #tpu.dot_dimension_numbers<[1], [0], [0], [1], [0, 0, 1, 1], [], []>} : vector<16x6xf32>, vector<6x176xf32>, vector<16x176xf32> -> vector<16x176xf32>
    %214 = arith.addf %210, %213 : vector<16x176xf32>
    %215 = vector.extract_strided_slice %161 {offsets = [0, 78], sizes = [16, 6], strides = [1, 1]} : vector<16x150xf32> to vector<16x6xf32>
    %216 = vector.extract_strided_slice %160 {offsets = [0, 35], sizes = [6, 176], strides = [1, 1]} : vector<6x256xf32> to vector<6x176xf32>
    %cst_83 = arith.constant dense<0.000000e+00> : vector<16x176xf32>
    %217 = tpu.matmul %215, %216, %cst_83 {dimension_numbers = #tpu.dot_dimension_numbers<[1], [0], [0], [1], [0, 0, 1, 1], [], []>} : vector<16x6xf32>, vector<6x176xf32>, vector<16x176xf32> -> vector<16x176xf32>
    %218 = arith.addf %214, %217 : vector<16x176xf32>
    %219 = vector.extract_strided_slice %161 {offsets = [0, 84], sizes = [16, 6], strides = [1, 1]} : vector<16x150xf32> to vector<16x6xf32>
    %220 = vector.extract_strided_slice %160 {offsets = [0, 36], sizes = [6, 176], strides = [1, 1]} : vector<6x256xf32> to vector<6x176xf32>
    %cst_84 = arith.constant dense<0.000000e+00> : vector<16x176xf32>
    %221 = tpu.matmul %219, %220, %cst_84 {dimension_numbers = #tpu.dot_dimension_numbers<[1], [0], [0], [1], [0, 0, 1, 1], [], []>} : vector<16x6xf32>, vector<6x176xf32>, vector<16x176xf32> -> vector<16x176xf32>
    %222 = arith.addf %218, %221 : vector<16x176xf32>
    %223 = vector.extract_strided_slice %161 {offsets = [0, 90], sizes = [16, 6], strides = [1, 1]} : vector<16x150xf32> to vector<16x6xf32>
    %224 = vector.extract_strided_slice %160 {offsets = [0, 48], sizes = [6, 176], strides = [1, 1]} : vector<6x256xf32> to vector<6x176xf32>
    %cst_85 = arith.constant dense<0.000000e+00> : vector<16x176xf32>
    %225 = tpu.matmul %223, %224, %cst_85 {dimension_numbers = #tpu.dot_dimension_numbers<[1], [0], [0], [1], [0, 0, 1, 1], [], []>} : vector<16x6xf32>, vector<6x176xf32>, vector<16x176xf32> -> vector<16x176xf32>
    %226 = arith.addf %222, %225 : vector<16x176xf32>
    %227 = vector.extract_strided_slice %161 {offsets = [0, 96], sizes = [16, 6], strides = [1, 1]} : vector<16x150xf32> to vector<16x6xf32>
    %228 = vector.extract_strided_slice %160 {offsets = [0, 49], sizes = [6, 176], strides = [1, 1]} : vector<6x256xf32> to vector<6x176xf32>
    %cst_86 = arith.constant dense<0.000000e+00> : vector<16x176xf32>
    %229 = tpu.matmul %227, %228, %cst_86 {dimension_numbers = #tpu.dot_dimension_numbers<[1], [0], [0], [1], [0, 0, 1, 1], [], []>} : vector<16x6xf32>, vector<6x176xf32>, vector<16x176xf32> -> vector<16x176xf32>
    %230 = arith.addf %226, %229 : vector<16x176xf32>
    %231 = vector.extract_strided_slice %161 {offsets = [0, 102], sizes = [16, 6], strides = [1, 1]} : vector<16x150xf32> to vector<16x6xf32>
    %232 = vector.extract_strided_slice %160 {offsets = [0, 50], sizes = [6, 176], strides = [1, 1]} : vector<6x256xf32> to vector<6x176xf32>
    %cst_87 = arith.constant dense<0.000000e+00> : vector<16x176xf32>
    %233 = tpu.matmul %231, %232, %cst_87 {dimension_numbers = #tpu.dot_dimension_numbers<[1], [0], [0], [1], [0, 0, 1, 1], [], []>} : vector<16x6xf32>, vector<6x176xf32>, vector<16x176xf32> -> vector<16x176xf32>
    %234 = arith.addf %230, %233 : vector<16x176xf32>
    %235 = vector.extract_strided_slice %161 {offsets = [0, 108], sizes = [16, 6], strides = [1, 1]} : vector<16x150xf32> to vector<16x6xf32>
    %236 = vector.extract_strided_slice %160 {offsets = [0, 51], sizes = [6, 176], strides = [1, 1]} : vector<6x256xf32> to vector<6x176xf32>
    %cst_88 = arith.constant dense<0.000000e+00> : vector<16x176xf32>
    %237 = tpu.matmul %235, %236, %cst_88 {dimension_numbers = #tpu.dot_dimension_numbers<[1], [0], [0], [1], [0, 0, 1, 1], [], []>} : vector<16x6xf32>, vector<6x176xf32>, vector<16x176xf32> -> vector<16x176xf32>
    %238 = arith.addf %234, %237 : vector<16x176xf32>
    %239 = vector.extract_strided_slice %161 {offsets = [0, 114], sizes = [16, 6], strides = [1, 1]} : vector<16x150xf32> to vector<16x6xf32>
    %240 = vector.extract_strided_slice %160 {offsets = [0, 52], sizes = [6, 176], strides = [1, 1]} : vector<6x256xf32> to vector<6x176xf32>
    %cst_89 = arith.constant dense<0.000000e+00> : vector<16x176xf32>
    %241 = tpu.matmul %239, %240, %cst_89 {dimension_numbers = #tpu.dot_dimension_numbers<[1], [0], [0], [1], [0, 0, 1, 1], [], []>} : vector<16x6xf32>, vector<6x176xf32>, vector<16x176xf32> -> vector<16x176xf32>
    %242 = arith.addf %238, %241 : vector<16x176xf32>
    %243 = vector.extract_strided_slice %161 {offsets = [0, 120], sizes = [16, 6], strides = [1, 1]} : vector<16x150xf32> to vector<16x6xf32>
    %244 = vector.extract_strided_slice %160 {offsets = [0, 64], sizes = [6, 176], strides = [1, 1]} : vector<6x256xf32> to vector<6x176xf32>
    %cst_90 = arith.constant dense<0.000000e+00> : vector<16x176xf32>
    %245 = tpu.matmul %243, %244, %cst_90 {dimension_numbers = #tpu.dot_dimension_numbers<[1], [0], [0], [1], [0, 0, 1, 1], [], []>} : vector<16x6xf32>, vector<6x176xf32>, vector<16x176xf32> -> vector<16x176xf32>
    %246 = arith.addf %242, %245 : vector<16x176xf32>
    %247 = vector.extract_strided_slice %161 {offsets = [0, 126], sizes = [16, 6], strides = [1, 1]} : vector<16x150xf32> to vector<16x6xf32>
    %248 = vector.extract_strided_slice %160 {offsets = [0, 65], sizes = [6, 176], strides = [1, 1]} : vector<6x256xf32> to vector<6x176xf32>
    %cst_91 = arith.constant dense<0.000000e+00> : vector<16x176xf32>
    %249 = tpu.matmul %247, %248, %cst_91 {dimension_numbers = #tpu.dot_dimension_numbers<[1], [0], [0], [1], [0, 0, 1, 1], [], []>} : vector<16x6xf32>, vector<6x176xf32>, vector<16x176xf32> -> vector<16x176xf32>
    %250 = arith.addf %246, %249 : vector<16x176xf32>
    %251 = vector.extract_strided_slice %161 {offsets = [0, 132], sizes = [16, 6], strides = [1, 1]} : vector<16x150xf32> to vector<16x6xf32>
    %252 = vector.extract_strided_slice %160 {offsets = [0, 66], sizes = [6, 176], strides = [1, 1]} : vector<6x256xf32> to vector<6x176xf32>
    %cst_92 = arith.constant dense<0.000000e+00> : vector<16x176xf32>
    %253 = tpu.matmul %251, %252, %cst_92 {dimension_numbers = #tpu.dot_dimension_numbers<[1], [0], [0], [1], [0, 0, 1, 1], [], []>} : vector<16x6xf32>, vector<6x176xf32>, vector<16x176xf32> -> vector<16x176xf32>
    %254 = arith.addf %250, %253 : vector<16x176xf32>
    %255 = vector.extract_strided_slice %161 {offsets = [0, 138], sizes = [16, 6], strides = [1, 1]} : vector<16x150xf32> to vector<16x6xf32>
    %256 = vector.extract_strided_slice %160 {offsets = [0, 67], sizes = [6, 176], strides = [1, 1]} : vector<6x256xf32> to vector<6x176xf32>
    %cst_93 = arith.constant dense<0.000000e+00> : vector<16x176xf32>
    %257 = tpu.matmul %255, %256, %cst_93 {dimension_numbers = #tpu.dot_dimension_numbers<[1], [0], [0], [1], [0, 0, 1, 1], [], []>} : vector<16x6xf32>, vector<6x176xf32>, vector<16x176xf32> -> vector<16x176xf32>
    %258 = arith.addf %254, %257 : vector<16x176xf32>
    %259 = vector.extract_strided_slice %161 {offsets = [0, 144], sizes = [16, 6], strides = [1, 1]} : vector<16x150xf32> to vector<16x6xf32>
    %260 = vector.extract_strided_slice %160 {offsets = [0, 68], sizes = [6, 176], strides = [1, 1]} : vector<6x256xf32> to vector<6x176xf32>
    %cst_94 = arith.constant dense<0.000000e+00> : vector<16x176xf32>
    %261 = tpu.matmul %259, %260, %cst_94 {dimension_numbers = #tpu.dot_dimension_numbers<[1], [0], [0], [1], [0, 0, 1, 1], [], []>} : vector<16x6xf32>, vector<6x176xf32>, vector<16x176xf32> -> vector<16x176xf32>
    %262 = arith.addf %258, %261 : vector<16x176xf32>
    %c0_95 = arith.constant 0 : index
    %c0_96 = arith.constant 0 : index
    %263 = vector.load %arg5[%c0_95, %c0_96] : memref<16x1xf32, #tpu.memory_space<vmem>>, vector<16x1xf32>
    %264 = vector.broadcast %263 : vector<16x1xf32> to vector<16x176xf32>
    %265 = arith.addf %262, %264 : vector<16x176xf32>
    %cst_97 = arith.constant 0.000000e+00 : f32
    %266 = vector.broadcast %cst_97 : f32 to vector<16x176xf32>
    %267 = arith.maximumf %265, %266 : vector<16x176xf32>
    %268 = vector.extract_strided_slice %267 {offsets = [0, 0], sizes = [16, 160], strides = [1, 1]} : vector<16x176xf32> to vector<16x160xf32>
    %269 = vector.extract_strided_slice %267 {offsets = [0, 16], sizes = [16, 160], strides = [1, 1]} : vector<16x176xf32> to vector<16x160xf32>
    %270 = arith.maximumf %268, %269 : vector<16x160xf32>
    %271 = vector.extract_strided_slice %270 {offsets = [0, 0], sizes = [16, 144], strides = [1, 1]} : vector<16x160xf32> to vector<16x144xf32>
    %272 = vector.extract_strided_slice %270 {offsets = [0, 1], sizes = [16, 144], strides = [1, 1]} : vector<16x160xf32> to vector<16x144xf32>
    %273 = arith.maximumf %271, %272 : vector<16x144xf32>
    %c0_98 = arith.constant 0 : index
    %c0_99 = arith.constant 0 : index
    %274 = vector.load %arg7[%c0_98, %c0_99] : memref<16x8xf32, #tpu.memory_space<vmem>>, vector<16x8xf32>
    %275 = vector.extract_strided_slice %273 {offsets = [0, 0], sizes = [16, 16], strides = [1, 1]} : vector<16x144xf32> to vector<16x16xf32>
    %cst_100 = arith.constant dense<0.000000e+00> : vector<16x8xf32>
    %276 = tpu.matmul %275, %274, %cst_100 {dimension_numbers = #tpu.dot_dimension_numbers<[1], [0], [0], [1], [0, 0, 1, 1], [], []>} : vector<16x16xf32>, vector<16x8xf32>, vector<16x8xf32> -> vector<16x8xf32>
    %c0_101 = arith.constant 0 : index
    %c0_102 = arith.constant 0 : index
    %277 = vector.load %arg16[%c0_101, %c0_102] : memref<16x40xf32, #tpu.memory_space<vmem>>, vector<16x8xf32>
    tpu.vector_store %arg16[%c0_101, %c0_102], %276 {strides = array<i32>} : memref<16x40xf32, #tpu.memory_space<vmem>>, vector<16x8xf32>,
    %278 = vector.extract_strided_slice %273 {offsets = [0, 32], sizes = [16, 16], strides = [1, 1]} : vector<16x144xf32> to vector<16x16xf32>
    %cst_103 = arith.constant dense<0.000000e+00> : vector<16x8xf32>
    %279 = tpu.matmul %278, %274, %cst_103 {dimension_numbers = #tpu.dot_dimension_numbers<[1], [0], [0], [1], [0, 0, 1, 1], [], []>} : vector<16x16xf32>, vector<16x8xf32>, vector<16x8xf32> -> vector<16x8xf32>
    %c0_104 = arith.constant 0 : index
    %c8 = arith.constant 8 : index
    %280 = vector.load %arg16[%c0_104, %c8] : memref<16x40xf32, #tpu.memory_space<vmem>>, vector<16x8xf32>
    tpu.vector_store %arg16[%c0_104, %c8], %279 {strides = array<i32>} : memref<16x40xf32, #tpu.memory_space<vmem>>, vector<16x8xf32>,
    %281 = vector.extract_strided_slice %273 {offsets = [0, 64], sizes = [16, 16], strides = [1, 1]} : vector<16x144xf32> to vector<16x16xf32>
    %cst_105 = arith.constant dense<0.000000e+00> : vector<16x8xf32>
    %282 = tpu.matmul %281, %274, %cst_105 {dimension_numbers = #tpu.dot_dimension_numbers<[1], [0], [0], [1], [0, 0, 1, 1], [], []>} : vector<16x16xf32>, vector<16x8xf32>, vector<16x8xf32> -> vector<16x8xf32>
    %c0_106 = arith.constant 0 : index
    %c16_107 = arith.constant 16 : index
    %283 = vector.load %arg16[%c0_106, %c16_107] : memref<16x40xf32, #tpu.memory_space<vmem>>, vector<16x8xf32>
    tpu.vector_store %arg16[%c0_106, %c16_107], %282 {strides = array<i32>} : memref<16x40xf32, #tpu.memory_space<vmem>>, vector<16x8xf32>,
    %284 = vector.extract_strided_slice %273 {offsets = [0, 96], sizes = [16, 16], strides = [1, 1]} : vector<16x144xf32> to vector<16x16xf32>
    %cst_108 = arith.constant dense<0.000000e+00> : vector<16x8xf32>
    %285 = tpu.matmul %284, %274, %cst_108 {dimension_numbers = #tpu.dot_dimension_numbers<[1], [0], [0], [1], [0, 0, 1, 1], [], []>} : vector<16x16xf32>, vector<16x8xf32>, vector<16x8xf32> -> vector<16x8xf32>
    %c0_109 = arith.constant 0 : index
    %c24 = arith.constant 24 : index
    %286 = vector.load %arg16[%c0_109, %c24] : memref<16x40xf32, #tpu.memory_space<vmem>>, vector<16x8xf32>
    tpu.vector_store %arg16[%c0_109, %c24], %285 {strides = array<i32>} : memref<16x40xf32, #tpu.memory_space<vmem>>, vector<16x8xf32>,
    %287 = vector.extract_strided_slice %273 {offsets = [0, 128], sizes = [16, 16], strides = [1, 1]} : vector<16x144xf32> to vector<16x16xf32>
    %cst_110 = arith.constant dense<0.000000e+00> : vector<16x8xf32>
    %288 = tpu.matmul %287, %274, %cst_110 {dimension_numbers = #tpu.dot_dimension_numbers<[1], [0], [0], [1], [0, 0, 1, 1], [], []>} : vector<16x16xf32>, vector<16x8xf32>, vector<16x8xf32> -> vector<16x8xf32>
    %c0_111 = arith.constant 0 : index
    %c32_112 = arith.constant 32 : index
    %289 = vector.load %arg16[%c0_111, %c32_112] : memref<16x40xf32, #tpu.memory_space<vmem>>, vector<16x8xf32>
    tpu.vector_store %arg16[%c0_111, %c32_112], %288 {strides = array<i32>} : memref<16x40xf32, #tpu.memory_space<vmem>>, vector<16x8xf32>,
    %c0_113 = arith.constant 0 : index
    %c0_114 = arith.constant 0 : index
    %290 = vector.load %arg16[%c0_113, %c0_114] : memref<16x40xf32, #tpu.memory_space<vmem>>, vector<16x40xf32>
    %c0_115 = arith.constant 0 : index
    %c0_116 = arith.constant 0 : index
    %291 = vector.load %arg9[%c0_115, %c0_116] : memref<1x128xf32, #tpu.memory_space<vmem>>, vector<1x128xf32>
    %292 = vector.extract_strided_slice %290 {offsets = [0, 0], sizes = [1, 40], strides = [1, 1]} : vector<16x40xf32> to vector<1x40xf32>
    %c0_117 = arith.constant 0 : index
    %c0_118 = arith.constant 0 : index
    %c0_119 = arith.constant 0 : index
    %293 = vector.load %arg8[%c0_117, %c0_118, %c0_119] : memref<16x40x128xf32, #tpu.memory_space<vmem>>, vector<1x40x128xf32>
    %294 = vector.shape_cast %293 : vector<1x40x128xf32> to vector<40x128xf32>
    %cst_120 = arith.constant dense<0.000000e+00> : vector<1x128xf32>
    %295 = tpu.matmul %292, %294, %cst_120 {dimension_numbers = #tpu.dot_dimension_numbers<[1], [0], [0], [1], [0, 0, 1, 1], [], []>} : vector<1x40xf32>, vector<40x128xf32>, vector<1x128xf32> -> vector<1x128xf32>
    %296 = arith.addf %291, %295 : vector<1x128xf32>
    %297 = vector.extract_strided_slice %290 {offsets = [1, 0], sizes = [1, 40], strides = [1, 1]} : vector<16x40xf32> to vector<1x40xf32>
    %c1 = arith.constant 1 : index
    %c0_121 = arith.constant 0 : index
    %c0_122 = arith.constant 0 : index
    %298 = vector.load %arg8[%c1, %c0_121, %c0_122] : memref<16x40x128xf32, #tpu.memory_space<vmem>>, vector<1x40x128xf32>
    %299 = vector.shape_cast %298 : vector<1x40x128xf32> to vector<40x128xf32>
    %cst_123 = arith.constant dense<0.000000e+00> : vector<1x128xf32>
    %300 = tpu.matmul %297, %299, %cst_123 {dimension_numbers = #tpu.dot_dimension_numbers<[1], [0], [0], [1], [0, 0, 1, 1], [], []>} : vector<1x40xf32>, vector<40x128xf32>, vector<1x128xf32> -> vector<1x128xf32>
    %301 = arith.addf %296, %300 : vector<1x128xf32>
    %302 = vector.extract_strided_slice %290 {offsets = [2, 0], sizes = [1, 40], strides = [1, 1]} : vector<16x40xf32> to vector<1x40xf32>
    %c2 = arith.constant 2 : index
    %c0_124 = arith.constant 0 : index
    %c0_125 = arith.constant 0 : index
    %303 = vector.load %arg8[%c2, %c0_124, %c0_125] : memref<16x40x128xf32, #tpu.memory_space<vmem>>, vector<1x40x128xf32>
    %304 = vector.shape_cast %303 : vector<1x40x128xf32> to vector<40x128xf32>
    %cst_126 = arith.constant dense<0.000000e+00> : vector<1x128xf32>
    %305 = tpu.matmul %302, %304, %cst_126 {dimension_numbers = #tpu.dot_dimension_numbers<[1], [0], [0], [1], [0, 0, 1, 1], [], []>} : vector<1x40xf32>, vector<40x128xf32>, vector<1x128xf32> -> vector<1x128xf32>
    %306 = arith.addf %301, %305 : vector<1x128xf32>
    %307 = vector.extract_strided_slice %290 {offsets = [3, 0], sizes = [1, 40], strides = [1, 1]} : vector<16x40xf32> to vector<1x40xf32>
    %c3 = arith.constant 3 : index
    %c0_127 = arith.constant 0 : index
    %c0_128 = arith.constant 0 : index
    %308 = vector.load %arg8[%c3, %c0_127, %c0_128] : memref<16x40x128xf32, #tpu.memory_space<vmem>>, vector<1x40x128xf32>
    %309 = vector.shape_cast %308 : vector<1x40x128xf32> to vector<40x128xf32>
    %cst_129 = arith.constant dense<0.000000e+00> : vector<1x128xf32>
    %310 = tpu.matmul %307, %309, %cst_129 {dimension_numbers = #tpu.dot_dimension_numbers<[1], [0], [0], [1], [0, 0, 1, 1], [], []>} : vector<1x40xf32>, vector<40x128xf32>, vector<1x128xf32> -> vector<1x128xf32>
    %311 = arith.addf %306, %310 : vector<1x128xf32>
    %312 = vector.extract_strided_slice %290 {offsets = [4, 0], sizes = [1, 40], strides = [1, 1]} : vector<16x40xf32> to vector<1x40xf32>
    %c4 = arith.constant 4 : index
    %c0_130 = arith.constant 0 : index
    %c0_131 = arith.constant 0 : index
    %313 = vector.load %arg8[%c4, %c0_130, %c0_131] : memref<16x40x128xf32, #tpu.memory_space<vmem>>, vector<1x40x128xf32>
    %314 = vector.shape_cast %313 : vector<1x40x128xf32> to vector<40x128xf32>
    %cst_132 = arith.constant dense<0.000000e+00> : vector<1x128xf32>
    %315 = tpu.matmul %312, %314, %cst_132 {dimension_numbers = #tpu.dot_dimension_numbers<[1], [0], [0], [1], [0, 0, 1, 1], [], []>} : vector<1x40xf32>, vector<40x128xf32>, vector<1x128xf32> -> vector<1x128xf32>
    %316 = arith.addf %311, %315 : vector<1x128xf32>
    %317 = vector.extract_strided_slice %290 {offsets = [5, 0], sizes = [1, 40], strides = [1, 1]} : vector<16x40xf32> to vector<1x40xf32>
    %c5 = arith.constant 5 : index
    %c0_133 = arith.constant 0 : index
    %c0_134 = arith.constant 0 : index
    %318 = vector.load %arg8[%c5, %c0_133, %c0_134] : memref<16x40x128xf32, #tpu.memory_space<vmem>>, vector<1x40x128xf32>
    %319 = vector.shape_cast %318 : vector<1x40x128xf32> to vector<40x128xf32>
    %cst_135 = arith.constant dense<0.000000e+00> : vector<1x128xf32>
    %320 = tpu.matmul %317, %319, %cst_135 {dimension_numbers = #tpu.dot_dimension_numbers<[1], [0], [0], [1], [0, 0, 1, 1], [], []>} : vector<1x40xf32>, vector<40x128xf32>, vector<1x128xf32> -> vector<1x128xf32>
    %321 = arith.addf %316, %320 : vector<1x128xf32>
    %322 = vector.extract_strided_slice %290 {offsets = [6, 0], sizes = [1, 40], strides = [1, 1]} : vector<16x40xf32> to vector<1x40xf32>
    %c6 = arith.constant 6 : index
    %c0_136 = arith.constant 0 : index
    %c0_137 = arith.constant 0 : index
    %323 = vector.load %arg8[%c6, %c0_136, %c0_137] : memref<16x40x128xf32, #tpu.memory_space<vmem>>, vector<1x40x128xf32>
    %324 = vector.shape_cast %323 : vector<1x40x128xf32> to vector<40x128xf32>
    %cst_138 = arith.constant dense<0.000000e+00> : vector<1x128xf32>
    %325 = tpu.matmul %322, %324, %cst_138 {dimension_numbers = #tpu.dot_dimension_numbers<[1], [0], [0], [1], [0, 0, 1, 1], [], []>} : vector<1x40xf32>, vector<40x128xf32>, vector<1x128xf32> -> vector<1x128xf32>
    %326 = arith.addf %321, %325 : vector<1x128xf32>
    %327 = vector.extract_strided_slice %290 {offsets = [7, 0], sizes = [1, 40], strides = [1, 1]} : vector<16x40xf32> to vector<1x40xf32>
    %c7 = arith.constant 7 : index
    %c0_139 = arith.constant 0 : index
    %c0_140 = arith.constant 0 : index
    %328 = vector.load %arg8[%c7, %c0_139, %c0_140] : memref<16x40x128xf32, #tpu.memory_space<vmem>>, vector<1x40x128xf32>
    %329 = vector.shape_cast %328 : vector<1x40x128xf32> to vector<40x128xf32>
    %cst_141 = arith.constant dense<0.000000e+00> : vector<1x128xf32>
    %330 = tpu.matmul %327, %329, %cst_141 {dimension_numbers = #tpu.dot_dimension_numbers<[1], [0], [0], [1], [0, 0, 1, 1], [], []>} : vector<1x40xf32>, vector<40x128xf32>, vector<1x128xf32> -> vector<1x128xf32>
    %331 = arith.addf %326, %330 : vector<1x128xf32>
    %332 = vector.extract_strided_slice %290 {offsets = [8, 0], sizes = [1, 40], strides = [1, 1]} : vector<16x40xf32> to vector<1x40xf32>
    %c8_142 = arith.constant 8 : index
    %c0_143 = arith.constant 0 : index
    %c0_144 = arith.constant 0 : index
    %333 = vector.load %arg8[%c8_142, %c0_143, %c0_144] : memref<16x40x128xf32, #tpu.memory_space<vmem>>, vector<1x40x128xf32>
    %334 = vector.shape_cast %333 : vector<1x40x128xf32> to vector<40x128xf32>
    %cst_145 = arith.constant dense<0.000000e+00> : vector<1x128xf32>
    %335 = tpu.matmul %332, %334, %cst_145 {dimension_numbers = #tpu.dot_dimension_numbers<[1], [0], [0], [1], [0, 0, 1, 1], [], []>} : vector<1x40xf32>, vector<40x128xf32>, vector<1x128xf32> -> vector<1x128xf32>
    %336 = arith.addf %331, %335 : vector<1x128xf32>
    %337 = vector.extract_strided_slice %290 {offsets = [9, 0], sizes = [1, 40], strides = [1, 1]} : vector<16x40xf32> to vector<1x40xf32>
    %c9 = arith.constant 9 : index
    %c0_146 = arith.constant 0 : index
    %c0_147 = arith.constant 0 : index
    %338 = vector.load %arg8[%c9, %c0_146, %c0_147] : memref<16x40x128xf32, #tpu.memory_space<vmem>>, vector<1x40x128xf32>
    %339 = vector.shape_cast %338 : vector<1x40x128xf32> to vector<40x128xf32>
    %cst_148 = arith.constant dense<0.000000e+00> : vector<1x128xf32>
    %340 = tpu.matmul %337, %339, %cst_148 {dimension_numbers = #tpu.dot_dimension_numbers<[1], [0], [0], [1], [0, 0, 1, 1], [], []>} : vector<1x40xf32>, vector<40x128xf32>, vector<1x128xf32> -> vector<1x128xf32>
    %341 = arith.addf %336, %340 : vector<1x128xf32>
    %342 = vector.extract_strided_slice %290 {offsets = [10, 0], sizes = [1, 40], strides = [1, 1]} : vector<16x40xf32> to vector<1x40xf32>
    %c10 = arith.constant 10 : index
    %c0_149 = arith.constant 0 : index
    %c0_150 = arith.constant 0 : index
    %343 = vector.load %arg8[%c10, %c0_149, %c0_150] : memref<16x40x128xf32, #tpu.memory_space<vmem>>, vector<1x40x128xf32>
    %344 = vector.shape_cast %343 : vector<1x40x128xf32> to vector<40x128xf32>
    %cst_151 = arith.constant dense<0.000000e+00> : vector<1x128xf32>
    %345 = tpu.matmul %342, %344, %cst_151 {dimension_numbers = #tpu.dot_dimension_numbers<[1], [0], [0], [1], [0, 0, 1, 1], [], []>} : vector<1x40xf32>, vector<40x128xf32>, vector<1x128xf32> -> vector<1x128xf32>
    %346 = arith.addf %341, %345 : vector<1x128xf32>
    %347 = vector.extract_strided_slice %290 {offsets = [11, 0], sizes = [1, 40], strides = [1, 1]} : vector<16x40xf32> to vector<1x40xf32>
    %c11 = arith.constant 11 : index
    %c0_152 = arith.constant 0 : index
    %c0_153 = arith.constant 0 : index
    %348 = vector.load %arg8[%c11, %c0_152, %c0_153] : memref<16x40x128xf32, #tpu.memory_space<vmem>>, vector<1x40x128xf32>
    %349 = vector.shape_cast %348 : vector<1x40x128xf32> to vector<40x128xf32>
    %cst_154 = arith.constant dense<0.000000e+00> : vector<1x128xf32>
    %350 = tpu.matmul %347, %349, %cst_154 {dimension_numbers = #tpu.dot_dimension_numbers<[1], [0], [0], [1], [0, 0, 1, 1], [], []>} : vector<1x40xf32>, vector<40x128xf32>, vector<1x128xf32> -> vector<1x128xf32>
    %351 = arith.addf %346, %350 : vector<1x128xf32>
    %352 = vector.extract_strided_slice %290 {offsets = [12, 0], sizes = [1, 40], strides = [1, 1]} : vector<16x40xf32> to vector<1x40xf32>
    %c12 = arith.constant 12 : index
    %c0_155 = arith.constant 0 : index
    %c0_156 = arith.constant 0 : index
    %353 = vector.load %arg8[%c12, %c0_155, %c0_156] : memref<16x40x128xf32, #tpu.memory_space<vmem>>, vector<1x40x128xf32>
    %354 = vector.shape_cast %353 : vector<1x40x128xf32> to vector<40x128xf32>
    %cst_157 = arith.constant dense<0.000000e+00> : vector<1x128xf32>
    %355 = tpu.matmul %352, %354, %cst_157 {dimension_numbers = #tpu.dot_dimension_numbers<[1], [0], [0], [1], [0, 0, 1, 1], [], []>} : vector<1x40xf32>, vector<40x128xf32>, vector<1x128xf32> -> vector<1x128xf32>
    %356 = arith.addf %351, %355 : vector<1x128xf32>
    %357 = vector.extract_strided_slice %290 {offsets = [13, 0], sizes = [1, 40], strides = [1, 1]} : vector<16x40xf32> to vector<1x40xf32>
    %c13 = arith.constant 13 : index
    %c0_158 = arith.constant 0 : index
    %c0_159 = arith.constant 0 : index
    %358 = vector.load %arg8[%c13, %c0_158, %c0_159] : memref<16x40x128xf32, #tpu.memory_space<vmem>>, vector<1x40x128xf32>
    %359 = vector.shape_cast %358 : vector<1x40x128xf32> to vector<40x128xf32>
    %cst_160 = arith.constant dense<0.000000e+00> : vector<1x128xf32>
    %360 = tpu.matmul %357, %359, %cst_160 {dimension_numbers = #tpu.dot_dimension_numbers<[1], [0], [0], [1], [0, 0, 1, 1], [], []>} : vector<1x40xf32>, vector<40x128xf32>, vector<1x128xf32> -> vector<1x128xf32>
    %361 = arith.addf %356, %360 : vector<1x128xf32>
    %362 = vector.extract_strided_slice %290 {offsets = [14, 0], sizes = [1, 40], strides = [1, 1]} : vector<16x40xf32> to vector<1x40xf32>
    %c14 = arith.constant 14 : index
    %c0_161 = arith.constant 0 : index
    %c0_162 = arith.constant 0 : index
    %363 = vector.load %arg8[%c14, %c0_161, %c0_162] : memref<16x40x128xf32, #tpu.memory_space<vmem>>, vector<1x40x128xf32>
    %364 = vector.shape_cast %363 : vector<1x40x128xf32> to vector<40x128xf32>
    %cst_163 = arith.constant dense<0.000000e+00> : vector<1x128xf32>
    %365 = tpu.matmul %362, %364, %cst_163 {dimension_numbers = #tpu.dot_dimension_numbers<[1], [0], [0], [1], [0, 0, 1, 1], [], []>} : vector<1x40xf32>, vector<40x128xf32>, vector<1x128xf32> -> vector<1x128xf32>
    %366 = arith.addf %361, %365 : vector<1x128xf32>
    %367 = vector.extract_strided_slice %290 {offsets = [15, 0], sizes = [1, 40], strides = [1, 1]} : vector<16x40xf32> to vector<1x40xf32>
    %c15 = arith.constant 15 : index
    %c0_164 = arith.constant 0 : index
    %c0_165 = arith.constant 0 : index
    %368 = vector.load %arg8[%c15, %c0_164, %c0_165] : memref<16x40x128xf32, #tpu.memory_space<vmem>>, vector<1x40x128xf32>
    %369 = vector.shape_cast %368 : vector<1x40x128xf32> to vector<40x128xf32>
    %cst_166 = arith.constant dense<0.000000e+00> : vector<1x128xf32>
    %370 = tpu.matmul %367, %369, %cst_166 {dimension_numbers = #tpu.dot_dimension_numbers<[1], [0], [0], [1], [0, 0, 1, 1], [], []>} : vector<1x40xf32>, vector<40x128xf32>, vector<1x128xf32> -> vector<1x128xf32>
    %371 = arith.addf %366, %370 : vector<1x128xf32>
    %cst_167 = arith.constant 0.000000e+00 : f32
    %372 = vector.broadcast %cst_167 : f32 to vector<1x128xf32>
    %373 = arith.maximumf %371, %372 : vector<1x128xf32>
    %c0_168 = arith.constant 0 : index
    %c0_169 = arith.constant 0 : index
    %374 = vector.load %arg10[%c0_168, %c0_169] : memref<128x128xf32, #tpu.memory_space<vmem>>, vector<128x128xf32>
    %cst_170 = arith.constant dense<0.000000e+00> : vector<1x128xf32>
    %375 = tpu.matmul %373, %374, %cst_170 {dimension_numbers = #tpu.dot_dimension_numbers<[1], [0], [0], [1], [0, 0, 1, 1], [], []>} : vector<1x128xf32>, vector<128x128xf32>, vector<1x128xf32> -> vector<1x128xf32>
    %c0_171 = arith.constant 0 : index
    %c0_172 = arith.constant 0 : index
    %376 = vector.load %arg11[%c0_171, %c0_172] : memref<1x128xf32, #tpu.memory_space<vmem>>, vector<1x128xf32>
    %377 = arith.addf %375, %376 : vector<1x128xf32>
    %cst_173 = arith.constant 0.000000e+00 : f32
    %378 = vector.broadcast %cst_173 : f32 to vector<1x128xf32>
    %379 = arith.maximumf %377, %378 : vector<1x128xf32>
    %c0_174 = arith.constant 0 : index
    %c0_175 = arith.constant 0 : index
    %380 = vector.load %arg12[%c0_174, %c0_175] : memref<128x128xf32, #tpu.memory_space<vmem>>, vector<128x128xf32>
    %cst_176 = arith.constant dense<0.000000e+00> : vector<1x128xf32>
    %381 = tpu.matmul %379, %380, %cst_176 {dimension_numbers = #tpu.dot_dimension_numbers<[1], [0], [0], [1], [0, 0, 1, 1], [], []>} : vector<1x128xf32>, vector<128x128xf32>, vector<1x128xf32> -> vector<1x128xf32>
    %c0_177 = arith.constant 0 : index
    %c0_178 = arith.constant 0 : index
    %382 = vector.load %arg13[%c0_177, %c0_178] : memref<1x128xf32, #tpu.memory_space<vmem>>, vector<1x128xf32>
    %383 = arith.addf %381, %382 : vector<1x128xf32>
    %c0_179 = arith.constant 0 : index
    %c0_180 = arith.constant 0 : index
    %c0_181 = arith.constant 0 : index
    %384 = vector.load %arg14[%c0_179, %c0_180, %c0_181] : memref<1x1x128xf32, #tpu.memory_space<vmem>>, vector<1x1x128xf32>
    %385 = vector.shape_cast %384 : vector<1x1x128xf32> to vector<1x128xf32>
    %386 = vector.shape_cast %383 : vector<1x128xf32> to vector<1x1x128xf32>
    tpu.vector_store %arg14[%c0_179, %c0_180, %c0_181], %386 {strides = array<i32>} : memref<1x1x128xf32, #tpu.memory_space<vmem>>, vector<1x1x128xf32>,
    return
  }
  func.func @transform_0(%arg0: i32) -> (i32, i32, i32) {
    %c0_i32 = arith.constant 0 : i32
    %c0_i32_0 = arith.constant 0 : i32
    %c0_i32_1 = arith.constant 0 : i32
    return %arg0, %c0_i32, %c0_i32_0 : i32, i32, i32
  }
  func.func @transform_1(%arg0: i32) -> (i32, i32) {
    %c0_i32 = arith.constant 0 : i32
    %c0_i32_0 = arith.constant 0 : i32
    %c0_i32_1 = arith.constant 0 : i32
    return %c0_i32, %c0_i32_0 : i32, i32
  }
  func.func @transform_2(%arg0: i32) -> (i32, i32) {
    %c0_i32 = arith.constant 0 : i32
    %c0_i32_0 = arith.constant 0 : i32
    %c0_i32_1 = arith.constant 0 : i32
    return %c0_i32, %c0_i32_0 : i32, i32
  }
  func.func @transform_3(%arg0: i32) -> (i32, i32) {
    %c0_i32 = arith.constant 0 : i32
    %c0_i32_0 = arith.constant 0 : i32
    %c0_i32_1 = arith.constant 0 : i32
    return %c0_i32, %c0_i32_0 : i32, i32
  }
  func.func @transform_4(%arg0: i32) -> (i32, i32) {
    %c0_i32 = arith.constant 0 : i32
    %c0_i32_0 = arith.constant 0 : i32
    %c0_i32_1 = arith.constant 0 : i32
    return %c0_i32, %c0_i32_0 : i32, i32
  }
  func.func @transform_5(%arg0: i32) -> (i32, i32) {
    %c0_i32 = arith.constant 0 : i32
    %c0_i32_0 = arith.constant 0 : i32
    %c0_i32_1 = arith.constant 0 : i32
    return %c0_i32, %c0_i32_0 : i32, i32
  }
  func.func @transform_6(%arg0: i32) -> (i32, i32) {
    %c0_i32 = arith.constant 0 : i32
    %c0_i32_0 = arith.constant 0 : i32
    %c0_i32_1 = arith.constant 0 : i32
    return %c0_i32, %c0_i32_0 : i32, i32
  }
  func.func @transform_7(%arg0: i32) -> (i32, i32, i32) {
    %c0_i32 = arith.constant 0 : i32
    %c0_i32_0 = arith.constant 0 : i32
    %c0_i32_1 = arith.constant 0 : i32
    %c0_i32_2 = arith.constant 0 : i32
    return %c0_i32, %c0_i32_0, %c0_i32_1 : i32, i32, i32
  }
  func.func @transform_8(%arg0: i32) -> (i32, i32) {
    %c0_i32 = arith.constant 0 : i32
    %c0_i32_0 = arith.constant 0 : i32
    %c0_i32_1 = arith.constant 0 : i32
    return %c0_i32, %c0_i32_0 : i32, i32
  }
  func.func @transform_9(%arg0: i32) -> (i32, i32) {
    %c0_i32 = arith.constant 0 : i32
    %c0_i32_0 = arith.constant 0 : i32
    %c0_i32_1 = arith.constant 0 : i32
    return %c0_i32, %c0_i32_0 : i32, i32
  }
  func.func @transform_10(%arg0: i32) -> (i32, i32) {
    %c0_i32 = arith.constant 0 : i32
    %c0_i32_0 = arith.constant 0 : i32
    %c0_i32_1 = arith.constant 0 : i32
    return %c0_i32, %c0_i32_0 : i32, i32
  }
  func.func @transform_11(%arg0: i32) -> (i32, i32) {
    %c0_i32 = arith.constant 0 : i32
    %c0_i32_0 = arith.constant 0 : i32
    %c0_i32_1 = arith.constant 0 : i32
    return %c0_i32, %c0_i32_0 : i32, i32
  }
  func.func @transform_12(%arg0: i32) -> (i32, i32) {
    %c0_i32 = arith.constant 0 : i32
    %c0_i32_0 = arith.constant 0 : i32
    %c0_i32_1 = arith.constant 0 : i32
    return %c0_i32, %c0_i32_0 : i32, i32
  }
  func.func @transform_13(%arg0: i32) -> (i32, i32, i32) {
    %c0_i32 = arith.constant 0 : i32
    %c0_i32_0 = arith.constant 0 : i32
    %c0_i32_1 = arith.constant 0 : i32
    return %arg0, %c0_i32, %c0_i32_0 : i32, i32, i32
  }
}

</mosaic_0001>

<bundles_post_ra>
// kernel: net_forward.1
= control target key start
LH: loop header
LB: loop body
LE: loop exit
PB: predicated region body
PF: predicated region fallthrough
CT: control target
= control target key end

     0   :  { %s18838_s0 = inlined_call_operand.vmem [shape: f32[2,3,1152], index: 0, kind: input, shape index: {}]   ;;  %s18839_s1 = inlined_call_operand.vmem [shape: f32[6,75], index: 1, kind: input, shape index: {}]   ;;  %s18840_s2 = inlined_call_operand.vmem [shape: f32[6,1], index: 2, kind: input, shape index: {}]   ;;  %s18841_s3 = inlined_call_operand.vmem [shape: f32[16,150], index: 3, kind: input, shape index: {}]   ;;  %s18842_s4 = inlined_call_operand.vmem [shape: f32[16,1], index: 4, kind: input, shape index: {}]   ;;  %s18843_s5 = inlined_call_operand.vmem [shape: f32[32,16], index: 5, kind: input, shape index: {}]   ;;  %s18844_s6 = inlined_call_operand.vmem [shape: f32[16,8], index: 6, kind: input, shape index: {}]   ;;  %s18845_s7 = inlined_call_operand.vmem [shape: f32[16,40,128], index: 7, kind: input, shape index: {}]   ;;  %s18846_s8 = inlined_call_operand.vmem [shape: f32[1,128], index: 8, kind: input, shape index: {}]   ;;  %s18847_s9 = inlined_call_operand.vmem [shape: f32[128,128], index: 9, kind: input, shape index: {}]   ;;  %s18848_s10 = inlined_call_operand.vmem [shape: f32[1,128], index: 10, kind: input, shape index: {}]   ;;  %s18849_s11 = inlined_call_operand.vmem [shape: f32[128,128], index: 11, kind: input, shape index: {}]   ;;  %s18850_s12 = inlined_call_operand.vmem [shape: f32[1,128], index: 12, kind: input, shape index: {}]   ;;  %s18851_s13 = inlined_call_operand.hbm [shape: f32[2,1,128], index: 13, kind: output, shape index: {}]  }
   0x1   :  { %18930 = sst [smem:[#allocation67_spill]] %s18838_s0 }
   0x2   :  { %18931 = sst [smem:[#allocation68_spill]] %s18839_s1 }
   0x3   :  { %18932 = sst [smem:[#allocation69_spill]] %s18840_s2 }
   0x4   :  { %18933 = sst [smem:[#allocation70_spill]] %s18843_s5 }
   0x5   :  { %18934 = sst [smem:[#allocation71_spill]] %s18851_s13 }
   0x6   :  { %18 = vsyncpa [#allocation5], 0 }
   0x7   :  { %20 = vsyncpa [#allocation5 + $0x1], 0  ;;  %s15902_s25 = smov 0   ;;  %s15904_s26 = smov 0  }
   0x8   :  { %s15906_s27 = smov 0   ;;  %s15908_s28 = smov 0  }
   0x9 LB: > { %18935 = sst [smem:[#allocation7_spill]] %s15756_s25  ;;  %s15923_s29 = sadd.s32 4294967295, %s15768_s28   ;;  %s15768_s28 = sphi %s15908_s28, %s19111_s28   ;;  %s15764_s27 = sphi %s15906_s27, %s19113_s27   ;;  %s15760_s26 = sphi %s15904_s26, %s19115_s26   ;;  %s15756_s25 = sphi %s15902_s25, %s19114_s25  }
   0xa   : > { %18936 = sst [smem:[#allocation8_spill]] %s15764_s27  ;;  %s14386_s30 = sadd.s32 4294967294, %s15768_s28  }
   0xb   : > { %18937 = sst [smem:[#allocation9_spill]] %s15768_s28  ;;  %s15927_s14 = sadd.s32 1, %s15768_s28  }
   0xc   : > { %18938 = sst [smem:[#allocation10_spill]] %s15927_s14  ;;  %s311_s15 = sadd.s32 1, %s15764_s27 }
   0xd   : > { %s308_s16 = ssub.s32 %s15768_s28, %s15927_s14  ;;  %p321_p0 = scmp.ne.s32.totalorder %s15764_s27, %s15760_s26 }
   0xe   : > { %p309_p1 = scmp.eq.s32.totalorder %s308_s16, 0  ;;  %p322_p2 = scmp.eq.s32.totalorder %s15923_s29, 1 }
   0xf   : > { %p327_p3 = scmp.ne.s32.totalorder %s15760_s26, %s15756_s25  ;;  %p328_p4 = scmp.eq.s32.totalorder %s14386_s30, 1 }
  0x10   : > { %s15938_s17 = scalar_select %p309_p1, %s15764_s27, %s311_s15  }
  0x11   : > { %p15940_p5 = por %p322_p2, %p321_p0  ;;  %p15944_p6 = por %p328_p4, %p327_p3 }
  0x12   : > { %18939 = sst [smem:[#allocation11_spill]] %s15938_s17  ;;  %p14389_p7 = scmp.ge.s32.totalorder %s15768_s28, 1 }
  0x13   : > { %s18941_s19 = scalar_select %p15944_p6, 1, 0 }
  0x14   : > { %p390_p8 = scmp.lt.s32.totalorder %s15768_s28, 3 }
  0x15   : > { %18942 = sst [smem:[#allocation12_spill]] %s18941_s19 }
  0x16   : > { %p391_p9 = pnand %p14389_p7, %p390_p8 }
  0x18   : > { %394 = sbr.rel (%p391_p9) target bundleno = 3247 (0xcaf), region = 72 }
  0x1d   : > { %s18943_s1 = sld [smem:[#allocation68_spill]]  ;;  %p433_p10 = scmp.lt.s32.totalorder %s15923_s29, 1  ;;  %v18892_v1 = vmov 0.0   ;;  %vm471_vm0 = vcmask 1039360   ;;  %vm482_vm1 = vcmask 1042432   ;;  %vm479_vm2 = vcmask 23552  }
  0x1e   : > { %s18868_s22 = smov 125   ;;  %634 = vmatprep.mubr.f32.mxu1 %v18892_v1  ;;  %563 = vmatprep.mubr.f32.mxu0 %v18892_v1  ;;  %s18944_s0 = sld [smem:[#allocation67_spill]]  ;;  %vm1103_vm3 = vcmask 1031168   ;;  %vm1439_vm4 = vcmask 1022976   ;;  %vm1775_vm5 = vcmask 1014784   ;;  %vm2111_vm6 = vcmask 785408  }
  0x1f   : > { %s434_s23 = scalar_select %p433_p10, %s15923_s29, 1  ;;  %vm2447_vm7 = vcmask 777216   ;;  %vm2783_vm8 = vcmask 769024   ;;  %vm3119_vm9 = vcmask 760832   ;;  %vm3455_vm10 = vcmask 752640  }
  0x20   : > { %s18908_s20 = smov 127   ;;  %s18899_s21 = smov 126   ;;  %vm18919_vm11 = vcmask 523264   ;;  %vm18918_vm12 = vcmask 515072   ;;  %vm18898_vm13 = vcmask 506880   ;;  %vm18896_vm14 = vcmask 498688  }
  0x21   : > { %s15596_s24 = smul.u32 36, %s434_s23  ;;  %s18852_s23 = smov 122   ;;  %vm18897_vm15 = vcmask 490496  }
  0x22   : > { %s18858_s30 = smov 124   ;;  %s18854_s15 = smov 116  }
  0x23   : > { %v15953_v0 = vld [vmem:[%s18943_s1] sm:$0x3f]  ;;  %s18974_s2 = sld [smem:[#allocation69_spill]]  ;;  %s15813_s17 = smov 48  }
  0x24   : > { %445 = vrot.lane.b32.xlu1 %v15953_v0, %s18868_s22  ;;  %s15964_s16 = scalar_lea.vmem %s18944_s0, %s15596_s24  ;;  %s15775_s24 = smov 119  }
  0x25   : > { %v15967_v2 = vld [vmem:[%s15964_s16 + $0x8] sm:$0x77]  ;;  %v15970_v3 = vld [vmem:[%s15964_s16] sm:$0x77]  ;;  %v15981_v5 = vld [vmem:[%s15964_s16 + $0x10] sm:$0x77] }
  0x26   : > { %459 = vrot.lane.b32.xlu0 %v15967_v2, %s18908_s20  ;;  %v15978_v4 = vcombine.high %v15967_v2, %v15967_v2  ;;  %v15989_v6 = vcombine.high %v15970_v3, %v15970_v3  ;;  %v15992_v7 = vld [vmem:[%s15964_s16 + $0x18] sm:$0x77]  ;;  %v16000_v8 = vcombine.high %v15981_v5, %v15981_v5  ;;  %s19069_s5 = sld [smem:[#allocation70_spill]]  ;;  %s19073_s0 = smov 122  }
  0x27   : > { %v16008_v9 = vcombine.high %v15992_v7, %v15992_v7  ;;  %s18924_s27 = smov 112   ;;  %s19082_s14 = smov 68  }
  0x28   : > { %455 = vrot.lane.b32.xlu1 %v15970_v3, %s18908_s20  ;;  %s19083_s19 = smov 56   ;;  %s15823_s25 = smov 26  }
  0x29   : > { %s15824_s28 = smov 20   ;;  %s15825_s13 = smov 76  }
  0x2a   : > { %463 = vrot.lane.b32.xlu0 %v15981_v5, %s18908_s20 }
  0x2c   : > { %461 = vrot.lane.b32.xlu1 %v15978_v4, %s18908_s20 }
  0x2e   : > { %457 = vrot.lane.b32.xlu0 %v15989_v6, %s18908_s20 }
  0x30   : > { %467 = vrot.lane.b32.xlu1 %v15992_v7, %s18908_s20 }
  0x32   : > { %465 = vrot.lane.b32.xlu0 %v16000_v8, %s18908_s20 }
  0x34   : > { %1089 = vrot.lane.b32.xlu1 %v15989_v6, %s18899_s21 }
  0x36   : > { %469 = vrot.lane.b32.xlu0 %v16008_v9, %s18908_s20 }
  0x38   : > { %1087 = vrot.lane.b32.xlu1 %v15970_v3, %s18899_s21 }
  0x3a   : > { %1091 = vrot.lane.b32.xlu0 %v15967_v2, %s18899_s21 }
  0x3c   : > { %1095 = vrot.lane.b32.xlu1 %v15981_v5, %s18899_s21 }
  0x3e   : > { %1093 = vrot.lane.b32.xlu0 %v15978_v4, %s18899_s21 }
  0x40   : > { %1097 = vrot.lane.b32.xlu1 %v16000_v8, %s18899_s21 }
  0x42   : > { %1085 = vrot.lane.b32.xlu0 %v15953_v0, %s18852_s23  ;;  %s15779_s23 = smov 113  }
  0x44   : > { %1101 = vrot.lane.b32.xlu1 %v16008_v9, %s18899_s21 }
  0x46   : > { %1099 = vrot.lane.b32.xlu0 %v15992_v7, %s18899_s21 }
  0x48   : > { %1427 = vrot.lane.b32.xlu1 %v15967_v2, %s18868_s22 }
  0x4a   : > { %1425 = vrot.lane.b32.xlu0 %v15989_v6, %s18868_s22 }
  0x4c   : > { %1429 = vrot.lane.b32.xlu1 %v15978_v4, %s18868_s22 }
  0x4e   : > { %1423 = vrot.lane.b32.xlu0 %v15970_v3, %s18868_s22 }
  0x50   : > { %1421 = vrot.lane.b32.xlu1 %v15953_v0, %s15775_s24  ;;  %s18856_s24 = smov 96  }
  0x52   : > { %1431 = vrot.lane.b32.xlu0 %v15981_v5, %s18868_s22 }
  0x54   : > { %1435 = vrot.lane.b32.xlu1 %v15992_v7, %s18868_s22 }
  0x56   : > { %1433 = vrot.lane.b32.xlu0 %v16000_v8, %s18868_s22 }
  0x58   : > { %1761 = vrot.lane.b32.xlu1 %v15989_v6, %s18858_s30 }
  0x5a   : > { %1437 = vrot.lane.b32.xlu0 %v16008_v9, %s18868_s22  ;;  %s18872_s22 = smov 63  }
  0x5c   : > { %1759 = vrot.lane.b32.xlu1 %v15970_v3, %s18858_s30 }
  0x5e   : > { %1763 = vrot.lane.b32.xlu0 %v15967_v2, %s18858_s30 }
  0x60   : > { %1767 = vrot.lane.b32.xlu1 %v15981_v5, %s18858_s30 }
  0x62   : > { %1765 = vrot.lane.b32.xlu0 %v15978_v4, %s18858_s30 }
  0x64   : > { %1769 = vrot.lane.b32.xlu1 %v16000_v8, %s18858_s30 }
  0x66   : > { %1757 = vrot.lane.b32.xlu0 %v15953_v0, %s18854_s15  ;;  %s18870_s15 = smov 95  }
  0x68   : > { %1773 = vrot.lane.b32.xlu1 %v16008_v9, %s18858_s30 }
  0x6a   : > { %1771 = vrot.lane.b32.xlu0 %v15992_v7, %s18858_s30  ;;  %s15783_s30 = smov 107  }
  0x6c   : > { %2099 = vrot.lane.b32.xlu1 %v15967_v2, %s18856_s24 }
  0x6e   : > { %2097 = vrot.lane.b32.xlu0 %v15989_v6, %s18856_s24 }
  0x70   : > { %2101 = vrot.lane.b32.xlu1 %v15978_v4, %s18856_s24 }
  0x72   : > { %2095 = vrot.lane.b32.xlu0 %v15970_v3, %s18856_s24 }
  0x74   : > { %2093 = vrot.lane.b32.xlu1 %v15953_v0, %s15779_s23  ;;  %s18862_s23 = smov 110  }
  0x76   : > { %2103 = vrot.lane.b32.xlu0 %v15981_v5, %s18856_s24 }
  0x78   : > { %2107 = vrot.lane.b32.xlu1 %v15992_v7, %s18856_s24 }
  0x7a   : > { %2105 = vrot.lane.b32.xlu0 %v16000_v8, %s18856_s24 }
  0x7c   : > { %2433 = vrot.lane.b32.xlu1 %v15989_v6, %s18870_s15 }
  0x7e   : > { %2109 = vrot.lane.b32.xlu0 %v16008_v9, %s18856_s24  ;;  %s18860_s24 = smov 94  }
  0x80   : > { %2431 = vrot.lane.b32.xlu1 %v15970_v3, %s18870_s15 }
  0x82   : > { %2435 = vrot.lane.b32.xlu0 %v15967_v2, %s18870_s15 }
  0x84   : > { %2439 = vrot.lane.b32.xlu1 %v15981_v5, %s18870_s15 }
  0x86   : > { %2437 = vrot.lane.b32.xlu0 %v15978_v4, %s18870_s15 }
  0x88   : > { %2441 = vrot.lane.b32.xlu1 %v16000_v8, %s18870_s15 }
  0x8a   : > { %2429 = vrot.lane.b32.xlu0 %v15953_v0, %s18862_s23  ;;  %s18878_s23 = smov 92  }
  0x8c   : > { %2445 = vrot.lane.b32.xlu1 %v16008_v9, %s18870_s15 }
  0x8e   : > { %2443 = vrot.lane.b32.xlu0 %v15992_v7, %s18870_s15 }
  0x90   : > { %2771 = vrot.lane.b32.xlu1 %v15967_v2, %s18860_s24 }
  0x92   : > { %2769 = vrot.lane.b32.xlu0 %v15989_v6, %s18860_s24 }
  0x94   : > { %2773 = vrot.lane.b32.xlu1 %v15978_v4, %s18860_s24 }
  0x96   : > { %v446_v10 = vpop.permute.xlu1 %445  ;;  %2767 = vrot.lane.b32.xlu0 %v15970_v3, %s18860_s24 }
  0x98   : > { %2765 = vrot.lane.b32.xlu1 %v15953_v0, %s15783_s30  ;;  %v460_v11 = vpop.permute.xlu0 %459  ;;  %s18864_s30 = smov 93  }
  0x9a   : > { %v456_v12 = vpop.permute.xlu1 %455  ;;  %2775 = vrot.lane.b32.xlu0 %v15981_v5, %s18860_s24 }
  0x9c   : > { %2779 = vrot.lane.b32.xlu1 %v15992_v7, %s18860_s24  ;;  %v464_v13 = vpop.permute.xlu0 %463 }
  0x9e   : > { %v462_v14 = vpop.permute.xlu1 %461  ;;  %2777 = vrot.lane.b32.xlu0 %v16000_v8, %s18860_s24 }
  0x9f   : > { %v16112_v15 = vsel %vm471_vm0, %v462_v14, %v464_v13  ;;  %v16115_v16 = vsel %vm471_vm0, %v460_v11, %v462_v14 }
  0xa0   : > { %14394 = vmatprep.subr.msk.mxu1 %vm482_vm1, %v16112_v15  ;;  %3105 = vrot.lane.b32.xlu1 %v15989_v6, %s18864_s30  ;;  %v458_v18 = vpop.permute.xlu0 %457 }
  0xa1   : > { %14395 = vmatpush1.msk.msra.mxu1 %vm482_vm1, %v16115_v16  ;;  %v16127_v19 = vsel %vm471_vm0, %v458_v18, %v460_v11  ;;  %v472_v20 = vsel %vm471_vm0, %v456_v12, %v458_v18 }
  0xa2   : > { %14396 = vmatmul.mubr.msk.f32.vlgmr.msra.gmra.mxu1 %vm479_vm2, %v446_v10  ;;  %v468_v17 = vpop.permute.xlu1 %467  ;;  %14391 = vmatprep.subr.msk.mxu0 %vm482_vm1, %v16127_v19 }
  0xa3   : > { %776 = vmatprep.mubr.f32.mxu1 %v18892_v1  ;;  %2781 = vrot.lane.b32.xlu0 %v16008_v9, %s18860_s24  ;;  %s18866_s24 = smov 104  }
  0xa4   : > { %3103 = vrot.lane.b32.xlu1 %v15970_v3, %s18864_s30  ;;  %14392 = vmatpush1.msk.msra.mxu0 %vm482_vm1, %v472_v20  ;;  %v466_v22 = vpop.permute.xlu0 %465 }
  0xa5   : > { %14393 = vmatmul.mubr.msk.f32.vlgmr.msra.gmra.mxu0 %vm479_vm2, %v446_v10  ;;  %v16140_v23 = vsel %vm471_vm0, %v464_v13, %v466_v22  ;;  %v16143_v24 = vsel %vm471_vm0, %v466_v22, %v468_v17 }
  0xa6   : > { %v1090_v21 = vpop.permute.xlu1 %1089  ;;  %705 = vmatprep.mubr.f32.mxu0 %v18892_v1  ;;  %14397 = vmatprep.subr.msk.mxu0 %vm482_vm1, %v16143_v24 }
  0xa7   : > { %3107 = vrot.lane.b32.xlu0 %v15967_v2, %s18864_s30  ;;  %14398 = vmatpush1.msk.msra.mxu0 %vm482_vm1, %v16140_v23 }
  0xa8   : > { %3111 = vrot.lane.b32.xlu1 %v15981_v5, %s18864_s30  ;;  %v16155_v26 = vpop.permute.xlu0 %469  ;;  %14403 = vmatprep.subr.msk.mxu0 %vm482_vm1, %v15989_v6 }
  0xa9   : > { %14399 = vmatmul.mubr.msk.f32.vlgmr.msra.gmra.mxu0 %vm479_vm2, %v446_v10  ;;  %14400 = vmatprep.subr.msk.mxu1 %vm482_vm1, %v16155_v26  ;;  %v16163_v27 = vsel %vm471_vm0, %v468_v17, %v16155_v26 }
  0xaa   : > { %v1088_v25 = vpop.permute.xlu1 %1087  ;;  %14404 = vmatpush1.msk.msra.mxu0 %vm482_vm1, %v15970_v3  ;;  %14401 = vmatpush1.msk.msra.mxu1 %vm482_vm1, %v16163_v27 }
  0xab   : > { %3109 = vrot.lane.b32.xlu0 %v15978_v4, %s18864_s30  ;;  %14402 = vmatmul.mubr.msk.f32.vlgmr.msra.gmra.mxu1 %vm479_vm2, %v446_v10  ;;  %v1104_v33 = vsel %vm1103_vm3, %v1088_v25, %v1090_v21 }
  0xac   : > { %3113 = vrot.lane.b32.xlu1 %v16000_v8, %s18864_s30  ;;  %865 = vmatprep.mubr.f32.mxu0 %v18892_v1  ;;  %v1092_v29 = vpop.permute.xlu0 %1091 }
  0xad   : > { %14409 = vmatprep.subr.msk.mxu0 %vm482_vm1, %v16000_v8  ;;  %14405 = vmatmul.mubr.msk.f32.vlgmr.msra.gmra.mxu0 %vm479_vm2, %v15953_v0  ;;  %v16182_v30 = vsel %vm1103_vm3, %v1090_v21, %v1092_v29 }
  0xae   : > { %v1096_v28 = vpop.permute.xlu1 %1095  ;;  %14406 = vmatprep.subr.msk.mxu1 %vm482_vm1, %v15978_v4  ;;  %14410 = vmatpush1.msk.msra.mxu0 %vm482_vm1, %v15981_v5 }
  0xaf   : > { %3101 = vrot.lane.b32.xlu0 %v15953_v0, %s18866_s24  ;;  %14407 = vmatpush1.msk.msra.mxu1 %vm482_vm1, %v15967_v2  ;;  %s18874_s24 = smov 98  }
  0xb0   : > { %3117 = vrot.lane.b32.xlu1 %v16008_v9, %s18864_s30  ;;  %936 = vmatprep.mubr.f32.mxu1 %v18892_v1  ;;  %v1094_v32 = vpop.permute.xlu0 %1093 }
  0xb1   : > { %14415 = vmatprep.subr.msk.mxu0 %vm482_vm1, %v16182_v30  ;;  %14408 = vmatmul.mubr.msk.f32.vlgmr.msra.gmra.mxu1 %vm479_vm2, %v15953_v0  ;;  %v16204_v34 = vsel %vm1103_vm3, %v1094_v32, %v1096_v28  ;;  %v16210_v35 = vsel %vm1103_vm3, %v1092_v29, %v1094_v32 }
  0xb2   : > { %v1098_v31 = vpop.permute.xlu1 %1097  ;;  %1007 = vmatprep.mubr.f32.mxu0 %v18892_v1  ;;  %14412 = vmatprep.subr.msk.mxu1 %vm482_vm1, %v16008_v9 }
  0xb3   : > { %14411 = vmatmul.mubr.msk.f32.vlgmr.msra.gmra.mxu0 %vm479_vm2, %v15953_v0  ;;  %14413 = vmatpush1.msk.msra.mxu1 %vm482_vm1, %v15992_v7  ;;  %v16248_v42 = vsel %vm1103_vm3, %v1096_v28, %v1098_v31 }
  0xb4   : > { %14416 = vmatpush1.msk.msra.mxu0 %vm482_vm1, %v1104_v33  ;;  %3443 = vrot.lane.b32.xlu1 %v15967_v2, %s18878_s23  ;;  %v1086_v37 = vpop.permute.xlu0 %1085 }
  0xb5   : > { %3115 = vrot.lane.b32.xlu0 %v15992_v7, %s18864_s30  ;;  %1078 = vmatprep.mubr.f32.mxu1 %v18892_v1  ;;  %s15787_s30 = smov 101  }
  0xb6   : > { %v16216_v36 = vpop.permute.xlu1 %1101  ;;  %14418 = vmatprep.subr.msk.mxu1 %vm482_vm1, %v16204_v34  ;;  %14414 = vmatmul.mubr.msk.f32.vlgmr.msra.gmra.mxu1 %vm479_vm2, %v15953_v0 }
  0xb7   : > { %1193 = vmatprep.mubr.f32.mxu0 %v18892_v1  ;;  %14419 = vmatpush1.msk.msra.mxu1 %vm482_vm1, %v16210_v35 }
  0xb8   : > { %14417 = vmatmul.mubr.msk.f32.vlgmr.msra.gmra.mxu0 %vm479_vm2, %v1086_v37  ;;  %3445 = vrot.lane.b32.xlu1 %v15978_v4, %s18878_s23  ;;  %v1100_v39 = vpop.permute.xlu0 %1099 }
  0xb9   : > { %3441 = vrot.lane.b32.xlu0 %v15989_v6, %s18878_s23  ;;  %1264 = vmatprep.mubr.f32.mxu1 %v18892_v1  ;;  %v16234_v40 = vsel %vm1103_vm3, %v1100_v39, %v16216_v36  ;;  %v16239_v41 = vsel %vm1103_vm3, %v1098_v31, %v1100_v39 }
  0xba   : > { %v1428_v38 = vpop.permute.xlu1 %1427  ;;  %14424 = vmatprep.subr.msk.mxu1 %vm482_vm1, %v16216_v36  ;;  %14420 = vmatmul.mubr.msk.f32.vlgmr.msra.gmra.mxu1 %vm479_vm2, %v1086_v37 }
  0xbb   : > { %14421 = vmatprep.subr.msk.mxu0 %vm482_vm1, %v16239_v41  ;;  %14425 = vmatpush1.msk.msra.mxu1 %vm482_vm1, %v16234_v40 }
  0xbc   : > { %1406 = vmatprep.mubr.f32.mxu1 %v18892_v1  ;;  %3437 = vrot.lane.b32.xlu1 %v15953_v0, %s15787_s30  ;;  %v1426_v44 = vpop.permute.xlu0 %1425  ;;  %s18888_s30 = smov 64  }
  0xbd   : > { %3439 = vrot.lane.b32.xlu0 %v15970_v3, %s18878_s23  ;;  %14422 = vmatpush1.msk.msra.mxu0 %vm482_vm1, %v16248_v42  ;;  %v16257_v45 = vsel %vm1439_vm4, %v1426_v44, %v1428_v38 }
  0xbe   : > { %v1430_v43 = vpop.permute.xlu1 %1429  ;;  %1335 = vmatprep.mubr.f32.mxu0 %v18892_v1  ;;  %14426 = vmatmul.mubr.msk.f32.vlgmr.msra.gmra.mxu1 %vm479_vm2, %v1086_v37 }
  0xbf   : > { %14423 = vmatmul.mubr.msk.f32.vlgmr.msra.gmra.mxu0 %vm479_vm2, %v1086_v37  ;;  %14427 = vmatprep.subr.msk.mxu0 %vm482_vm1, %v16257_v45  ;;  %v16281_v52 = vsel %vm1439_vm4, %v1428_v38, %v1430_v43 }
  0xc0   : > { %1529 = vmatprep.mubr.f32.mxu0 %v18892_v1  ;;  %3451 = vrot.lane.b32.xlu1 %v15992_v7, %s18878_s23  ;;  %v1424_v47 = vpop.permute.xlu0 %1423 }
  0xc1   : > { %3447 = vrot.lane.b32.xlu0 %v15981_v5, %s18878_s23  ;;  %v1440_v48 = vsel %vm1439_vm4, %v1424_v47, %v1426_v44  ;;  %1600 = vmatprep.mubr.f32.mxu1 %v18892_v1 }
  0xc2   : > { %v1422_v46 = vpop.permute.xlu1 %1421  ;;  %14428 = vmatpush1.msk.msra.mxu0 %vm482_vm1, %v1440_v48 }
  0xc3   : > { %14429 = vmatmul.mubr.msk.f32.vlgmr.msra.gmra.mxu0 %vm479_vm2, %v1422_v46 }
  0xc4   : > { %3777 = vrot.lane.b32.xlu1 %v15989_v6, %s18888_s30  ;;  %v1432_v50 = vpop.permute.xlu0 %1431  ;;  %1671 = vmatprep.mubr.f32.mxu0 %v18892_v1 }
  0xc5   : > { %3449 = vrot.lane.b32.xlu0 %v16000_v8, %s18878_s23  ;;  %v16277_v51 = vsel %vm1439_vm4, %v1430_v43, %v1432_v50 }
  0xc6   : > { %v1436_v49 = vpop.permute.xlu1 %1435  ;;  %14430 = vmatprep.subr.msk.mxu1 %vm482_vm1, %v16277_v51 }
  0xc7   : > { %14431 = vmatpush1.msk.msra.mxu1 %vm482_vm1, %v16281_v52 }
  0xc8   : > { %3775 = vrot.lane.b32.xlu1 %v15970_v3, %s18888_s30  ;;  %v1434_v54 = vpop.permute.xlu0 %1433  ;;  %14432 = vmatmul.mubr.msk.f32.vlgmr.msra.gmra.mxu1 %vm479_vm2, %v1422_v46 }
  0xc9   : > { %3453 = vrot.lane.b32.xlu0 %v16008_v9, %s18878_s23  ;;  %v16293_v55 = vsel %vm1439_vm4, %v1432_v50, %v1434_v54  ;;  %v16296_v56 = vsel %vm1439_vm4, %v1434_v54, %v1436_v49  ;;  %1742 = vmatprep.mubr.f32.mxu1 %v18892_v1 }
  0xca   : > { %v1762_v53 = vpop.permute.xlu1 %1761  ;;  %14433 = vmatprep.subr.msk.mxu0 %vm482_vm1, %v16296_v56 }
  0xcb   : > { %14434 = vmatpush1.msk.msra.mxu0 %vm482_vm1, %v16293_v55 }
  0xcc   : > { %3783 = vrot.lane.b32.xlu1 %v15981_v5, %s18888_s30  ;;  %v16307_v58 = vpop.permute.xlu0 %1437  ;;  %14435 = vmatmul.mubr.msk.f32.vlgmr.msra.gmra.mxu0 %vm479_vm2, %v1422_v46 }
  0xcd   : > { %3779 = vrot.lane.b32.xlu0 %v15967_v2, %s18888_s30  ;;  %14436 = vmatprep.subr.msk.mxu1 %vm482_vm1, %v16307_v58  ;;  %v16314_v59 = vsel %vm1439_vm4, %v1436_v49, %v16307_v58 }
  0xce   : > { %v1760_v57 = vpop.permute.xlu1 %1759  ;;  %14437 = vmatpush1.msk.msra.mxu1 %vm482_vm1, %v16314_v59  ;;  %1865 = vmatprep.mubr.f32.mxu0 %v18892_v1 }
  0xcf   : > { %14438 = vmatmul.mubr.msk.f32.vlgmr.msra.gmra.mxu1 %vm479_vm2, %v1422_v46  ;;  %v1776_v63 = vsel %vm1775_vm5, %v1760_v57, %v1762_v53 }
  0xd0   : > { %3785 = vrot.lane.b32.xlu1 %v16000_v8, %s18888_s30  ;;  %v1764_v61 = vpop.permute.xlu0 %1763  ;;  %1936 = vmatprep.mubr.f32.mxu1 %v18892_v1 }
  0xd1   : > { %3781 = vrot.lane.b32.xlu0 %v15978_v4, %s18888_s30  ;;  %v16325_v62 = vsel %vm1775_vm5, %v1762_v53, %v1764_v61 }
  0xd2   : > { %v1768_v60 = vpop.permute.xlu1 %1767  ;;  %14439 = vmatprep.subr.msk.mxu0 %vm482_vm1, %v16325_v62 }
  0xd3   : > { %14440 = vmatpush1.msk.msra.mxu0 %vm482_vm1, %v1776_v63 }
  0xd4   : > { %3789 = vrot.lane.b32.xlu1 %v16008_v9, %s18888_s30  ;;  %v1766_v11 = vpop.permute.xlu0 %1765 }
  0xd5   : > { %3773 = vrot.lane.b32.xlu0 %v15953_v0, %s18874_s24  ;;  %v16337_v12 = vsel %vm1775_vm5, %v1764_v61, %v1766_v11  ;;  %v16340_v13 = vsel %vm1775_vm5, %v1766_v11, %v1768_v60  ;;  %s15793_s24 = smov 89  }
  0xd6   : > { %v1770_v10 = vpop.permute.xlu1 %1769  ;;  %14442 = vmatprep.subr.msk.mxu1 %vm482_vm1, %v16340_v13 }
  0xd7   : > { %14443 = vmatpush1.msk.msra.mxu1 %vm482_vm1, %v16337_v12  ;;  %v16370_v25 = vsel %vm1775_vm5, %v1768_v60, %v1770_v10 }
  0xd8   : > { %4115 = vrot.lane.b32.xlu1 %v15967_v2, %s18872_s22  ;;  %v1758_v17 = vpop.permute.xlu0 %1757 }
  0xd9   : > { %3787 = vrot.lane.b32.xlu0 %v15992_v7, %s18888_s30  ;;  %14441 = vmatmul.mubr.msk.f32.vlgmr.msra.gmra.mxu0 %vm479_vm2, %v1758_v17  ;;  %s18894_s30 = smov 77  }
  0xda   : > { %v16350_v14 = vpop.permute.xlu1 %1773  ;;  %14444 = vmatmul.mubr.msk.f32.vlgmr.msra.gmra.mxu1 %vm479_vm2, %v1758_v17  ;;  %2007 = vmatprep.mubr.f32.mxu0 %v18892_v1 }
  0xdb   : > { %14448 = vmatprep.subr.msk.mxu1 %vm482_vm1, %v16350_v14  ;;  %2078 = vmatprep.mubr.f32.mxu1 %v18892_v1 }
  0xdc   : > { %4117 = vrot.lane.b32.xlu1 %v15978_v4, %s18872_s22  ;;  %v1772_v20 = vpop.permute.xlu0 %1771 }
  0xdd   : > { %4113 = vrot.lane.b32.xlu0 %v15989_v6, %s18872_s22  ;;  %v16364_v21 = vsel %vm1775_vm5, %v1772_v20, %v16350_v14  ;;  %v16367_v22 = vsel %vm1775_vm5, %v1770_v10, %v1772_v20 }
  0xde   : > { %v2100_v18 = vpop.permute.xlu1 %2099  ;;  %14445 = vmatprep.subr.msk.mxu0 %vm482_vm1, %v16367_v22  ;;  %14449 = vmatpush1.msk.msra.mxu1 %vm482_vm1, %v16364_v21 }
  0xdf   : > { %14446 = vmatpush1.msk.msra.mxu0 %vm482_vm1, %v16370_v25  ;;  %14450 = vmatmul.mubr.msk.f32.vlgmr.msra.gmra.mxu1 %vm479_vm2, %v1758_v17 }
  0xe0   : > { %4109 = vrot.lane.b32.xlu1 %v15953_v0, %s18870_s15  ;;  %v2098_v29 = vpop.permute.xlu0 %2097  ;;  %14447 = vmatmul.mubr.msk.f32.vlgmr.msra.gmra.mxu0 %vm479_vm2, %v1758_v17  ;;  %s18890_s15 = smov 62  }
  0xe1   : > { %4111 = vrot.lane.b32.xlu0 %v15970_v3, %s18872_s22  ;;  %v2113_v31 = vsel %vm2111_vm6, %v2098_v29, %v2100_v18  ;;  %2272 = vmatprep.mubr.f32.mxu1 %v18892_v1 }
  0xe2   : > { %v2102_v28 = vpop.permute.xlu1 %2101  ;;  %14451 = vmatprep.subr.msk.mxu0 %vm482_vm1, %v2113_v31  ;;  %2201 = vmatprep.mubr.f32.mxu0 %v18892_v1 }
  0xe3   : > { %v2114_v44 = vsel %vm2111_vm6, %v2100_v18, %v2102_v28 }
  0xe4   : > { %4123 = vrot.lane.b32.xlu1 %v15992_v7, %s18872_s22  ;;  %v2096_v33 = vpop.permute.xlu0 %2095 }
  0xe5   : > { %4119 = vrot.lane.b32.xlu0 %v15981_v5, %s18872_s22  ;;  %v2112_v37 = vsel %vm2111_vm6, %v2096_v33, %v2098_v29 }
  0xe6   : > { %v2094_v32 = vpop.permute.xlu1 %2093  ;;  %14452 = vmatpush1.msk.msra.mxu0 %vm482_vm1, %v2112_v37 }
  0xe7   : > { %14453 = vmatmul.mubr.msk.f32.vlgmr.msra.gmra.mxu0 %vm479_vm2, %v2094_v32 }
  0xe8   : > { %4449 = vrot.lane.b32.xlu1 %v15989_v6, %s18890_s15  ;;  %v2104_v39 = vpop.permute.xlu0 %2103  ;;  %2343 = vmatprep.mubr.f32.mxu0 %v18892_v1 }
  0xe9   : > { %4121 = vrot.lane.b32.xlu0 %v16000_v8, %s18872_s22  ;;  %v2115_v43 = vsel %vm2111_vm6, %v2102_v28, %v2104_v39 }
  0xea   : > { %v2108_v38 = vpop.permute.xlu1 %2107  ;;  %14454 = vmatprep.subr.msk.mxu1 %vm482_vm1, %v2115_v43 }
  0xeb   : > { %14455 = vmatpush1.msk.msra.mxu1 %vm482_vm1, %v2114_v44 }
  0xec   : > { %4447 = vrot.lane.b32.xlu1 %v15970_v3, %s18890_s15  ;;  %v2106_v47 = vpop.permute.xlu0 %2105  ;;  %14456 = vmatmul.mubr.msk.f32.vlgmr.msra.gmra.mxu1 %vm479_vm2, %v2094_v32 }
  0xed   : > { %4125 = vrot.lane.b32.xlu0 %v16008_v9, %s18872_s22  ;;  %v2116_v48 = vsel %vm2111_vm6, %v2104_v39, %v2106_v47  ;;  %v2117_v49 = vsel %vm2111_vm6, %v2106_v47, %v2108_v38  ;;  %2414 = vmatprep.mubr.f32.mxu1 %v18892_v1  ;;  %s18876_s22 = smov 61  }
  0xee   : > { %v2434_v46 = vpop.permute.xlu1 %2433  ;;  %14457 = vmatprep.subr.msk.mxu0 %vm482_vm1, %v2117_v49 }
  0xef   : > { %14458 = vmatpush1.msk.msra.mxu0 %vm482_vm1, %v2116_v48 }
  0xf0   : > { %4455 = vrot.lane.b32.xlu1 %v15981_v5, %s18890_s15  ;;  %v2110_v53 = vpop.permute.xlu0 %2109  ;;  %14459 = vmatmul.mubr.msk.f32.vlgmr.msra.gmra.mxu0 %vm479_vm2, %v2094_v32 }
  0xf1   : > { %4451 = vrot.lane.b32.xlu0 %v15967_v2, %s18890_s15  ;;  %v2118_v54 = vsel %vm2111_vm6, %v2108_v38, %v2110_v53  ;;  %14460 = vmatprep.subr.msk.mxu1 %vm482_vm1, %v2110_v53 }
  0xf2   : > { %v2432_v50 = vpop.permute.xlu1 %2431  ;;  %14461 = vmatpush1.msk.msra.mxu1 %vm482_vm1, %v2118_v54  ;;  %2537 = vmatprep.mubr.f32.mxu0 %v18892_v1 }
  0xf3   : > { %14462 = vmatmul.mubr.msk.f32.vlgmr.msra.gmra.mxu1 %vm479_vm2, %v2094_v32  ;;  %v2448_v63 = vsel %vm2447_vm7, %v2432_v50, %v2434_v46 }
  0xf4   : > { %4457 = vrot.lane.b32.xlu1 %v16000_v8, %s18890_s15  ;;  %v2436_v60 = vpop.permute.xlu0 %2435  ;;  %2608 = vmatprep.mubr.f32.mxu1 %v18892_v1 }
  0xf5   : > { %4453 = vrot.lane.b32.xlu0 %v15978_v4, %s18890_s15  ;;  %v2449_v61 = vsel %vm2447_vm7, %v2434_v46, %v2436_v60 }
  0xf6   : > { %v2440_v57 = vpop.permute.xlu1 %2439  ;;  %14463 = vmatprep.subr.msk.mxu0 %vm482_vm1, %v2449_v61 }
  0xf7   : > { %14464 = vmatpush1.msk.msra.mxu0 %vm482_vm1, %v2448_v63 }
  0xf8   : > { %4461 = vrot.lane.b32.xlu1 %v16008_v9, %s18890_s15  ;;  %v2438_v11 = vpop.permute.xlu0 %2437 }
  0xf9   : > { %4445 = vrot.lane.b32.xlu0 %v15953_v0, %s18878_s23  ;;  %v2450_v17 = vsel %vm2447_vm7, %v2436_v60, %v2438_v11  ;;  %v2451_v18 = vsel %vm2447_vm7, %v2438_v11, %v2440_v57  ;;  %s18882_s23 = smov 32  }
  0xfa   : > { %v2442_v10 = vpop.permute.xlu1 %2441  ;;  %14466 = vmatprep.subr.msk.mxu1 %vm482_vm1, %v2451_v18 }
  0xfb   : > { %14467 = vmatpush1.msk.msra.mxu1 %vm482_vm1, %v2450_v17  ;;  %v2452_v37 = vsel %vm2447_vm7, %v2440_v57, %v2442_v10 }
  0xfc   : > { %4787 = vrot.lane.b32.xlu1 %v15967_v2, %s18876_s22  ;;  %v2430_v28 = vpop.permute.xlu0 %2429 }
  0xfd   : > { %4459 = vrot.lane.b32.xlu0 %v15992_v7, %s18890_s15  ;;  %14465 = vmatmul.mubr.msk.f32.vlgmr.msra.gmra.mxu0 %vm479_vm2, %v2430_v28  ;;  %s15802_s15 = smov 29  }
  0xfe   : > { %v2446_v20 = vpop.permute.xlu1 %2445  ;;  %14468 = vmatmul.mubr.msk.f32.vlgmr.msra.gmra.mxu1 %vm479_vm2, %v2430_v28  ;;  %2679 = vmatprep.mubr.f32.mxu0 %v18892_v1 }
  0xff   : > { %14472 = vmatprep.subr.msk.mxu1 %vm482_vm1, %v2446_v20  ;;  %2750 = vmatprep.mubr.f32.mxu1 %v18892_v1 }
 0x100   : > { %4789 = vrot.lane.b32.xlu1 %v15978_v4, %s18876_s22  ;;  %v2444_v31 = vpop.permute.xlu0 %2443 }
 0x101   : > { %4785 = vrot.lane.b32.xlu0 %v15989_v6, %s18876_s22  ;;  %v2454_v32 = vsel %vm2447_vm7, %v2444_v31, %v2446_v20  ;;  %v2453_v33 = vsel %vm2447_vm7, %v2442_v10, %v2444_v31 }
 0x102   : > { %v2772_v29 = vpop.permute.xlu1 %2771  ;;  %14469 = vmatprep.subr.msk.mxu0 %vm482_vm1, %v2453_v33  ;;  %14473 = vmatpush1.msk.msra.mxu1 %vm482_vm1, %v2454_v32 }
 0x103   : > { %14470 = vmatpush1.msk.msra.mxu0 %vm482_vm1, %v2452_v37  ;;  %14474 = vmatmul.mubr.msk.f32.vlgmr.msra.gmra.mxu1 %vm479_vm2, %v2430_v28 }
 0x104   : > { %4781 = vrot.lane.b32.xlu1 %v15953_v0, %s15793_s24  ;;  %v2770_v39 = vpop.permute.xlu0 %2769  ;;  %14471 = vmatmul.mubr.msk.f32.vlgmr.msra.gmra.mxu0 %vm479_vm2, %v2430_v28  ;;  %s18880_s24 = smov 60  }
 0x105   : > { %4783 = vrot.lane.b32.xlu0 %v15970_v3, %s18876_s22  ;;  %v2785_v43 = vsel %vm2783_vm8, %v2770_v39, %v2772_v29  ;;  %2944 = vmatprep.mubr.f32.mxu1 %v18892_v1 }
 0x106   : > { %v2774_v38 = vpop.permute.xlu1 %2773  ;;  %14475 = vmatprep.subr.msk.mxu0 %vm482_vm1, %v2785_v43  ;;  %2873 = vmatprep.mubr.f32.mxu0 %v18892_v1 }
 0x107   : > { %v2786_v53 = vsel %vm2783_vm8, %v2772_v29, %v2774_v38 }
 0x108   : > { %4795 = vrot.lane.b32.xlu1 %v15992_v7, %s18876_s22  ;;  %v2768_v46 = vpop.permute.xlu0 %2767 }
 0x109   : > { %4791 = vrot.lane.b32.xlu0 %v15981_v5, %s18876_s22  ;;  %v2784_v47 = vsel %vm2783_vm8, %v2768_v46, %v2770_v39 }
 0x10a   : > { %v2766_v44 = vpop.permute.xlu1 %2765  ;;  %14476 = vmatpush1.msk.msra.mxu0 %vm482_vm1, %v2784_v47 }
 0x10b   : > { %14477 = vmatmul.mubr.msk.f32.vlgmr.msra.gmra.mxu0 %vm479_vm2, %v2766_v44 }
 0x10c   : > { %5121 = vrot.lane.b32.xlu1 %v15989_v6, %s18880_s24  ;;  %v2776_v49 = vpop.permute.xlu0 %2775  ;;  %3015 = vmatprep.mubr.f32.mxu0 %v18892_v1 }
 0x10d   : > { %4793 = vrot.lane.b32.xlu0 %v16000_v8, %s18876_s22  ;;  %v2787_v50 = vsel %vm2783_vm8, %v2774_v38, %v2776_v49 }
 0x10e   : > { %v2780_v48 = vpop.permute.xlu1 %2779  ;;  %14478 = vmatprep.subr.msk.mxu1 %vm482_vm1, %v2787_v50 }
 0x10f   : > { %14479 = vmatpush1.msk.msra.mxu1 %vm482_vm1, %v2786_v53 }
 0x110   : > { %5119 = vrot.lane.b32.xlu1 %v15970_v3, %s18880_s24  ;;  %14480 = vmatmul.mubr.msk.f32.vlgmr.msra.gmra.mxu1 %vm479_vm2, %v2766_v44  ;;  %v2778_v57 = vpop.permute.xlu0 %2777 }
 0x111   : > { %4797 = vrot.lane.b32.xlu0 %v16008_v9, %s18876_s22  ;;  %v2788_v60 = vsel %vm2783_vm8, %v2776_v49, %v2778_v57  ;;  %v2789_v61 = vsel %vm2783_vm8, %v2778_v57, %v2780_v48  ;;  %3086 = vmatprep.mubr.f32.mxu1 %v18892_v1  ;;  %s18884_s22 = smov 86  }
 0x112   : > { %v3106_v54 = vpop.permute.xlu1 %3105  ;;  %14481 = vmatprep.subr.msk.mxu0 %vm482_vm1, %v2789_v61 }
 0x113   : > { %14482 = vmatpush1.msk.msra.mxu0 %vm482_vm1, %v2788_v60 }
 0x114   : > { %5127 = vrot.lane.b32.xlu1 %v15981_v5, %s18880_s24  ;;  %14483 = vmatmul.mubr.msk.f32.vlgmr.msra.gmra.mxu0 %vm479_vm2, %v2766_v44 }
 0x115   : > { %5123 = vrot.lane.b32.xlu0 %v15967_v2, %s18880_s24  ;;  %v2782_v10 = vpop.permute.xlu0 %2781  ;;  %3209 = vmatprep.mubr.f32.mxu0 %v18892_v1 }
 0x116   : > { %v3104_v63 = vpop.permute.xlu1 %3103  ;;  %v2790_v11 = vsel %vm2783_vm8, %v2780_v48, %v2782_v10  ;;  %14484 = vmatprep.subr.msk.mxu1 %vm482_vm1, %v2782_v10 }
 0x117   : > { %14485 = vmatpush1.msk.msra.mxu1 %vm482_vm1, %v2790_v11  ;;  %v3120_v28 = vsel %vm3119_vm9, %v3104_v63, %v3106_v54 }
 0x118   : > { %5129 = vrot.lane.b32.xlu1 %v16000_v8, %s18880_s24  ;;  %14486 = vmatmul.mubr.msk.f32.vlgmr.msra.gmra.mxu1 %vm479_vm2, %v2766_v44 }
 0x119   : > { %5125 = vrot.lane.b32.xlu0 %v15978_v4, %s18880_s24  ;;  %v3108_v18 = vpop.permute.xlu0 %3107  ;;  %3280 = vmatprep.mubr.f32.mxu1 %v18892_v1 }
 0x11a   : > { %v3112_v17 = vpop.permute.xlu1 %3111  ;;  %v3121_v20 = vsel %vm3119_vm9, %v3106_v54, %v3108_v18 }
 0x11b   : > { %14487 = vmatprep.subr.msk.mxu0 %vm482_vm1, %v3121_v20 }
 0x11c   : > { %5133 = vrot.lane.b32.xlu1 %v16008_v9, %s18880_s24  ;;  %14488 = vmatpush1.msk.msra.mxu0 %vm482_vm1, %v3120_v28 }
 0x11d   : > { %5117 = vrot.lane.b32.xlu0 %v15953_v0, %s18884_s22  ;;  %v3110_v31 = vpop.permute.xlu0 %3109  ;;  %s15800_s22 = smov 30  }
 0x11e   : > { %v3114_v29 = vpop.permute.xlu1 %3113  ;;  %v3122_v32 = vsel %vm3119_vm9, %v3108_v18, %v3110_v31  ;;  %v3123_v33 = vsel %vm3119_vm9, %v3110_v31, %v3112_v17 }
 0x11f   : > { %14490 = vmatprep.subr.msk.mxu1 %vm482_vm1, %v3123_v33  ;;  %v3124_v47 = vsel %vm3119_vm9, %v3112_v17, %v3114_v29 }
 0x120   : > { %5459 = vrot.lane.b32.xlu1 %v15967_v2, %s18882_s23  ;;  %14491 = vmatpush1.msk.msra.mxu1 %vm482_vm1, %v3122_v32 }
 0x121   : > { %5131 = vrot.lane.b32.xlu0 %v15992_v7, %s18880_s24  ;;  %v3102_v38 = vpop.permute.xlu0 %3101  ;;  %s15797_s24 = smov 83  }
 0x122   : > { %v3118_v37 = vpop.permute.xlu1 %3117  ;;  %14489 = vmatmul.mubr.msk.f32.vlgmr.msra.gmra.mxu0 %vm479_vm2, %v3102_v38  ;;  %14492 = vmatmul.mubr.msk.f32.vlgmr.msra.gmra.mxu1 %vm479_vm2, %v3102_v38 }
 0x123   : > { %14496 = vmatprep.subr.msk.mxu1 %vm482_vm1, %v3118_v37  ;;  %3422 = vmatprep.mubr.f32.mxu1 %v18892_v1 }
 0x124   : > { %5461 = vrot.lane.b32.xlu1 %v15978_v4, %s18882_s23  ;;  %3351 = vmatprep.mubr.f32.mxu0 %v18892_v1 }
 0x125   : > { %5457 = vrot.lane.b32.xlu0 %v15989_v6, %s18882_s23 }
 0x126   : > { %v3444_v39 = vpop.permute.xlu1 %3443 }
 0x127   : > { %v3116_v43 = vpop.permute.xlu0 %3115 }
 0x128   : > { %v3126_v44 = vsel %vm3119_vm9, %v3116_v43, %v3118_v37  ;;  %v3125_v46 = vsel %vm3119_vm9, %v3114_v29, %v3116_v43  ;;  %5453 = vrot.lane.b32.xlu1 %v15953_v0, %s15797_s24  ;;  %s15798_s24 = smov 31  }
 0x129   : > { %5455 = vrot.lane.b32.xlu0 %v15970_v3, %s18882_s23  ;;  %14493 = vmatprep.subr.msk.mxu0 %vm482_vm1, %v3125_v46  ;;  %v16613_v46 = vld [vmem:[%s15964_s16] sm:$0x77] }
 0x12a   : > { %14497 = vmatpush1.msk.msra.mxu1 %vm482_vm1, %v3126_v44  ;;  %14494 = vmatpush1.msk.msra.mxu0 %vm482_vm1, %v3124_v47  ;;  %v3446_v48 = vpop.permute.xlu1 %3445 }
 0x12b   : > { %14498 = vmatmul.mubr.msk.f32.vlgmr.msra.gmra.mxu1 %vm479_vm2, %v3102_v38  ;;  %v3442_v49 = vpop.permute.xlu0 %3441  ;;  %14495 = vmatmul.mubr.msk.f32.vlgmr.msra.gmra.mxu0 %vm479_vm2, %v3102_v38  ;;  %v3458_v10 = vsel %vm3455_vm10, %v3444_v39, %v3446_v48 }
 0x12c   : > { %v3457_v50 = vsel %vm3455_vm10, %v3442_v49, %v3444_v39  ;;  %3616 = vmatprep.mubr.f32.mxu1 %v18892_v1  ;;  %5467 = vrot.lane.b32.xlu1 %v15992_v7, %s18882_s23 }
 0x12d   : > { %5463 = vrot.lane.b32.xlu0 %v15981_v5, %s18882_s23  ;;  %14499 = vmatprep.subr.msk.mxu0 %vm482_vm1, %v3457_v50  ;;  %v16625_v50 = vld [vmem:[%s15964_s16 + $0x10] sm:$0x77] }
 0x12e   : > { %3545 = vmatprep.mubr.f32.mxu0 %v18892_v1  ;;  %v3438_v53 = vpop.permute.xlu1 %3437 }
 0x12f   : > { %v3440_v54 = vpop.permute.xlu0 %3439 }
 0x130   : > { %v3456_v57 = vsel %vm3455_vm10, %v3440_v54, %v3442_v49  ;;  %5794 = vrot.lane.b32.xlu1 %v15989_v6, %s15798_s24 }
 0x131   : > { %5465 = vrot.lane.b32.xlu0 %v16000_v8, %s18882_s23  ;;  %14500 = vmatpush1.msk.msra.mxu0 %vm482_vm1, %v3456_v57 }
 0x132   : > { %14501 = vmatmul.mubr.msk.f32.vlgmr.msra.gmra.mxu0 %vm479_vm2, %v3438_v53  ;;  %v3452_v60 = vpop.permute.xlu1 %3451 }
 0x133   : > { %v3448_v61 = vpop.permute.xlu0 %3447  ;;  %3687 = vmatprep.mubr.f32.mxu0 %v18892_v1 }
 0x134   : > { %v3459_v63 = vsel %vm3455_vm10, %v3446_v48, %v3448_v61  ;;  %5792 = vrot.lane.b32.xlu1 %v15970_v3, %s15798_s24 }
 0x135   : > { %5469 = vrot.lane.b32.xlu0 %v16008_v9, %s18882_s23  ;;  %14502 = vmatprep.subr.msk.mxu1 %vm482_vm1, %v3459_v63  ;;  %s18886_s23 = smov 80  }
 0x136   : > { %14503 = vmatpush1.msk.msra.mxu1 %vm482_vm1, %v3458_v10  ;;  %v3778_v11 = vpop.permute.xlu1 %3777 }
 0x137   : > { %v3450_v17 = vpop.permute.xlu0 %3449  ;;  %14504 = vmatmul.mubr.msk.f32.vlgmr.msra.gmra.mxu1 %vm479_vm2, %v3438_v53 }
 0x138   : > { %v3460_v18 = vsel %vm3455_vm10, %v3448_v61, %v3450_v17  ;;  %v3461_v20 = vsel %vm3455_vm10, %v3450_v17, %v3452_v60  ;;  %5800 = vrot.lane.b32.xlu1 %v15981_v5, %s15798_s24  ;;  %3758 = vmatprep.mubr.f32.mxu1 %v18892_v1  ;;  %v16654_v17 = vld [vmem:[%s18943_s1] sm:$0x3f]  ;;  %s19078_s1 = smov 98  }
 0x139   : > { %5796 = vrot.lane.b32.xlu0 %v15967_v2, %s15798_s24  ;;  %14505 = vmatprep.subr.msk.mxu0 %vm482_vm1, %v3461_v20 }
 0x13a   : > { %14506 = vmatpush1.msk.msra.mxu0 %vm482_vm1, %v3460_v18  ;;  %v3776_v3 = vpop.permute.xlu1 %3775 }
 0x13b   : > { %v3454_v28 = vpop.permute.xlu0 %3453  ;;  %14507 = vmatmul.mubr.msk.f32.vlgmr.msra.gmra.mxu0 %vm479_vm2, %v3438_v53  ;;  %v3792_v32 = vsel %vm18919_vm11, %v3776_v3, %v3778_v11 }
 0x13c   : > { %v3462_v29 = vsel %vm3455_vm10, %v3452_v60, %v3454_v28  ;;  %14508 = vmatprep.subr.msk.mxu1 %vm482_vm1, %v3454_v28  ;;  %5802 = vrot.lane.b32.xlu1 %v16000_v8, %s15798_s24  ;;  %v16665_v28 = vld [vmem:[%s15964_s16 + $0x18] sm:$0x77] }
 0x13d   : > { %5798 = vrot.lane.b32.xlu0 %v15978_v4, %s15798_s24  ;;  %14509 = vmatpush1.msk.msra.mxu1 %vm482_vm1, %v3462_v29 }
 0x13e   : > { %3881 = vmatprep.mubr.f32.mxu0 %v18892_v1  ;;  %14510 = vmatmul.mubr.msk.f32.vlgmr.msra.gmra.mxu1 %vm479_vm2, %v3438_v53  ;;  %v3784_v2 = vpop.permute.xlu1 %3783  ;;  %v16630_v53 = vld [vmem:[%s15964_s16 + $0x8] sm:$0x77] }
 0x13f   : > { %v3780_v5 = vpop.permute.xlu0 %3779  ;;  %3952 = vmatprep.mubr.f32.mxu1 %v18892_v1 }
 0x140   : > { %v3793_v31 = vsel %vm18919_vm11, %v3778_v11, %v3780_v5  ;;  %5806 = vrot.lane.b32.xlu1 %v16008_v9, %s15798_s24 }
 0x141   : > { %5789 = vrot.lane.b32.xlu0 %v15953_v0, %s18886_s23  ;;  %14511 = vmatprep.subr.msk.mxu0 %vm482_vm1, %v3793_v31  ;;  %v16607_v0 = vld [vmem:[%s15964_s16 + $0x20] sm:$0x7]  ;;  %s15804_s16 = smov 28   ;;  %s18906_s23 = smov 68  }
 0x142   : > { %14512 = vmatpush1.msk.msra.mxu0 %vm482_vm1, %v3792_v32  ;;  %v3786_v33 = vpop.permute.xlu1 %3785 }
 0x143   : > { %v3782_v37 = vpop.permute.xlu0 %3781  ;;  %v3796_v54 = vsel %vm18919_vm11, %v3784_v2, %v3786_v33 }
 0x144   : > { %v3794_v38 = vsel %vm18919_vm11, %v3780_v5, %v3782_v37  ;;  %v3795_v39 = vsel %vm18919_vm11, %v3782_v37, %v3784_v2  ;;  %6133 = vrot.lane.b32.xlu1 %v15989_v6, %s15800_s22 }
 0x145   : > { %5804 = vrot.lane.b32.xlu0 %v15992_v7, %s15798_s24  ;;  %14514 = vmatprep.subr.msk.mxu1 %vm482_vm1, %v3795_v39 }
 0x146   : > { %14515 = vmatpush1.msk.msra.mxu1 %vm482_vm1, %v3794_v38  ;;  %v3790_v43 = vpop.permute.xlu1 %3789 }
 0x147   : > { %v3774_v44 = vpop.permute.xlu0 %3773  ;;  %14520 = vmatprep.subr.msk.mxu1 %vm482_vm1, %v3790_v43 }
 0x148   : > { %14513 = vmatmul.mubr.msk.f32.vlgmr.msra.gmra.mxu0 %vm479_vm2, %v3774_v44  ;;  %14516 = vmatmul.mubr.msk.f32.vlgmr.msra.gmra.mxu1 %vm479_vm2, %v3774_v44 }
 0x149   : > { %6131 = vrot.lane.b32.xlu1 %v16613_v46, %s15800_s22  ;;  %5808 = vrot.lane.b32.xlu0 %v16607_v0, %s15798_s24  ;;  %s15807_s24 = smov 65  }
 0x14a   : > { %4094 = vmatprep.mubr.f32.mxu1 %v18892_v1  ;;  %v4116_v7 = vpop.permute.xlu1 %4115  ;;  %4023 = vmatprep.mubr.f32.mxu0 %v18892_v1 }
 0x14b   : > { %v3788_v47 = vpop.permute.xlu0 %3787 }
 0x14c   : > { %v3798_v48 = vsel %vm18919_vm11, %v3788_v47, %v3790_v43  ;;  %v3797_v49 = vsel %vm18919_vm11, %v3786_v33, %v3788_v47  ;;  %vm9398_vm11 = vcmask 1046400  }
 0x14d   : > { %6139 = vrot.lane.b32.xlu1 %v16625_v50, %s15800_s22  ;;  %6135 = vrot.lane.b32.xlu0 %v16630_v53, %s15800_s22 }
 0x14e   : > { %14517 = vmatprep.subr.msk.mxu0 %vm482_vm1, %v3797_v49  ;;  %14521 = vmatpush1.msk.msra.mxu1 %vm482_vm1, %v3798_v48  ;;  %v4118_v57 = vpop.permute.xlu1 %4117 }
 0x14f   : > { %14518 = vmatpush1.msk.msra.mxu0 %vm482_vm1, %v3796_v54  ;;  %14522 = vmatmul.mubr.msk.f32.vlgmr.msra.gmra.mxu1 %vm479_vm2, %v3774_v44  ;;  %v4114_v60 = vpop.permute.xlu0 %4113  ;;  %v4130_v29 = vsel %vm18918_vm12, %v4116_v7, %v4118_v57 }
 0x150   : > { %14519 = vmatmul.mubr.msk.f32.vlgmr.msra.gmra.mxu0 %vm479_vm2, %v3774_v44  ;;  %v4129_v61 = vsel %vm18918_vm12, %v4114_v60, %v4116_v7  ;;  %4288 = vmatprep.mubr.f32.mxu1 %v18892_v1 }
 0x151   : > { %6141 = vrot.lane.b32.xlu1 %v16000_v8, %s15800_s22  ;;  %6137 = vrot.lane.b32.xlu0 %v15978_v4, %s15800_s22 }
 0x152   : > { %14523 = vmatprep.subr.msk.mxu0 %vm482_vm1, %v4129_v61  ;;  %4217 = vmatprep.mubr.f32.mxu0 %v18892_v1  ;;  %v4110_v63 = vpop.permute.xlu1 %4109 }
 0x153   : > { %v4112_v10 = vpop.permute.xlu0 %4111 }
 0x154   : > { %v4128_v11 = vsel %vm18918_vm12, %v4112_v10, %v4114_v60 }
 0x155   : > { %6145 = vrot.lane.b32.xlu1 %v16008_v9, %s15800_s22  ;;  %6129 = vrot.lane.b32.xlu0 %v16654_v17, %s18894_s30  ;;  %s15808_s30 = smov 59  }
 0x156   : > { %14524 = vmatpush1.msk.msra.mxu0 %vm482_vm1, %v4128_v11  ;;  %v4124_v18 = vpop.permute.xlu1 %4123 }
 0x157   : > { %14525 = vmatmul.mubr.msk.f32.vlgmr.msra.gmra.mxu0 %vm479_vm2, %v4110_v63  ;;  %v4120_v20 = vpop.permute.xlu0 %4119 }
 0x158   : > { %v4131_v3 = vsel %vm18918_vm12, %v4118_v57, %v4120_v20  ;;  %4359 = vmatprep.mubr.f32.mxu0 %v18892_v1 }
 0x159   : > { %6472 = vrot.lane.b32.xlu1 %v15989_v6, %s15802_s15  ;;  %6143 = vrot.lane.b32.xlu0 %v16665_v28, %s15800_s22 }
 0x15a   : > { %14526 = vmatprep.subr.msk.mxu1 %vm482_vm1, %v4131_v3  ;;  %v4450_v2 = vpop.permute.xlu1 %4449 }
 0x15b   : > { %14527 = vmatpush1.msk.msra.mxu1 %vm482_vm1, %v4130_v29  ;;  %v4122_v5 = vpop.permute.xlu0 %4121 }
 0x15c   : > { %14528 = vmatmul.mubr.msk.f32.vlgmr.msra.gmra.mxu1 %vm479_vm2, %v4110_v63  ;;  %v4132_v31 = vsel %vm18918_vm12, %v4120_v20, %v4122_v5  ;;  %v4133_v32 = vsel %vm18918_vm12, %v4122_v5, %v4124_v18 }
 0x15d   : > { %6470 = vrot.lane.b32.xlu1 %v16613_v46, %s15802_s15  ;;  %6147 = vrot.lane.b32.xlu0 %v16607_v0, %s15800_s22  ;;  %s18901_s22 = smov 74  }
 0x15e   : > { %14529 = vmatprep.subr.msk.mxu0 %vm482_vm1, %v4133_v32  ;;  %4430 = vmatprep.mubr.f32.mxu1 %v18892_v1  ;;  %v4448_v33 = vpop.permute.xlu1 %4447 }
 0x15f   : > { %14530 = vmatpush1.msk.msra.mxu0 %vm482_vm1, %v4132_v31  ;;  %v4126_v37 = vpop.permute.xlu0 %4125  ;;  %v4464_v47 = vsel %vm18898_vm13, %v4448_v33, %v4450_v2 }
 0x160   : > { %14531 = vmatmul.mubr.msk.f32.vlgmr.msra.gmra.mxu0 %vm479_vm2, %v4110_v63  ;;  %v4134_v38 = vsel %vm18918_vm12, %v4124_v18, %v4126_v37  ;;  %14532 = vmatprep.subr.msk.mxu1 %vm482_vm1, %v4126_v37  ;;  %vm9318_vm12 = vcmask 915200  }
 0x161   : > { %6478 = vrot.lane.b32.xlu1 %v16625_v50, %s15802_s15  ;;  %6474 = vrot.lane.b32.xlu0 %v16630_v53, %s15802_s15 }
 0x162   : > { %14533 = vmatpush1.msk.msra.mxu1 %vm482_vm1, %v4134_v38  ;;  %4553 = vmatprep.mubr.f32.mxu0 %v18892_v1  ;;  %v4456_v39 = vpop.permute.xlu1 %4455  ;;  %v636_v48 = vpop.f32.mrf.mxu1 }
 0x163   : > { %14534 = vmatmul.mubr.msk.f32.vlgmr.msra.gmra.mxu1 %vm479_vm2, %v4110_v63  ;;  %v4452_v43 = vpop.permute.xlu0 %4451 }
 0x164   : > { %v4465_v44 = vsel %vm18898_vm13, %v4450_v2, %v4452_v43  ;;  %4624 = vmatprep.mubr.f32.mxu1 %v18892_v1  ;;  %v16709_v63 = vpop.f32.mrf.mxu1 }
 0x165   : > { %6480 = vrot.lane.b32.xlu1 %v16000_v8, %s15802_s15  ;;  %6476 = vrot.lane.b32.xlu0 %v15978_v4, %s15802_s15  ;;  %v565_v7 = vpop.f32.mrf.mxu0 }
 0x166   : > { %14535 = vmatprep.subr.msk.mxu0 %vm482_vm1, %v4465_v44  ;;  %v4458_v49 = vpop.permute.xlu1 %4457 }
 0x167   : > { %14536 = vmatpush1.msk.msra.mxu0 %vm482_vm1, %v4464_v47  ;;  %v4454_v54 = vpop.permute.xlu0 %4453  ;;  %v16702_v60 = vpop.f32.mrf.mxu0 }
 0x168   : > { %v4466_v57 = vsel %vm18898_vm13, %v4452_v43, %v4454_v54  ;;  %v4467_v61 = vsel %vm18898_vm13, %v4454_v54, %v4456_v39  ;;  %v4468_v43 = vsel %vm18898_vm13, %v4456_v39, %v4458_v49 }
 0x169   : > { %6484 = vrot.lane.b32.xlu1 %v16008_v9, %s15802_s15  ;;  %6468 = vrot.lane.b32.xlu0 %v16654_v17, %s18901_s22  ;;  %v707_v10 = vpop.f32.mrf.mxu0  ;;  %s19076_s22 = smov 110  }
 0x16a   : > { %14538 = vmatprep.subr.msk.mxu1 %vm482_vm1, %v4467_v61  ;;  %v4462_v11 = vpop.permute.xlu1 %4461 }
 0x16b   : > { %14539 = vmatpush1.msk.msra.mxu1 %vm482_vm1, %v4466_v57  ;;  %v4446_v18 = vpop.permute.xlu0 %4445  ;;  %v16715_v20 = vpop.f32.mrf.mxu0 }
 0x16c   : > { %14537 = vmatmul.mubr.msk.f32.vlgmr.msra.gmra.mxu0 %vm479_vm2, %v4446_v18  ;;  %14540 = vmatmul.mubr.msk.f32.vlgmr.msra.gmra.mxu1 %vm479_vm2, %v4446_v18  ;;  %18945 = vst [vmem:[#allocation13_spill] sm:$0xff] %v16715_v20  ;;  %v778_v3 = vpop.f32.mrf.mxu1 }
 0x16d   : > { %6811 = vrot.lane.b32.xlu1 %v15989_v6, %s15804_s16  ;;  %6482 = vrot.lane.b32.xlu0 %v16665_v28, %s15802_s15  ;;  %v867_v29 = vpop.f32.mrf.mxu0 }
 0x16e   : > { %v16721_v2 = vpop.f32.mrf.mxu1  ;;  %14544 = vmatprep.subr.msk.mxu1 %vm482_vm1, %v4462_v11  ;;  %4766 = vmatprep.mubr.f32.mxu1 %v18892_v1  ;;  %v4788_v5 = vpop.permute.xlu1 %4787  ;;  %v868_v31 = vadd.f32 %v867_v29, %v565_v7 }
 0x16f   : > { %18946 = vst [vmem:[#allocation14_spill] sm:$0xff] %v16721_v2  ;;  %v4460_v32 = vpop.permute.xlu0 %4459  ;;  %4695 = vmatprep.mubr.f32.mxu0 %v18892_v1  ;;  %v16727_v37 = vpop.f32.mrf.mxu0 }
 0x170   : > { %v4470_v33 = vsel %vm18898_vm13, %v4460_v32, %v4462_v11  ;;  %v4469_v38 = vsel %vm18898_vm13, %v4458_v49, %v4460_v32  ;;  %vm6149_vm13 = vcmask 244736  }
 0x171   : > { %6809 = vrot.lane.b32.xlu1 %v16613_v46, %s15804_s16  ;;  %6486 = vrot.lane.b32.xlu0 %v16607_v0, %s15802_s15  ;;  %v938_v44 = vpop.f32.mrf.mxu1  ;;  %s15805_s15 = smov 71  }
 0x172   : > { %14541 = vmatprep.subr.msk.mxu0 %vm482_vm1, %v4469_v38  ;;  %14545 = vmatpush1.msk.msra.mxu1 %vm482_vm1, %v4470_v33  ;;  %v939_v7 = vadd.f32 %v938_v44, %v636_v48  ;;  %v4790_v47 = vpop.permute.xlu1 %4789 }
 0x173   : > { %14542 = vmatpush1.msk.msra.mxu0 %vm482_vm1, %v4468_v43  ;;  %14546 = vmatmul.mubr.msk.f32.vlgmr.msra.gmra.mxu1 %vm479_vm2, %v4446_v18  ;;  %v1009_v54 = vpop.f32.mrf.mxu0  ;;  %v4786_v46 = vpop.permute.xlu0 %4785 }
 0x174   : > { %v1010_v57 = vadd.f32 %v1009_v54, %v707_v10  ;;  %14543 = vmatmul.mubr.msk.f32.vlgmr.msra.gmra.mxu0 %vm479_vm2, %v4446_v18  ;;  %v16740_v61 = vpop.f32.mrf.mxu1  ;;  %4960 = vmatprep.mubr.f32.mxu1 %v18892_v1  ;;  %v4801_v48 = vsel %vm18896_vm14, %v4786_v46, %v4788_v5 }
 0x175   : > { %6817 = vrot.lane.b32.xlu1 %v16625_v50, %s15804_s16  ;;  %v16745_v39 = vpop.f32.mrf.mxu0  ;;  %6813 = vrot.lane.b32.xlu0 %v16630_v53, %s15804_s16 }
 0x176   : > { %18947 = vst [vmem:[#allocation15_spill] sm:$0xff] %v16745_v39  ;;  %14547 = vmatprep.subr.msk.mxu0 %vm482_vm1, %v4801_v48  ;;  %4889 = vmatprep.mubr.f32.mxu0 %v18892_v1  ;;  %v1080_v49 = vpop.f32.mrf.mxu1  ;;  %v4782_v10 = vpop.permute.xlu1 %4781  ;;  %v4802_v48 = vsel %vm18896_vm14, %v4788_v5, %v4790_v47 }
 0x177   : > { %v1081_v11 = vadd.f32 %v1080_v49, %v778_v3  ;;  %v4784_v18 = vpop.permute.xlu0 %4783 }
 0x178   : > { %v1195_v29 = vpop.f32.mrf.mxu0  ;;  %v4800_v32 = vsel %vm18896_vm14, %v4784_v18, %v4786_v46  ;;  %v16753_v33 = vpop.f32.mrf.mxu1 }
 0x179   : > { %18948 = vst [vmem:[#allocation16_spill] sm:$0xff] %v16753_v33  ;;  %v1413_v38 = vadd.f32 %v1195_v29, %v868_v31  ;;  %6819 = vrot.lane.b32.xlu1 %v16000_v8, %s15804_s16  ;;  %6815 = vrot.lane.b32.xlu0 %v15978_v4, %s15804_s16 }
 0x17a   : > { %14548 = vmatpush1.msk.msra.mxu0 %vm482_vm1, %v4800_v32  ;;  %v1266_v43 = vpop.f32.mrf.mxu1  ;;  %v4796_v44 = vpop.permute.xlu1 %4795 }
 0x17b   : > { %14549 = vmatmul.mubr.msk.f32.vlgmr.msra.gmra.mxu0 %vm479_vm2, %v4782_v10  ;;  %v1415_v3 = vadd.f32 %v1266_v43, %v939_v7  ;;  %v4792_v54 = vpop.permute.xlu0 %4791  ;;  %v16769_v49 = vpop.f32.mrf.mxu0 }
 0x17c   : > { %5031 = vmatprep.mubr.f32.mxu0 %v18892_v1  ;;  %v16762_v46 = vpop.f32.mrf.mxu1  ;;  %v4803_v31 = vsel %vm18896_vm14, %v4790_v47, %v4792_v54 }
 0x17d   : > { %6823 = vrot.lane.b32.xlu1 %v16008_v9, %s15804_s16  ;;  %6807 = vrot.lane.b32.xlu0 %v16654_v17, %s15805_s15  ;;  %s18953_s15 = smov 62  }
 0x17e   : > { %14550 = vmatprep.subr.msk.mxu1 %vm482_vm1, %v4803_v31  ;;  %v1408_v7 = vpop.f32.mrf.mxu1  ;;  %v5122_v18 = vpop.permute.xlu1 %5121 }
 0x17f   : > { %14551 = vmatpush1.msk.msra.mxu1 %vm482_vm1, %v4802_v48  ;;  %v1419_v29 = vadd.f32 %v1408_v7, %v1081_v11  ;;  %v1337_v32 = vpop.f32.mrf.mxu0  ;;  %v4794_v43 = vpop.permute.xlu0 %4793  ;;  %v18950_v11 = vmov 0.0  }
 0x180   : > { %14552 = vmatmul.mubr.msk.f32.vlgmr.msra.gmra.mxu1 %vm479_vm2, %v4782_v10  ;;  %v1417_v1 = vadd.f32 %v1337_v32, %v1010_v57  ;;  %v4804_v33 = vsel %vm18896_vm14, %v4792_v54, %v4794_v43  ;;  %v4805_v5 = vsel %vm18896_vm14, %v4794_v43, %v4796_v44  ;;  %v16797_v32 = vpop.f32.mrf.mxu1 }
 0x181   : > { %7146 = vrot.lane.b32.xlu1 %v16654_v17, %s18906_s23  ;;  %6821 = vrot.lane.b32.xlu0 %v16665_v28, %s15804_s16  ;;  %v16780_v47 = vpop.f32.mrf.mxu0  ;;  %18951 = vst [vmem:[#allocation18_spill] sm:$0xff] %v16797_v32  ;;  %s19072_s23 = smov 64  }
 0x182   : > { %18949 = vst [vmem:[#allocation17_spill] sm:$0xff] %v16780_v47  ;;  %14553 = vmatprep.subr.msk.mxu0 %vm482_vm1, %v4805_v5  ;;  %5102 = vmatprep.mubr.f32.mxu1 %v18950_v11  ;;  %v5120_v57 = vpop.permute.xlu1 %5119 }
 0x183   : > { %14554 = vmatpush1.msk.msra.mxu0 %vm482_vm1, %v4804_v33  ;;  %v4798_v54 = vpop.permute.xlu0 %4797  ;;  %v1531_v31 = vpop.f32.mrf.mxu0  ;;  %v5136_v43 = vsel %vm18897_vm15, %v5120_v57, %v5122_v18 }
 0x184   : > { %14555 = vmatmul.mubr.msk.f32.vlgmr.msra.gmra.mxu0 %vm479_vm2, %v4782_v10  ;;  %v4806_v48 = vsel %vm18896_vm14, %v4796_v44, %v4798_v54  ;;  %14556 = vmatprep.subr.msk.mxu1 %vm482_vm1, %v4798_v54  ;;  %v16790_v7 = vadd.f32 %v1531_v31, %v1413_v38  ;;  %vm5471_vm14 = vcmask 261120  }
 0x185   : > { %7446 = vrot.lane.b32.xlu1 %v16607_v0, %s18908_s20  ;;  %6825 = vrot.lane.b32.xlu0 %v16607_v0, %s15804_s16  ;;  %v16807_v31 = vpop.f32.mrf.mxu0  ;;  %s18952_s16 = smov 125   ;;  %s19071_s20 = smov 127  }
 0x186   : > { %14557 = vmatpush1.msk.msra.mxu1 %vm482_vm1, %v4806_v48  ;;  %v5128_v33 = vpop.permute.xlu1 %5127  ;;  %5225 = vmatprep.mubr.f32.mxu0 %v18950_v11 }
 0x187   : > { %14558 = vmatmul.mubr.msk.f32.vlgmr.msra.gmra.mxu1 %vm479_vm2, %v4782_v10  ;;  %v5124_v44 = vpop.permute.xlu0 %5123 }
 0x188   : > { %5296 = vmatprep.mubr.f32.mxu1 %v18950_v11  ;;  %v5137_v38 = vsel %vm18897_vm15, %v5122_v18, %v5124_v44  ;;  %v1602_v5 = vpop.f32.mrf.mxu1 }
 0x189   : > { %7749 = vrot.lane.b32.xlu1 %v16607_v0, %s18899_s21  ;;  %14559 = vmatprep.subr.msk.mxu0 %vm482_vm1, %v5137_v38  ;;  %v1751_v54 = vadd.f32 %v1602_v5, %v1415_v3  ;;  %s19068_s21 = smov 96  }
 0x18a   : > { %7444 = vrot.lane.b32.xlu0 %v16654_v17, %s15807_s24  ;;  %14560 = vmatpush1.msk.msra.mxu0 %vm482_vm1, %v5136_v43  ;;  %v5130_v10 = vpop.permute.xlu1 %5129  ;;  %v16816_v38 = vpop.f32.mrf.mxu1  ;;  %s18955_s24 = smov 124  }
 0x18b   : > { %v5126_v48 = vpop.permute.xlu0 %5125  ;;  %18954 = vst [vmem:[#allocation19_spill] sm:$0xff] %v16816_v38  ;;  %v5140_v2 = vsel %vm18897_vm15, %v5128_v33, %v5130_v10 }
 0x18c   : > { %v5138_v32 = vsel %vm18897_vm15, %v5124_v44, %v5126_v48  ;;  %v5139_v18 = vsel %vm18897_vm15, %v5126_v48, %v5128_v33  ;;  %v1673_v57 = vpop.f32.mrf.mxu0 }
 0x18d   : > { %8052 = vrot.lane.b32.xlu1 %v16607_v0, %s18952_s16  ;;  %14562 = vmatprep.subr.msk.mxu1 %vm482_vm1, %v5139_v18  ;;  %v1753_v43 = vadd.f32 %v1673_v57, %v1417_v1 }
 0x18e   : > { %7747 = vrot.lane.b32.xlu0 %v16654_v17, %s18953_s15  ;;  %14563 = vmatpush1.msk.msra.mxu1 %vm482_vm1, %v5138_v32  ;;  %v5134_v3 = vpop.permute.xlu1 %5133 }
 0x18f   : > { %v5118_v5 = vpop.permute.xlu0 %5117  ;;  %14568 = vmatprep.subr.msk.mxu1 %vm482_vm1, %v5134_v3  ;;  %v1744_v44 = vpop.f32.mrf.mxu1 }
 0x190   : > { %14561 = vmatmul.mubr.msk.f32.vlgmr.msra.gmra.mxu0 %vm479_vm2, %v5118_v5  ;;  %14564 = vmatmul.mubr.msk.f32.vlgmr.msra.gmra.mxu1 %vm479_vm2, %v5118_v5  ;;  %v1755_v48 = vadd.f32 %v1744_v44, %v1419_v29  ;;  %v16832_v29 = vpop.f32.mrf.mxu0 }
 0x191   : > { %8355 = vrot.lane.b32.xlu1 %v16607_v0, %s18955_s24  ;;  %5438 = vmatprep.mubr.f32.mxu1 %v18950_v11  ;;  %18956 = vst [vmem:[#allocation20_spill] sm:$0xff] %v16832_v29  ;;  %v16836_v47 = vpop.f32.mrf.mxu1 }
 0x192   : > { %v5460_v18 = vpop.permute.xlu1 %5459  ;;  %5367 = vmatprep.mubr.f32.mxu0 %v18950_v11  ;;  %8050 = vrot.lane.b32.xlu0 %v16654_v17, %s15808_s30  ;;  %18957 = vst [vmem:[#allocation21_spill] sm:$0xff] %v16836_v47  ;;  %s18904_s30 = smov 56  }
 0x193   : > { %v5132_v1 = vpop.permute.xlu0 %5131 }
 0x194   : > { %v5142_v32 = vsel %vm18897_vm15, %v5132_v1, %v5134_v3  ;;  %v5141_v57 = vsel %vm18897_vm15, %v5130_v10, %v5132_v1  ;;  %vm5810_vm15 = vcmask 252928  }
 0x195   : > { %14565 = vmatprep.subr.msk.mxu0 %vm482_vm1, %v5141_v57  ;;  %14569 = vmatpush1.msk.msra.mxu1 %vm482_vm1, %v5142_v32 }
 0x196   : > { %14566 = vmatpush1.msk.msra.mxu0 %vm482_vm1, %v5140_v2  ;;  %14570 = vmatmul.mubr.msk.f32.vlgmr.msra.gmra.mxu1 %vm479_vm2, %v5118_v5  ;;  %v5462_v44 = vpop.permute.xlu1 %5461 }
 0x197   : > { %14567 = vmatmul.mubr.msk.f32.vlgmr.msra.gmra.mxu0 %vm479_vm2, %v5118_v5  ;;  %v5458_v3 = vpop.permute.xlu0 %5457  ;;  %5632 = vmatprep.mubr.f32.mxu1 %v18950_v11 }
 0x198   : > { %v5473_v33 = vsel %vm5471_vm14, %v5458_v3, %v5460_v18  ;;  %5561 = vmatprep.mubr.f32.mxu0 %v18950_v11  ;;  %8353 = vrot.lane.b32.xlu0 %v16654_v17, %s18904_s30  ;;  %s19075_s30 = smov 104  }
 0x199   : > { %14571 = vmatprep.subr.msk.mxu0 %vm482_vm1, %v5473_v33  ;;  %v1867_v2 = vpop.f32.mrf.mxu0 }
 0x19a   : > { %v1938_v10 = vpop.f32.mrf.mxu1  ;;  %v5454_v1 = vpop.permute.xlu1 %5453  ;;  %v2085_v32 = vadd.f32 %v1867_v2, %v16790_v7 }
 0x19b   : > { %v2087_v57 = vadd.f32 %v1938_v10, %v1751_v54  ;;  %v5456_v5 = vpop.permute.xlu0 %5455  ;;  %v16850_v38 = vpop.f32.mrf.mxu0  ;;  %v5474_v54 = vsel %vm5471_vm14, %v5460_v18, %v5462_v44 }
 0x19c   : > { %v5472_v47 = vsel %vm5471_vm14, %v5456_v5, %v5458_v3  ;;  %v16848_v29 = vpop.f32.mrf.mxu1  ;;  %18959 = vst [vmem:[#allocation23_spill] sm:$0xff] %v16850_v38 }
 0x19d   : > { %14572 = vmatpush1.msk.msra.mxu0 %vm482_vm1, %v5472_v47  ;;  %18958 = vst [vmem:[#allocation22_spill] sm:$0xff] %v16848_v29 }
 0x19e   : > { %14573 = vmatmul.mubr.msk.f32.vlgmr.msra.gmra.mxu0 %vm479_vm2, %v5454_v1  ;;  %v5468_v17 = vpop.permute.xlu1 %5467 }
 0x19f   : > { %v5464_v39 = vpop.permute.xlu0 %5463  ;;  %v2080_v33 = vpop.f32.mrf.mxu1  ;;  %5703 = vmatprep.mubr.f32.mxu0 %v18950_v11 }
 0x1a0   : > { %v5475_v20 = vsel %vm5471_vm14, %v5462_v44, %v5464_v39  ;;  %v2091_v7 = vadd.f32 %v2080_v33, %v1755_v48  ;;  %v2009_v3 = vpop.f32.mrf.mxu0 }
 0x1a1   : > { %14574 = vmatprep.subr.msk.mxu1 %vm482_vm1, %v5475_v20  ;;  %v2089_v2 = vadd.f32 %v2009_v3, %v1753_v43  ;;  %v16872_v44 = vpop.f32.mrf.mxu1 }
 0x1a2   : > { %14575 = vmatpush1.msk.msra.mxu1 %vm482_vm1, %v5474_v54  ;;  %v5795_v47 = vpop.permute.xlu1 %5794  ;;  %v16862_v38 = vpop.f32.mrf.mxu0  ;;  %18961 = vst [vmem:[#allocation25_spill] sm:$0xff] %v16872_v44 }
 0x1a3   : > { %14576 = vmatmul.mubr.msk.f32.vlgmr.msra.gmra.mxu1 %vm479_vm2, %v5454_v1  ;;  %v5466_v10 = vpop.permute.xlu0 %5465  ;;  %18960 = vst [vmem:[#allocation24_spill] sm:$0xff] %v16862_v38 }
 0x1a4   : > { %v5476_v5 = vsel %vm5471_vm14, %v5464_v39, %v5466_v10  ;;  %v5477_v29 = vsel %vm5471_vm14, %v5466_v10, %v5468_v17  ;;  %5774 = vmatprep.mubr.f32.mxu1 %v18950_v11 }
 0x1a5   : > { %14577 = vmatprep.subr.msk.mxu0 %vm482_vm1, %v5477_v29 }
 0x1a6   : > { %14578 = vmatpush1.msk.msra.mxu0 %vm482_vm1, %v5476_v5  ;;  %v5793_v20 = vpop.permute.xlu1 %5792 }
 0x1a7   : > { %14579 = vmatmul.mubr.msk.f32.vlgmr.msra.gmra.mxu0 %vm479_vm2, %v5454_v1  ;;  %v5470_v48 = vpop.permute.xlu0 %5469  ;;  %v2203_v43 = vpop.f32.mrf.mxu0 }
 0x1a8   : > { %v5478_v18 = vsel %vm5471_vm14, %v5468_v17, %v5470_v48  ;;  %14580 = vmatprep.subr.msk.mxu1 %vm482_vm1, %v5470_v48  ;;  %v2421_v39 = vadd.f32 %v2203_v43, %v2085_v32  ;;  %5901 = vmatprep.mubr.f32.mxu0 %v18950_v11  ;;  %v5811_v17 = vsel %vm5810_vm15, %v5793_v20, %v5795_v47 }
 0x1a9   : > { %14581 = vmatpush1.msk.msra.mxu1 %vm482_vm1, %v5478_v18  ;;  %v16879_v5 = vpop.f32.mrf.mxu0 }
 0x1aa   : > { %14582 = vmatmul.mubr.msk.f32.vlgmr.msra.gmra.mxu1 %vm479_vm2, %v5454_v1  ;;  %v5801_v29 = vpop.permute.xlu1 %5800  ;;  %18962 = vst [vmem:[#allocation26_spill] sm:$0xff] %v16879_v5 }
 0x1ab   : > { %v5797_v33 = vpop.permute.xlu0 %5796  ;;  %5972 = vmatprep.mubr.f32.mxu1 %v18950_v11 }
 0x1ac   : > { %v5812_v54 = vsel %vm5810_vm15, %v5795_v47, %v5797_v33  ;;  %v2274_v32 = vpop.f32.mrf.mxu1 }
 0x1ad   : > { %14583 = vmatprep.subr.msk.mxu0 %vm482_vm1, %v5812_v54  ;;  %v2423_v10 = vadd.f32 %v2274_v32, %v2087_v57 }
 0x1ae   : > { %14584 = vmatpush1.msk.msra.mxu0 %vm482_vm1, %v5811_v17  ;;  %v5803_v3 = vpop.permute.xlu1 %5802  ;;  %v16884_v44 = vpop.f32.mrf.mxu1 }
 0x1af   : > { %v5799_v1 = vpop.permute.xlu0 %5798  ;;  %18963 = vst [vmem:[#allocation27_spill] sm:$0xff] %v16884_v44 }
 0x1b0   : > { %v5813_v48 = vsel %vm5810_vm15, %v5797_v33, %v5799_v1  ;;  %v5814_v43 = vsel %vm5810_vm15, %v5799_v1, %v5801_v29  ;;  %v2345_v18 = vpop.f32.mrf.mxu0 }
 0x1b1   : > { %14586 = vmatprep.subr.msk.mxu1 %vm482_vm1, %v5814_v43  ;;  %v2425_v20 = vadd.f32 %v2345_v18, %v2089_v2  ;;  %v5815_v43 = vsel %vm5810_vm15, %v5801_v29, %v5803_v3 }
 0x1b2   : > { %14587 = vmatpush1.msk.msra.mxu1 %vm482_vm1, %v5813_v48  ;;  %v5807_v47 = vpop.permute.xlu1 %5806  ;;  %v16894_v2 = vpop.f32.mrf.mxu0 }
 0x1b3   : > { %v5790_v54 = vpop.permute.xlu0 %5789  ;;  %v2416_v57 = vpop.f32.mrf.mxu1  ;;  %18964 = vst [vmem:[#allocation28_spill] sm:$0xff] %v16894_v2 }
 0x1b4   : > { %14585 = vmatmul.mubr.msk.f32.vlgmr.msra.gmra.mxu0 %vm479_vm2, %v5790_v54  ;;  %14588 = vmatmul.mubr.msk.f32.vlgmr.msra.gmra.mxu1 %vm479_vm2, %v5790_v54  ;;  %v2427_v17 = vadd.f32 %v2416_v57, %v2091_v7 }
 0x1b5   : > { %6043 = vmatprep.mubr.f32.mxu0 %v18950_v11  ;;  %6114 = vmatprep.mubr.f32.mxu1 %v18950_v11  ;;  %v16897_v18 = vpop.f32.mrf.mxu1 }
 0x1b6   : > { %v6134_v33 = vpop.permute.xlu1 %6133  ;;  %18965 = vst [vmem:[#allocation29_spill] sm:$0xff] %v16897_v18 }
 0x1b7   : > { %v5805_v32 = vpop.permute.xlu0 %5804 }
 0x1b8   : > { %v5816_v1 = vsel %vm5810_vm15, %v5803_v3, %v5805_v32  ;;  %v5817_v38 = vsel %vm5810_vm15, %v5805_v32, %v5807_v47 }
 0x1b9   : > { %14589 = vmatprep.subr.msk.mxu0 %vm482_vm1, %v5816_v1 }
 0x1ba   : > { %14590 = vmatpush1.msk.msra.mxu0 %vm482_vm1, %v5815_v43 }
 0x1bb   : > { %v6132_v48 = vpop.permute.xlu1 %6131  ;;  %14591 = vmatmul.mubr.msk.f32.vlgmr.msra.gmra.mxu0 %vm479_vm2, %v5790_v54  ;;  %v5809_v7 = vpop.permute.xlu0 %5808 }
 0x1bc   : > { %v5818_v57 = vsel %vm5810_vm15, %v5807_v47, %v5809_v7  ;;  %6240 = vmatprep.mubr.f32.mxu0 %v18950_v11  ;;  %v6150_v7 = vsel %vm6149_vm13, %v6132_v48, %v6134_v33  ;;  %vm6488_vm15 = vcmask 236544  }
 0x1bd   : > { %14592 = vmatprep.subr.msk.mxu1 %vm482_vm1, %v5818_v57  ;;  %v2539_v29 = vpop.f32.mrf.mxu0 }
 0x1be   : > { %v2610_v3 = vpop.f32.mrf.mxu1  ;;  %14593 = vmatpush1.msk.msra.mxu1 %vm482_vm1, %v5817_v38  ;;  %v2757_v43 = vadd.f32 %v2539_v29, %v2421_v39 }
 0x1bf   : > { %v6140_v1 = vpop.permute.xlu1 %6139  ;;  %v2759_v2 = vadd.f32 %v2610_v3, %v2423_v10  ;;  %14594 = vmatmul.mubr.msk.f32.vlgmr.msra.gmra.mxu1 %vm479_vm2, %v5790_v54  ;;  %v6136_v18 = vpop.permute.xlu0 %6135 }
 0x1c0   : > { %v6151_v44 = vsel %vm6149_vm13, %v6134_v33, %v6136_v18  ;;  %6311 = vmatprep.mubr.f32.mxu1 %v18950_v11  ;;  %v16910_v47 = vpop.f32.mrf.mxu1  ;;  %v16912_v32 = vpop.f32.mrf.mxu0 }
 0x1c1   : > { %14595 = vmatprep.subr.msk.mxu0 %vm482_vm1, %v6151_v44  ;;  %18966 = vst [vmem:[#allocation30_spill] sm:$0xff] %v16910_v47  ;;  %18967 = vst [vmem:[#allocation31_spill] sm:$0xff] %v16912_v32 }
 0x1c2   : > { %14596 = vmatpush1.msk.msra.mxu0 %vm482_vm1, %v6150_v7 }
 0x1c3   : > { %v6142_v38 = vpop.permute.xlu1 %6141  ;;  %v6138_v39 = vpop.permute.xlu0 %6137 }
 0x1c4   : > { %v2752_v10 = vpop.f32.mrf.mxu1  ;;  %v6152_v54 = vsel %vm6149_vm13, %v6136_v18, %v6138_v39  ;;  %v6153_v57 = vsel %vm6149_vm13, %v6138_v39, %v6140_v1  ;;  %v2681_v3 = vpop.f32.mrf.mxu0 }
 0x1c5   : > { %v2763_v29 = vadd.f32 %v2752_v10, %v2427_v17  ;;  %14598 = vmatprep.subr.msk.mxu1 %vm482_vm1, %v6153_v57  ;;  %v2761_v33 = vadd.f32 %v2681_v3, %v2425_v20 }
 0x1c6   : > { %14599 = vmatpush1.msk.msra.mxu1 %vm482_vm1, %v6152_v54  ;;  %v16921_v7 = vpop.f32.mrf.mxu0  ;;  %v6154_v54 = vsel %vm6149_vm13, %v6140_v1, %v6142_v38  ;;  %v16929_v3 = vpop.f32.mrf.mxu1 }
 0x1c7   : > { %v6146_v44 = vpop.permute.xlu1 %6145  ;;  %v6130_v48 = vpop.permute.xlu0 %6129  ;;  %18968 = vst [vmem:[#allocation32_spill] sm:$0xff] %v16921_v7  ;;  %18969 = vst [vmem:[#allocation33_spill] sm:$0xff] %v16929_v3 }
 0x1c8   : > { %14597 = vmatmul.mubr.msk.f32.vlgmr.msra.gmra.mxu0 %vm479_vm2, %v6130_v48  ;;  %14600 = vmatmul.mubr.msk.f32.vlgmr.msra.gmra.mxu1 %vm479_vm2, %v6130_v48 }
 0x1c9   : > { %6382 = vmatprep.mubr.f32.mxu0 %v18950_v11  ;;  %6453 = vmatprep.mubr.f32.mxu1 %v18950_v11 }
 0x1cb   : > { %v6473_v18 = vpop.permute.xlu1 %6472  ;;  %v6144_v17 = vpop.permute.xlu0 %6143 }
 0x1cc   : > { %v2875_v39 = vpop.f32.mrf.mxu0  ;;  %v6155_v10 = vsel %vm6149_vm13, %v6142_v38, %v6144_v17  ;;  %v6156_v32 = vsel %vm6149_vm13, %v6144_v17, %v6146_v44 }
 0x1cd   : > { %v3093_v57 = vadd.f32 %v2875_v39, %v2757_v43  ;;  %14601 = vmatprep.subr.msk.mxu0 %vm482_vm1, %v6155_v10 }
 0x1ce   : > { %14602 = vmatpush1.msk.msra.mxu0 %vm482_vm1, %v6154_v54  ;;  %v16938_v10 = vpop.f32.mrf.mxu0 }
 0x1cf   : > { %v6471_v20 = vpop.permute.xlu1 %6470  ;;  %14603 = vmatmul.mubr.msk.f32.vlgmr.msra.gmra.mxu0 %vm479_vm2, %v6130_v48  ;;  %v6148_v7 = vpop.permute.xlu0 %6147  ;;  %18970 = vst [vmem:[#allocation34_spill] sm:$0xff] %v16938_v10 }
 0x1d0   : > { %v6157_v47 = vsel %vm6149_vm13, %v6146_v44, %v6148_v7  ;;  %6579 = vmatprep.mubr.f32.mxu0 %v18950_v11  ;;  %v2946_v1 = vpop.f32.mrf.mxu1  ;;  %v6489_v7 = vsel %vm6488_vm15, %v6471_v20, %v6473_v18  ;;  %vm6827_vm13 = vcmask 228352  }
 0x1d1   : > { %14604 = vmatprep.subr.msk.mxu1 %vm482_vm1, %v6157_v47  ;;  %v3095_v38 = vadd.f32 %v2946_v1, %v2759_v2 }
 0x1d2   : > { %14605 = vmatpush1.msk.msra.mxu1 %vm482_vm1, %v6156_v32  ;;  %v16945_v32 = vpop.f32.mrf.mxu1 }
 0x1d3   : > { %v6479_v43 = vpop.permute.xlu1 %6478  ;;  %14606 = vmatmul.mubr.msk.f32.vlgmr.msra.gmra.mxu1 %vm479_vm2, %v6130_v48  ;;  %v6475_v39 = vpop.permute.xlu0 %6474  ;;  %18971 = vst [vmem:[#allocation35_spill] sm:$0xff] %v16945_v32 }
 0x1d4   : > { %v6490_v54 = vsel %vm6488_vm15, %v6473_v18, %v6475_v39  ;;  %6650 = vmatprep.mubr.f32.mxu1 %v18950_v11  ;;  %v3017_v44 = vpop.f32.mrf.mxu0 }
 0x1d5   : > { %14607 = vmatprep.subr.msk.mxu0 %vm482_vm1, %v6490_v54  ;;  %v3097_v2 = vadd.f32 %v3017_v44, %v2761_v33  ;;  %v8656_v44 = vld [vmem:[%s18974_s2] sm:$0x3f]  ;;  %s19074_s2 = smov 116  }
 0x1d6   : > { %14608 = vmatpush1.msk.msra.mxu0 %vm482_vm1, %v6489_v7  ;;  %v16955_v54 = vpop.f32.mrf.mxu0 }
 0x1d7   : > { %v6481_v47 = vpop.permute.xlu1 %6480  ;;  %v6477_v17 = vpop.permute.xlu0 %6476  ;;  %18972 = vst [vmem:[#allocation36_spill] sm:$0xff] %v16955_v54 }
 0x1d8   : > { %v6491_v48 = vsel %vm6488_vm15, %v6475_v39, %v6477_v17  ;;  %v6492_v1 = vsel %vm6488_vm15, %v6477_v17, %v6479_v43  ;;  %v3088_v3 = vpop.f32.mrf.mxu1 }
 0x1d9   : > { %14610 = vmatprep.subr.msk.mxu1 %vm482_vm1, %v6492_v1  ;;  %v3099_v10 = vadd.f32 %v3088_v3, %v2763_v29  ;;  %v6493_v29 = vsel %vm6488_vm15, %v6479_v43, %v6481_v47  ;;  %v15810_v1 = vmov 0  }
 0x1da   : > { %14611 = vmatpush1.msk.msra.mxu1 %vm482_vm1, %v6491_v48  ;;  %v16959_v3 = vpop.f32.mrf.mxu1  ;;  %15697 = vset.pattern.permute.xlu0 %v15810_v1 }
 0x1db   : > { %v6485_v18 = vpop.permute.xlu1 %6484  ;;  %v6469_v20 = vpop.permute.xlu0 %6468  ;;  %18973 = vst [vmem:[#allocation37_spill] sm:$0xff] %v16959_v3  ;;  %8659 = vperm.xlu0 %15697, %v8656_v44   ;;  %15698 = vset.pattern.permute.xlu1 %v15810_v1 }
 0x1dc   : > { %14609 = vmatmul.mubr.msk.f32.vlgmr.msra.gmra.mxu0 %vm479_vm2, %v6469_v20  ;;  %14612 = vmatmul.mubr.msk.f32.vlgmr.msra.gmra.mxu1 %vm479_vm2, %v6469_v20 }
 0x1dd   : > { %6721 = vmatprep.mubr.f32.mxu0 %v18950_v11  ;;  %6792 = vmatprep.mubr.f32.mxu1 %v18950_v11 }
 0x1df   : > { %v6812_v33 = vpop.permute.xlu1 %6811  ;;  %v6483_v39 = vpop.permute.xlu0 %6482 }
 0x1e0   : > { %v6494_v7 = vsel %vm6488_vm15, %v6481_v47, %v6483_v39 }
 0x1e1   : > { %14613 = vmatprep.subr.msk.mxu0 %vm482_vm1, %v6494_v7  ;;  %v6495_v7 = vsel %vm6488_vm15, %v6483_v39, %v6485_v18 }
 0x1e2   : > { %14614 = vmatpush1.msk.msra.mxu0 %vm482_vm1, %v6493_v29  ;;  %v3211_v48 = vpop.f32.mrf.mxu0  ;;  %v3282_v5 = vpop.f32.mrf.mxu1 }
 0x1e3   : > { %v6810_v17 = vpop.permute.xlu1 %6809  ;;  %14615 = vmatmul.mubr.msk.f32.vlgmr.msra.gmra.mxu0 %vm479_vm2, %v6469_v20  ;;  %v6487_v54 = vpop.permute.xlu0 %6486  ;;  %v3429_v32 = vadd.f32 %v3211_v48, %v3093_v57  ;;  %v3431_v47 = vadd.f32 %v3282_v5, %v3095_v38 }
 0x1e4   : > { %v6496_v43 = vsel %vm6488_vm15, %v6485_v18, %v6487_v54  ;;  %6918 = vmatprep.mubr.f32.mxu0 %v18950_v11  ;;  %v16973_v3 = vpop.f32.mrf.mxu1  ;;  %v6828_v5 = vsel %vm6827_vm13, %v6810_v17, %v6812_v33  ;;  %v16978_v38 = vpop.f32.mrf.mxu0  ;;  %vm9000_vm15 = vcmask 390400  }
 0x1e5   : > { %14616 = vmatprep.subr.msk.mxu1 %vm482_vm1, %v6496_v43 }
 0x1e6   : > { %14617 = vmatpush1.msk.msra.mxu1 %vm482_vm1, %v6495_v7 }
 0x1e7   : > { %14618 = vmatmul.mubr.msk.f32.vlgmr.msra.gmra.mxu1 %vm479_vm2, %v6469_v20  ;;  %v6814_v29 = vpop.permute.xlu0 %6813  ;;  %v6818_v57 = vpop.permute.xlu1 %6817 }
 0x1e8   : > { %v6829_v44 = vsel %vm6827_vm13, %v6812_v33, %v6814_v29  ;;  %6989 = vmatprep.mubr.f32.mxu1 %v18950_v11 }
 0x1e9   : > { %14619 = vmatprep.subr.msk.mxu0 %vm482_vm1, %v6829_v44 }
 0x1ea   : > { %14620 = vmatpush1.msk.msra.mxu0 %vm482_vm1, %v6828_v5 }
 0x1eb   : > { %v3424_v18 = vpop.f32.mrf.mxu1  ;;  %v3353_v54 = vpop.f32.mrf.mxu0 }
 0x1ec   : > { %v3435_v39 = vadd.f32 %v3424_v18, %v3099_v10  ;;  %v6816_v20 = vpop.permute.xlu0 %6815  ;;  %v3433_v48 = vadd.f32 %v3353_v54, %v3097_v2  ;;  %v6820_v7 = vpop.permute.xlu1 %6819 }
 0x1ed   : > { %v6830_v1 = vsel %vm6827_vm13, %v6814_v29, %v6816_v20  ;;  %v6831_v43 = vsel %vm6827_vm13, %v6816_v20, %v6818_v57  ;;  %v16986_v17 = vpop.f32.mrf.mxu0  ;;  %v6832_v18 = vsel %vm6827_vm13, %v6818_v57, %v6820_v7  ;;  %v16994_v54 = vpop.f32.mrf.mxu1 }
 0x1ee   : > { %14622 = vmatprep.subr.msk.mxu1 %vm482_vm1, %v6831_v43 }
 0x1ef   : > { %14623 = vmatpush1.msk.msra.mxu1 %vm482_vm1, %v6830_v1 }
 0x1f0   : > { %v6808_v33 = vpop.permute.xlu0 %6807  ;;  %v6824_v44 = vpop.permute.xlu1 %6823 }
 0x1f1   : > { %14621 = vmatmul.mubr.msk.f32.vlgmr.msra.gmra.mxu0 %vm479_vm2, %v6808_v33  ;;  %14624 = vmatmul.mubr.msk.f32.vlgmr.msra.gmra.mxu1 %vm479_vm2, %v6808_v33 }
 0x1f2   : > { %7060 = vmatprep.mubr.f32.mxu0 %v18950_v11  ;;  %7131 = vmatprep.mubr.f32.mxu1 %v18950_v11  ;;  %v3547_v10 = vpop.f32.mrf.mxu0 }
 0x1f3   : > { %v3765_v2 = vadd.f32 %v3547_v10, %v3429_v32 }
 0x1f4   : > { %v6822_v29 = vpop.permute.xlu0 %6821  ;;  %v7147_v10 = vpop.permute.xlu1 %7146 }
 0x1f5   : > { %v6833_v5 = vsel %vm6827_vm13, %v6820_v7, %v6822_v29  ;;  %v6834_v57 = vsel %vm6827_vm13, %v6822_v29, %v6824_v44  ;;  %v17006_v7 = vpop.f32.mrf.mxu0 }
 0x1f6   : > { %14625 = vmatprep.subr.msk.mxu0 %vm482_vm1, %v6833_v5 }
 0x1f7   : > { %14626 = vmatpush1.msk.msra.mxu0 %vm482_vm1, %v6832_v18  ;;  %v3618_v20 = vpop.f32.mrf.mxu1 }
 0x1f8   : > { %14627 = vmatmul.mubr.msk.f32.vlgmr.msra.gmra.mxu0 %vm479_vm2, %v6808_v33  ;;  %v6826_v1 = vpop.permute.xlu0 %6825  ;;  %14631 = vmatprep.subr.msk.mxu0 %vm482_vm1, %v16630_v53  ;;  %v3767_v32 = vadd.f32 %v3618_v20, %v3431_v47 }
 0x1f9   : > { %v6835_v43 = vsel %vm6827_vm13, %v6824_v44, %v6826_v1  ;;  %14632 = vmatpush1.msk.msra.mxu0 %vm482_vm1, %v15989_v6  ;;  %7216 = vmatprep.mubr.f32.mxu0 %v18950_v11  ;;  %v17014_v6 = vpop.f32.mrf.mxu1  ;;  %vm9080_vm13 = vcmask 521600  }
 0x1fa   : > { %14628 = vmatprep.subr.msk.mxu1 %vm482_vm1, %v6835_v43  ;;  %14637 = vmatprep.subr.msk.mxu0 %vm482_vm1, %v16665_v28 }
 0x1fb   : > { %14629 = vmatpush1.msk.msra.mxu1 %vm482_vm1, %v6834_v57  ;;  %v3689_v53 = vpop.f32.mrf.mxu0 }
 0x1fc   : > { %14630 = vmatmul.mubr.msk.f32.vlgmr.msra.gmra.mxu1 %vm479_vm2, %v6808_v33  ;;  %14633 = vmatmul.mubr.msk.f32.vlgmr.msra.gmra.mxu0 %vm479_vm2, %v7147_v10  ;;  %v3769_v47 = vadd.f32 %v3689_v53, %v3433_v48 }
 0x1fd   : > { %14638 = vmatpush1.msk.msra.mxu0 %vm482_vm1, %v16000_v8  ;;  %14634 = vmatprep.subr.msk.mxu1 %vm482_vm1, %v16625_v50  ;;  %v7447_v8 = vpop.permute.xlu1 %7446 }
 0x1fe   : > { %14643 = vmatprep.subr.msk.mxu0 %vm482_vm1, %v16115_v16  ;;  %14635 = vmatpush1.msk.msra.mxu1 %vm482_vm1, %v15978_v4  ;;  %v3760_v28 = vpop.f32.mrf.mxu1  ;;  %v7445_v4 = vpop.permute.xlu0 %7444 }
 0x1ff   : > { %7287 = vmatprep.mubr.f32.mxu1 %v18950_v11  ;;  %7358 = vmatprep.mubr.f32.mxu0 %v18950_v11  ;;  %v3771_v33 = vadd.f32 %v3760_v28, %v3435_v39 }
 0x200   : > { %14640 = vmatprep.subr.msk.mxu1 %vm482_vm1, %v16607_v0  ;;  %14636 = vmatmul.mubr.msk.f32.vlgmr.msra.gmra.mxu1 %vm479_vm2, %v7147_v10  ;;  %v17046_v16 = vpop.f32.mrf.mxu1 }
 0x201   : > { %14639 = vmatmul.mubr.msk.f32.vlgmr.msra.gmra.mxu0 %vm479_vm2, %v7147_v10  ;;  %14641 = vmatpush1.msk.msra.mxu1 %vm482_vm1, %v16008_v9  ;;  %v17044_v9 = vpop.f32.mrf.mxu0 }
 0x202   : > { %14644 = vmatpush1.msk.msra.mxu0 %vm482_vm1, %v16127_v19  ;;  %14646 = vmatprep.subr.msk.mxu1 %vm482_vm1, %v16140_v23  ;;  %v7448_v19 = vsel %vm471_vm0, %v16155_v26, %v7447_v8  ;;  %v7750_v26 = vpop.permute.xlu1 %7749 }
 0x203   : > { %14649 = vmatprep.subr.msk.mxu0 %vm482_vm1, %v16163_v27  ;;  %7429 = vmatprep.mubr.f32.mxu1 %v18950_v11 }
 0x204   : > { %7519 = vmatprep.mubr.f32.mxu0 %v18950_v11  ;;  %14642 = vmatmul.mubr.msk.f32.vlgmr.msra.gmra.mxu1 %vm479_vm2, %v7147_v10 }
 0x205   : > { %14645 = vmatmul.mubr.msk.f32.vlgmr.msra.gmra.mxu0 %vm479_vm2, %v7445_v4  ;;  %14647 = vmatpush1.msk.msra.mxu1 %vm482_vm1, %v16112_v15 }
 0x206   : > { %14650 = vmatpush1.msk.msra.mxu0 %vm482_vm1, %v16143_v24  ;;  %7590 = vmatprep.mubr.f32.mxu1 %v18950_v11 }
 0x207   : > { %14655 = vmatprep.subr.msk.mxu0 %vm482_vm1, %v16210_v35  ;;  %7661 = vmatprep.mubr.f32.mxu0 %v18950_v11  ;;  %v7748_v35 = vpop.permute.xlu0 %7747 }
 0x208   : > { %14652 = vmatprep.subr.msk.mxu1 %vm482_vm1, %v7447_v8  ;;  %14648 = vmatmul.mubr.msk.f32.vlgmr.msra.gmra.mxu1 %vm479_vm2, %v7445_v4  ;;  %v3883_v15 = vpop.f32.mrf.mxu0  ;;  %v3954_v23 = vpop.f32.mrf.mxu1 }
 0x209   : > { %14651 = vmatmul.mubr.msk.f32.vlgmr.msra.gmra.mxu0 %vm479_vm2, %v7445_v4  ;;  %14653 = vmatpush1.msk.msra.mxu1 %vm482_vm1, %v7448_v19  ;;  %v4101_v24 = vadd.f32 %v3883_v15, %v3765_v2  ;;  %v4103_v27 = vadd.f32 %v3954_v23, %v3767_v32 }
 0x20a   : > { %14656 = vmatpush1.msk.msra.mxu0 %vm482_vm1, %v16182_v30  ;;  %14658 = vmatprep.subr.msk.mxu1 %vm482_vm1, %v16248_v42  ;;  %v17069_v0 = vpop.f32.mrf.mxu1  ;;  %v17074_v30 = vpop.f32.mrf.mxu0  ;;  %v7751_v42 = vsel %vm1103_vm3, %v16216_v36, %v7750_v26 }
 0x20b   : > { %14661 = vmatprep.subr.msk.mxu0 %vm482_vm1, %v16234_v40  ;;  %7732 = vmatprep.mubr.f32.mxu1 %v18950_v11  ;;  %v8053_v36 = vpop.permute.xlu1 %8052 }
 0x20c   : > { %7822 = vmatprep.mubr.f32.mxu0 %v18950_v11  ;;  %14654 = vmatmul.mubr.msk.f32.vlgmr.msra.gmra.mxu1 %vm479_vm2, %v7445_v4 }
 0x20d   : > { %14657 = vmatmul.mubr.msk.f32.vlgmr.msra.gmra.mxu0 %vm479_vm2, %v7748_v35  ;;  %14659 = vmatpush1.msk.msra.mxu1 %vm482_vm1, %v16204_v34 }
 0x20e   : > { %14662 = vmatpush1.msk.msra.mxu0 %vm482_vm1, %v16239_v41  ;;  %7893 = vmatprep.mubr.f32.mxu1 %v18950_v11  ;;  %v8051_v41 = vpop.permute.xlu0 %8050 }
 0x20f   : > { %14667 = vmatprep.subr.msk.mxu0 %vm482_vm1, %v16281_v52  ;;  %v4096_v40 = vpop.f32.mrf.mxu1  ;;  %7964 = vmatprep.mubr.f32.mxu0 %v18950_v11 }
 0x210   : > { %v4107_v50 = vadd.f32 %v4096_v40, %v3771_v33  ;;  %14664 = vmatprep.subr.msk.mxu1 %vm482_vm1, %v7750_v26  ;;  %v4025_v34 = vpop.f32.mrf.mxu0  ;;  %14660 = vmatmul.mubr.msk.f32.vlgmr.msra.gmra.mxu1 %vm479_vm2, %v7748_v35 }
 0x211   : > { %v4105_v39 = vadd.f32 %v4025_v34, %v3769_v47  ;;  %14663 = vmatmul.mubr.msk.f32.vlgmr.msra.gmra.mxu0 %vm479_vm2, %v7748_v35  ;;  %14665 = vmatpush1.msk.msra.mxu1 %vm482_vm1, %v7751_v42 }
 0x212   : > { %14668 = vmatpush1.msk.msra.mxu0 %vm482_vm1, %v16257_v45  ;;  %14670 = vmatprep.subr.msk.mxu1 %vm482_vm1, %v16293_v55  ;;  %v17097_v52 = vpop.f32.mrf.mxu0  ;;  %v8054_v55 = vsel %vm1439_vm4, %v16307_v58, %v8053_v36 }
 0x213   : > { %14673 = vmatprep.subr.msk.mxu0 %vm482_vm1, %v16314_v59  ;;  %8035 = vmatprep.mubr.f32.mxu1 %v18950_v11 }
 0x214   : > { %8125 = vmatprep.mubr.f32.mxu0 %v18950_v11  ;;  %14666 = vmatmul.mubr.msk.f32.vlgmr.msra.gmra.mxu1 %vm479_vm2, %v7748_v35 }
 0x215   : > { %14669 = vmatmul.mubr.msk.f32.vlgmr.msra.gmra.mxu0 %vm479_vm2, %v8051_v41  ;;  %14671 = vmatpush1.msk.msra.mxu1 %vm482_vm1, %v16277_v51  ;;  %v17114_v51 = vpop.f32.mrf.mxu1 }
 0x216   : > { %14674 = vmatpush1.msk.msra.mxu0 %vm482_vm1, %v16296_v56  ;;  %8196 = vmatprep.mubr.f32.mxu1 %v18950_v11  ;;  %v8354_v56 = vpop.permute.xlu0 %8353 }
 0x217   : > { %14679 = vmatprep.subr.msk.mxu0 %vm482_vm1, %v16337_v12  ;;  %v4219_v45 = vpop.f32.mrf.mxu0  ;;  %8267 = vmatprep.mubr.f32.mxu0 %v18950_v11  ;;  %v8356_v12 = vpop.permute.xlu1 %8355 }
 0x218   : > { %v4437_v59 = vadd.f32 %v4219_v45, %v4101_v24  ;;  %14676 = vmatprep.subr.msk.mxu1 %vm482_vm1, %v8053_v36  ;;  %14672 = vmatmul.mubr.msk.f32.vlgmr.msra.gmra.mxu1 %vm479_vm2, %v8051_v41 }
 0x219   : > { %14675 = vmatmul.mubr.msk.f32.vlgmr.msra.gmra.mxu0 %vm479_vm2, %v8051_v41  ;;  %14677 = vmatpush1.msk.msra.mxu1 %vm482_vm1, %v8054_v55 }
 0x21a   : > { %14680 = vmatpush1.msk.msra.mxu0 %vm482_vm1, %v16325_v62  ;;  %14682 = vmatprep.subr.msk.mxu1 %vm482_vm1, %v16370_v25  ;;  %v17128_v62 = vpop.f32.mrf.mxu0 }
 0x21b   : > { %14685 = vmatprep.subr.msk.mxu0 %vm482_vm1, %v16364_v21  ;;  %8338 = vmatprep.mubr.f32.mxu1 %v18950_v11  ;;  %v8357_v21 = vsel %vm1775_vm5, %v16350_v14, %v8356_v12 }
 0x21c   : > { %8428 = vmatprep.mubr.f32.mxu0 %v18950_v11  ;;  %v4290_v58 = vpop.f32.mrf.mxu1  ;;  %14678 = vmatmul.mubr.msk.f32.vlgmr.msra.gmra.mxu1 %vm479_vm2, %v8051_v41 }
 0x21d   : > { %v4439_v48 = vadd.f32 %v4290_v58, %v4103_v27  ;;  %14681 = vmatmul.mubr.msk.f32.vlgmr.msra.gmra.mxu0 %vm479_vm2, %v8354_v56  ;;  %14683 = vmatpush1.msk.msra.mxu1 %vm482_vm1, %v16340_v13 }
 0x21e   : > { %14686 = vmatpush1.msk.msra.mxu0 %vm482_vm1, %v16367_v22  ;;  %8499 = vmatprep.mubr.f32.mxu1 %v18950_v11  ;;  %v17139_v13 = vpop.f32.mrf.mxu1 }
 0x21f   : > { %8570 = vmatprep.mubr.f32.mxu0 %v18950_v11  ;;  %14688 = vmatprep.subr.msk.mxu1 %vm482_vm1, %v8356_v12 }
 0x220   : > { %v4361_v25 = vpop.f32.mrf.mxu0  ;;  %14684 = vmatmul.mubr.msk.f32.vlgmr.msra.gmra.mxu1 %vm479_vm2, %v8354_v56  ;;  %15129 = vmatprep.subr.mxu0 %v18950_v11 }
 0x221   : > { %v4441_v2 = vadd.f32 %v4361_v25, %v4105_v39  ;;  %14687 = vmatmul.mubr.msk.f32.vlgmr.msra.gmra.mxu0 %vm479_vm2, %v8354_v56  ;;  %14689 = vmatpush1.msk.msra.mxu1 %vm482_vm1, %v8357_v21  ;;  %vm18916_vm1 = vmmov 0  }
 0x222   : > { %8641 = vmatprep.mubr.f32.mxu1 %v18950_v11  ;;  %15140 = vmatprep.subr.mxu1 %v18950_v11  ;;  %v17146_v14 = vpop.f32.mrf.mxu0 }
 0x223   : > { %v4432_v22 = vpop.f32.mrf.mxu1 }
 0x224   : > { %v4443_v29 = vadd.f32 %v4432_v22, %v4107_v50  ;;  %14690 = vmatmul.mubr.msk.f32.vlgmr.msra.gmra.mxu1 %vm479_vm2, %v8354_v56  ;;  %vm8841_vm2 = vcmask 128000  }
 0x225   : > { %v17148_v44 = vpop.f32.mrf.mxu1 }
 0x22c   : > { %v4555_v5 = vpop.f32.mrf.mxu0  ;;  %v4626_v18 = vpop.f32.mrf.mxu1 }
 0x22d   : > { %v4773_v20 = vadd.f32 %v4555_v5, %v4437_v59  ;;  %v4775_v1 = vadd.f32 %v4626_v18, %v4439_v48 }
 0x22e   : > { %v17150_v32 = vpop.f32.mrf.mxu1  ;;  %v17152_v43 = vpop.f32.mrf.mxu0 }
 0x233   : > { %v4768_v57 = vpop.f32.mrf.mxu1 }
 0x234   : > { %v4779_v10 = vadd.f32 %v4768_v57, %v4443_v29  ;;  %v4697_v53 = vpop.f32.mrf.mxu0 }
 0x235   : > { %v4777_v47 = vadd.f32 %v4697_v53, %v4441_v2  ;;  %v17158_v8 = vpop.f32.mrf.mxu1 }
 0x236   : > { %v17154_v28 = vpop.f32.mrf.mxu0 }
 0x23b   : > { %v4891_v33 = vpop.f32.mrf.mxu0 }
 0x23c   : > { %v17156_v4 = vadd.f32 %v4891_v33, %v4773_v20 }
 0x23d   : > { %v17162_v23 = vpop.f32.mrf.mxu0 }
 0x240   : > { %v4962_v19 = vpop.f32.mrf.mxu1 }
 0x241   : > { %v17160_v15 = vadd.f32 %v4962_v19, %v4775_v1 }
 0x242   : > { %v17164_v27 = vpop.f32.mrf.mxu1 }
 0x244   : > { %v5033_v24 = vpop.f32.mrf.mxu0 }
 0x245   : > { %v17166_v35 = vadd.f32 %v5033_v24, %v4777_v47 }
 0x246   : > { %v17176_v36 = vpop.f32.mrf.mxu0 }
 0x247   : > { %v5104_v26 = vpop.f32.mrf.mxu1 }
 0x248   : > { %v5115_v40 = vadd.f32 %v5104_v26, %v4779_v10 }
 0x249   : > { %v17168_v42 = vpop.f32.mrf.mxu1 }
 0x24a   : > { %18975 = vst [vmem:[#allocation38_spill] sm:$0xff] %v17168_v42 }
 0x250   : > { %v17170_v50 = vpop.f32.mrf.mxu1  ;;  %v17178_v45 = vpop.f32.mrf.mxu0 }
 0x252   : > { %v17172_v34 = vpop.f32.mrf.mxu1  ;;  %v17180_v55 = vpop.f32.mrf.mxu0 }
 0x256   : > { %v5440_v39 = vpop.f32.mrf.mxu1 }
 0x257   : > { %v17174_v41 = vadd.f32 %v5440_v39, %v5115_v40  ;;  %v17182_v59 = vpop.f32.mrf.mxu0 }
 0x258   : > { %v17188_v12 = vpop.f32.mrf.mxu1 }
 0x259   : > { %18976 = vst [vmem:[#allocation39_spill] sm:$0xff] %v17174_v41  ;;  %v17184_v56 = vpop.f32.mrf.mxu0  ;;  %18977 = vst [vmem:[#allocation40_spill] sm:$0xff] %v17188_v12 }
 0x25e   : > { %v17186_v58 = vpop.f32.mrf.mxu0 }
 0x260   : > { %v17190_v48 = vpop.f32.mrf.mxu0 }
 0x263   : > { %v17192_v21 = vpop.f32.mrf.mxu1 }
 0x265   : > { %v17196_v2 = vpop.f32.mrf.mxu1 }
 0x267   : > { %v17194_v25 = vpop.f32.mrf.mxu0 }
 0x269   : > { %v17198_v22 = vpop.f32.mrf.mxu0 }
 0x26a   : > { %18978 = vst [vmem:[#allocation41_spill] sm:$0xff] %v17198_v22  ;;  %v17200_v29 = vpop.f32.mrf.mxu1 }
 0x26b   : > { %18979 = vst [vmem:[#allocation42_spill] sm:$0xff] %v17200_v29  ;;  %v19005_v29 = vld [vmem:[#allocation15_spill] sm:$0xff] }
 0x26c   : > { %v17204_v18 = vpop.f32.mrf.mxu1 }
 0x26d   : > { %18980 = vst [vmem:[#allocation43_spill] sm:$0xff] %v17204_v18 }
 0x274   : > { %v17202_v5 = vpop.f32.mrf.mxu0  ;;  %v17206_v20 = vpop.f32.mrf.mxu1 }
 0x276   : > { %v17208_v1 = vpop.f32.mrf.mxu0  ;;  %v17212_v10 = vpop.f32.mrf.mxu1 }
 0x277   : > { %18982 = vst [vmem:[#allocation45_spill] sm:$0xff] %v17212_v10 }
 0x27b   : > { %v17210_v57 = vpop.f32.mrf.mxu0 }
 0x27c   : > { %18981 = vst [vmem:[#allocation44_spill] sm:$0xff] %v17210_v57 }
 0x27d   : > { %v17214_v53 = vpop.f32.mrf.mxu0 }
 0x27e   : > { %18983 = vst [vmem:[#allocation46_spill] sm:$0xff] %v17214_v53 }
 0x27f   : > { %v17216_v47 = vpop.f32.mrf.mxu1 }
 0x280   : > { %18984 = vst [vmem:[#allocation47_spill] sm:$0xff] %v17216_v47 }
 0x281   : > { %v17220_v19 = vpop.f32.mrf.mxu1 }
 0x282   : > { %18985 = vst [vmem:[#allocation48_spill] sm:$0xff] %v17220_v19 }
 0x288   : > { %v17218_v33 = vpop.f32.mrf.mxu0  ;;  %v17222_v24 = vpop.f32.mrf.mxu1 }
 0x289   : > { %18986 = vst [vmem:[#allocation49_spill] sm:$0xff] %v17222_v24 }
 0x28a   : > { %v17224_v26 = vpop.f32.mrf.mxu0  ;;  %v17228_v39 = vpop.f32.mrf.mxu1 }
 0x28b   : > { %18987 = vst [vmem:[#allocation50_spill] sm:$0xff] %v17224_v26  ;;  %18989 = vst [vmem:[#allocation52_spill] sm:$0xff] %v17228_v39 }
 0x28f   : > { %v17226_v40 = vpop.f32.mrf.mxu0 }
 0x290   : > { %18988 = vst [vmem:[#allocation51_spill] sm:$0xff] %v17226_v40 }
 0x291   : > { %v17230_v11 = vpop.f32.mrf.mxu0 }
 0x292   : > { %18990 = vst [vmem:[#allocation53_spill] sm:$0xff] %v17230_v11  ;;  %v870_v11 = vadd.f32 %v16727_v37, %v16702_v60  ;;  %v19006_v37 = vld [vmem:[#allocation23_spill] sm:$0xff] }
 0x293   : > { %v17232_v18 = vpop.f32.mrf.mxu1 }
 0x294   : > { %18991 = vst [vmem:[#allocation54_spill] sm:$0xff] %v17232_v18  ;;  %v1414_v39 = vadd.f32 %v16769_v49, %v870_v11  ;;  %v19008_v49 = vld [vmem:[#allocation19_spill] sm:$0xff] }
 0x295   : > { %v17236_v53 = vpop.f32.mrf.mxu1 }
 0x296   : > { %18993 = vst [vmem:[#allocation56_spill] sm:$0xff] %v17236_v53 }
 0x29c   : > { %v17234_v12 = vpop.f32.mrf.mxu0  ;;  %v17238_v47 = vpop.f32.mrf.mxu1 }
 0x29d   : > { %18992 = vst [vmem:[#allocation55_spill] sm:$0xff] %v17234_v12  ;;  %18994 = vst [vmem:[#allocation57_spill] sm:$0xff] %v17238_v47  ;;  %v941_v47 = vadd.f32 %v16740_v61, %v16709_v63  ;;  %v19010_v63 = vld [vmem:[#allocation26_spill] sm:$0xff] }
 0x29e   : > { %v17240_v22 = vpop.f32.mrf.mxu0  ;;  %v17244_v24 = vpop.f32.mrf.mxu1 }
 0x29f   : > { %18995 = vst [vmem:[#allocation58_spill] sm:$0xff] %v17240_v22  ;;  %18997 = vst [vmem:[#allocation60_spill] sm:$0xff] %v17244_v24 }
 0x2a3   : > { %v17242_v19 = vpop.f32.mrf.mxu0 }
 0x2a4   : > { %18996 = vst [vmem:[#allocation59_spill] sm:$0xff] %v17242_v19  ;;  %v1750_v19 = vadd.f32 %v16807_v31, %v1414_v39 }
 0x2a5   : > { %v17246_v10 = vpop.f32.mrf.mxu0 }
 0x2a6   : > { %18998 = vst [vmem:[#allocation61_spill] sm:$0xff] %v17246_v10  ;;  %v1416_v10 = vadd.f32 %v16762_v46, %v941_v47  ;;  %v19015_v47 = vld [vmem:[#allocation22_spill] sm:$0xff] }
 0x2a7   : > { %v17248_v40 = vpop.f32.mrf.mxu1 }
 0x2a8   : > { %18999 = vst [vmem:[#allocation62_spill] sm:$0xff] %v17248_v40  ;;  %v19004_v40 = vld [vmem:[#allocation13_spill] sm:$0xff]  ;;  %v1752_v11 = vadd.f32 %v19008_v49, %v1416_v10 }
 0x2a9   : > { %v17255_v53 = vpop.f32.mrf.mxu1  ;;  %v1012_v60 = vadd.f32 %v19005_v29, %v19004_v40  ;;  %v19016_v29 = vld [vmem:[#allocation20_spill] sm:$0xff] }
 0x2aa   : > { %19001 = vst [vmem:[#allocation64_spill] sm:$0xff] %v17255_v53  ;;  %v19009_v53 = vld [vmem:[#allocation17_spill] sm:$0xff]  ;;  %v2088_v12 = vadd.f32 %v19015_v47, %v1752_v11  ;;  %v19025_v11 = vld [vmem:[#allocation30_spill] sm:$0xff]  ;;  %v19026_v47 = vld [vmem:[#allocation28_spill] sm:$0xff] }
 0x2ab   : > { %v1418_v42 = vadd.f32 %v19009_v53, %v1012_v60  ;;  %v19019_v53 = vld [vmem:[#allocation18_spill] sm:$0xff] }
 0x2ad   : > { %v1754_v40 = vadd.f32 %v19016_v29, %v1418_v42 }
 0x2b1   : > { %v17252_v18 = vpop.f32.mrf.mxu0  ;;  %v17260_v22 = vpop.f32.mrf.mxu1 }
 0x2b2   : > { %19000 = vst [vmem:[#allocation63_spill] sm:$0xff] %v17252_v18  ;;  %19002 = vst [vmem:[#allocation65_spill] sm:$0xff] %v17260_v22  ;;  %v2086_v18 = vadd.f32 %v19006_v37, %v1750_v19  ;;  %v19013_v22 = vld [vmem:[#allocation14_spill] sm:$0xff]  ;;  %v19017_v19 = vld [vmem:[#allocation31_spill] sm:$0xff] }
 0x2b3   : > { %v17262_v24 = vpop.f32.mrf.mxu0  ;;  %v17273_v31 = vpop.f32.mrf.mxu1 }
 0x2b4   : > { %19003 = vst [vmem:[#allocation66_spill] sm:$0xff] %v17262_v24  ;;  %v2422_v61 = vadd.f32 %v19010_v63, %v2086_v18  ;;  %19011 = vst [vmem:[#allocation15_spill] sm:$0xff] %v17273_v31  ;;  %v19014_v24 = vld [vmem:[#allocation16_spill] sm:$0xff]  ;;  %v19020_v18 = vld [vmem:[#allocation27_spill] sm:$0xff] }
 0x2b5   : > { %v1083_v46 = vadd.f32 %v19014_v24, %v19013_v22  ;;  %v2424_v49 = vadd.f32 %v19020_v18, %v2088_v12  ;;  %v19021_v63 = vld [vmem:[#allocation24_spill] sm:$0xff]  ;;  %v19024_v24 = vld [vmem:[#allocation21_spill] sm:$0xff] }
 0x2b6   : > { %v2758_v37 = vadd.f32 %v19017_v19, %v2422_v61  ;;  %v2090_v31 = vadd.f32 %v19021_v63, %v1754_v40 }
 0x2b7   : > { %v1420_v60 = vadd.f32 %v19019_v53, %v1083_v46  ;;  %v2760_v61 = vadd.f32 %v19025_v11, %v2424_v49  ;;  %v19027_v46 = vld [vmem:[#allocation25_spill] sm:$0xff]  ;;  %v19028_v53 = vld [vmem:[#allocation35_spill] sm:$0xff] }
 0x2b8   : > { %v17268_v41 = vpop.f32.mrf.mxu0  ;;  %v2426_v29 = vadd.f32 %v19026_v47, %v2090_v31 }
 0x2b9   : > { %19007 = vst [vmem:[#allocation13_spill] sm:$0xff] %v17268_v41  ;;  %v1756_v42 = vadd.f32 %v19024_v24, %v1420_v60  ;;  %v3096_v40 = vadd.f32 %v19028_v53, %v2760_v61  ;;  %v19030_v60 = vld [vmem:[#allocation29_spill] sm:$0xff] }
 0x2ba   : > { %v17275_v39 = vpop.f32.mrf.mxu0  ;;  %v19032_v61 = vld [vmem:[#allocation33_spill] sm:$0xff] }
 0x2bb   : > { %19012 = vst [vmem:[#allocation23_spill] sm:$0xff] %v17275_v39  ;;  %v19022_v39 = vld [vmem:[#allocation34_spill] sm:$0xff]  ;;  %v2092_v12 = vadd.f32 %v19027_v46, %v1756_v42  ;;  %v3432_v31 = vadd.f32 %v16973_v3, %v3096_v40  ;;  %v19033_v3 = vld [vmem:[#allocation37_spill] sm:$0xff] }
 0x2bc   : > { %v17282_v41 = vpop.f32.mrf.mxu1  ;;  %v17284_v10 = vpop.f32.mrf.mxu0  ;;  %v3094_v26 = vadd.f32 %v19022_v39, %v2758_v37  ;;  %v19029_v39 = vld [vmem:[#allocation32_spill] sm:$0xff] }
 0x2bd   : > { %19018 = vst [vmem:[#allocation19_spill] sm:$0xff] %v17282_v41  ;;  %v2762_v37 = vadd.f32 %v19029_v39, %v2426_v29  ;;  %v2428_v49 = vadd.f32 %v19030_v60, %v2092_v12  ;;  %v3768_v29 = vadd.f32 %v17014_v6, %v3432_v31 }
 0x2be   : > { %v17290_v57 = vpop.f32.mrf.mxu1  ;;  %v17292_v22 = vpop.f32.mrf.mxu0  ;;  %v3430_v19 = vadd.f32 %v16978_v38, %v3094_v26  ;;  %v19031_v38 = vld [vmem:[#allocation36_spill] sm:$0xff] }
 0x2bf   : > { %19023 = vst [vmem:[#allocation17_spill] sm:$0xff] %v17290_v57  ;;  %v3098_v26 = vadd.f32 %v19031_v38, %v2762_v37  ;;  %v2764_v47 = vadd.f32 %v19032_v61, %v2428_v49  ;;  %v4104_v40 = vadd.f32 %v17069_v0, %v3768_v29  ;;  %v5445_v0 = vadd.f32 %v17178_v45, %v17156_v4  ;;  %v19034_v29 = vld [vmem:[#allocation44_spill] sm:$0xff] }
 0x2c0   : > { %v17298_v41 = vpop.f32.mrf.mxu1  ;;  %v3766_v63 = vadd.f32 %v17006_v7, %v3430_v19  ;;  %v5447_v45 = vadd.f32 %v17170_v50, %v17160_v15 }
 0x2c1   : > { %v17302_v18 = vpop.f32.mrf.mxu0  ;;  %v3434_v7 = vadd.f32 %v16986_v17, %v3098_v26  ;;  %v3100_v53 = vadd.f32 %v19033_v3, %v2764_v47  ;;  %v4440_v17 = vadd.f32 %v17139_v13, %v4104_v40  ;;  %v5781_v26 = vadd.f32 %v17186_v58, %v5445_v0  ;;  %v19038_v40 = vld [vmem:[#allocation39_spill] sm:$0xff] }
 0x2c2   : > { %v17306_v57 = vpop.f32.mrf.mxu1  ;;  %v4102_v42 = vadd.f32 %v17074_v30, %v3766_v63 }
 0x2c3   : > { %v17310_v24 = vpop.f32.mrf.mxu0  ;;  %v3770_v30 = vadd.f32 %v17044_v9, %v3434_v7  ;;  %v3436_v6 = vadd.f32 %v16994_v54, %v3100_v53  ;;  %v19035_v7 = vld [vmem:[#allocation50_spill] sm:$0xff] }
 0x2c4   : > { %v17314_v11 = vpop.f32.mrf.mxu1  ;;  %v4438_v19 = vadd.f32 %v17128_v62, %v4102_v42  ;;  %v5449_v42 = vadd.f32 %v17182_v59, %v17166_v35 }
 0x2c5   : > { %v17318_v46 = vpop.f32.mrf.mxu0  ;;  %v4106_v62 = vadd.f32 %v17097_v52, %v3770_v30  ;;  %v3772_v9 = vadd.f32 %v17046_v16, %v3436_v6 }
 0x2c6   : > { %v17322_v12 = vpop.f32.mrf.mxu1  ;;  %v4774_v37 = vadd.f32 %v17152_v43, %v4438_v19  ;;  %v4776_v43 = vadd.f32 %v17150_v32, %v4440_v17  ;;  %v19036_v19 = vld [vmem:[#allocation55_spill] sm:$0xff] }
 0x2c7   : > { %v17326_v39 = vpop.f32.mrf.mxu0  ;;  %v4442_v54 = vadd.f32 %v17146_v14, %v4106_v62 }
 0x2c8   : > { %v17330_v63 = vpop.f32.mrf.mxu1  ;;  %v5110_v49 = vadd.f32 %v17162_v23, %v4774_v37  ;;  %v4108_v23 = vadd.f32 %v17114_v51, %v3772_v9  ;;  %v5112_v4 = vadd.f32 %v17164_v27, %v4776_v43  ;;  %v5783_v27 = vadd.f32 %v17192_v21, %v5447_v45  ;;  %v19044_v9 = vld [vmem:[#allocation58_spill] sm:$0xff]  ;;  %v19047_v45 = vld [vmem:[#allocation47_spill] sm:$0xff] }
 0x2c9   : > { %v17334_v60 = vpop.f32.mrf.mxu0  ;;  %v4778_v32 = vadd.f32 %v17154_v28, %v4442_v54  ;;  %v5785_v28 = vadd.f32 %v17194_v25, %v5449_v42  ;;  %v19045_v54 = vld [vmem:[#allocation63_spill] sm:$0xff]  ;;  %v19048_v42 = vld [vmem:[#allocation52_spill] sm:$0xff] }
 0x2ca   : > { %v17340_v31 = vpop.f32.mrf.mxu1  ;;  %v5446_v13 = vadd.f32 %v17180_v55, %v5110_v49  ;;  %v6121_v55 = vadd.f32 %v17202_v5, %v5781_v26  ;;  %v4444_v61 = vadd.f32 %v17148_v44, %v4108_v23  ;;  %v5448_v51 = vadd.f32 %v17172_v34, %v5112_v4  ;;  %v19043_v49 = vld [vmem:[#allocation51_spill] sm:$0xff]  ;;  %v19046_v23 = vld [vmem:[#allocation40_spill] sm:$0xff] }
 0x2cb   : > { %v17344_v38 = vpop.f32.mrf.mxu0  ;;  %v5114_v15 = vadd.f32 %v17176_v36, %v4778_v32  ;;  %v6123_v44 = vadd.f32 %v17206_v20, %v5783_v27  ;;  %v6125_v36 = vadd.f32 %v19034_v29, %v5785_v28  ;;  %v19041_v20 = vld [vmem:[#allocation49_spill] sm:$0xff]  ;;  %v19050_v27 = vld [vmem:[#allocation46_spill] sm:$0xff]  ;;  %v19051_v28 = vld [vmem:[#allocation59_spill] sm:$0xff] }
 0x2cc   : > { %v17349_v52 = vpop.f32.mrf.mxu1  ;;  %v5782_v14 = vadd.f32 %v17190_v48, %v5446_v13  ;;  %v6460_v35 = vadd.f32 %v17218_v33, %v6121_v55  ;;  %v4780_v48 = vadd.f32 %v17158_v8, %v4444_v61  ;;  %v5784_v5 = vadd.f32 %v17196_v2, %v5448_v51  ;;  %v19037_v33 = vld [vmem:[#allocation38_spill] sm:$0xff]  ;;  %v19040_v2 = vld [vmem:[#allocation45_spill] sm:$0xff] }
 0x2cd   : > { %v7824_v16 = vpop.f32.mrf.mxu0  ;;  %v5450_v21 = vadd.f32 %v17184_v56, %v5114_v15  ;;  %v19039_v8 = vld [vmem:[#allocation42_spill] sm:$0xff]  ;;  %v6462_v6 = vadd.f32 %v19041_v20, %v6123_v44  ;;  %v19042_v56 = vld [vmem:[#allocation41_spill] sm:$0xff]  ;;  %v6464_v0 = vadd.f32 %v19043_v49, %v6125_v36 }
 0x2ce   : > { %v17360_v58 = vpop.f32.mrf.mxu1  ;;  %v6122_v50 = vadd.f32 %v17208_v1, %v5782_v14  ;;  %v6799_v1 = vadd.f32 %v19036_v19, %v6460_v35  ;;  %v5116_v53 = vadd.f32 %v19037_v33, %v4780_v48  ;;  %v5787_v30 = vadd.f32 %v19039_v8, %v19038_v40  ;;  %v19049_v55 = vld [vmem:[#allocation57_spill] sm:$0xff]  ;;  %v19052_v35 = vld [vmem:[#allocation66_spill] sm:$0xff] }
 0x2cf   : > { %v7826_v47 = vpop.f32.mrf.mxu0  ;;  %v6124_v37 = vadd.f32 %v19040_v2, %v5784_v5  ;;  %v5786_v62 = vadd.f32 %v19042_v56, %v5450_v21  ;;  %v6801_v61 = vadd.f32 %v19049_v55, %v6462_v6  ;;  %v19053_v21 = vld [vmem:[#allocation43_spill] sm:$0xff]  ;;  %v19054_v36 = vld [vmem:[#allocation54_spill] sm:$0xff]  ;;  %v19057_v40 = vld [vmem:[#allocation53_spill] sm:$0xff] }
 0x2d0   : > { %v17369_v59 = vpop.f32.mrf.mxu1  ;;  %v6461_v25 = vadd.f32 %v19035_v7, %v6122_v50  ;;  %v7138_v13 = vadd.f32 %v19045_v54, %v6799_v1  ;;  %v5452_v4 = vadd.f32 %v19046_v23, %v5116_v53  ;;  %v6127_v32 = vadd.f32 %v19047_v45, %v5787_v30  ;;  %v19056_v1 = vld [vmem:[#allocation65_spill] sm:$0xff]  ;;  %v19059_v6 = vld [vmem:[#allocation48_spill] sm:$0xff] }
 0x2d1   : > { %v17374_v34 = vpop.f32.mrf.mxu0  ;;  %v6463_v14 = vadd.f32 %v19048_v42, %v6124_v37  ;;  %v6126_v15 = vadd.f32 %v19050_v27, %v5786_v62  ;;  %v6803_v50 = vadd.f32 %v19051_v28, %v6464_v0  ;;  %v7140_v33 = vadd.f32 %v19056_v1, %v6801_v61  ;;  %v19058_v30 = vld [vmem:[#allocation13_spill] sm:$0xff]  ;;  %v19060_v62 = vld [vmem:[#allocation62_spill] sm:$0xff]  ;;  %v19061_v0 = vld [vmem:[#allocation15_spill] sm:$0xff] }
 0x2d2   : > { %v17380_v3 = vpop.f32.mrf.mxu1  ;;  %v6800_v43 = vadd.f32 %v19044_v9, %v6461_v25  ;;  %v7436_v5 = vadd.f32 %v17284_v10, %v7138_v13  ;;  %v5788_v29 = vadd.f32 %v19053_v21, %v5452_v4  ;;  %v6466_v7 = vadd.f32 %v19054_v36, %v6127_v32  ;;  %v19055_v25 = vld [vmem:[#allocation60_spill] sm:$0xff]  ;;  %v19062_v13 = vld [vmem:[#allocation61_spill] sm:$0xff]  ;;  %v19065_v28 = vld [vmem:[#allocation23_spill] sm:$0xff] }
 0x2d3   : > { %v17387_v17 = vpop.f32.mrf.mxu0  ;;  %v6802_v19 = vadd.f32 %v19055_v25, %v6463_v14  ;;  %v6465_v8 = vadd.f32 %v19057_v40, %v6126_v15  ;;  %v7142_v2 = vadd.f32 %v19058_v30, %v6803_v50  ;;  %v19063_v42 = vld [vmem:[#allocation56_spill] sm:$0xff]  ;;  %v19064_v14 = vld [vmem:[#allocation19_spill] sm:$0xff] }
 0x2d4   : > { %v17393_v26 = vpop.f32.mrf.mxu1  ;;  %v7139_v48 = vadd.f32 %v19052_v35, %v6800_v43  ;;  %v7739_v20 = vadd.f32 %v17318_v46, %v7436_v5  ;;  %v6128_v56 = vadd.f32 %v19059_v6, %v5788_v29  ;;  %v6805_v49 = vadd.f32 %v19060_v62, %v6466_v7  ;;  %v19066_v5 = vld [vmem:[#allocation64_spill] sm:$0xff] }
 0x2d5   : > { %v8127_v51 = vpop.f32.mrf.mxu0  ;;  %v7141_v9 = vadd.f32 %v19061_v0, %v6802_v19  ;;  %v7438_v43 = vadd.f32 %v17298_v41, %v7140_v33  ;;  %v6804_v23 = vadd.f32 %v19062_v13, %v6465_v8  ;;  %v7440_v4 = vadd.f32 %v17302_v18, %v7142_v2 }
 0x2d6   : > { %v17403_v44 = vpop.f32.mrf.mxu1  ;;  %v7437_v37 = vadd.f32 %v17292_v22, %v7139_v48  ;;  %v8042_v32 = vadd.f32 %v7824_v16, %v7739_v20  ;;  %v6467_v46 = vadd.f32 %v19063_v42, %v6128_v56  ;;  %v7144_v55 = vadd.f32 %v19064_v14, %v6805_v49 }
 0x2d7   : > { %v8129_v53 = vpop.f32.mrf.mxu0  ;;  %v7439_v61 = vadd.f32 %v17306_v57, %v7141_v9  ;;  %v7741_v27 = vadd.f32 %v17330_v63, %v7438_v43  ;;  %v7143_v41 = vadd.f32 %v19065_v28, %v6804_v23  ;;  %v7743_v50 = vadd.f32 %v17334_v60, %v7440_v4  ;;  %v8660_v57 = vpop.permute.xlu0 %8659 }
 0x2d8   : > { %v8198_v10 = vpop.f32.mrf.mxu1  ;;  %v7740_v45 = vadd.f32 %v17326_v39, %v7437_v37  ;;  %v8345_v48 = vadd.f32 %v8127_v51, %v8042_v32  ;;  %v6806_v39 = vadd.f32 %v19066_v5, %v6467_v46  ;;  %v7442_v16 = vadd.f32 %v17314_v11, %v7144_v55 }
 0x2d9   : > { %v8269_v54 = vpop.f32.mrf.mxu0  ;;  %v7742_v21 = vadd.f32 %v17340_v31, %v7439_v61  ;;  %v8044_v29 = vadd.f32 %v17369_v59, %v7741_v27  ;;  %v7441_v63 = vadd.f32 %v17310_v24, %v7143_v41  ;;  %v8046_v7 = vadd.f32 %v17374_v34, %v7743_v50  ;;  %v17468_v61 = vld [vmem:[%s19069_s5 + $0x10] sm:$0xff] }
 0x2da   : > { %v8200_v22 = vpop.f32.mrf.mxu1  ;;  %v8043_v35 = vadd.f32 %v7826_v47, %v7740_v45  ;;  %v19067_v47 = vld [vmem:[#allocation17_spill] sm:$0xff]  ;;  %v7745_v1 = vadd.f32 %v17349_v52, %v7442_v16  ;;  %v19070_v27 = vmov 0.0  }
 0x2db   : > { %v8271_v15 = vpop.f32.mrf.mxu0  ;;  %v7145_v51 = vadd.f32 %v19067_v47, %v6806_v39  ;;  %v8045_v33 = vadd.f32 %v17380_v3, %v7742_v21  ;;  %v8347_v11 = vadd.f32 %v8198_v10, %v8044_v29  ;;  %v7744_v31 = vadd.f32 %v17344_v38, %v7441_v63  ;;  %15137 = vmatprep.mubr.msk.f32.mxu0 %vm18916_vm1, %v19070_v27 }
 0x2dc   : > { %v8340_v18 = vpop.f32.mrf.mxu1  ;;  %v8346_v25 = vadd.f32 %v8129_v53, %v8043_v35  ;;  %v8349_v59 = vadd.f32 %v8269_v54, %v8046_v7  ;;  %v8048_v34 = vadd.f32 %v17393_v26, %v7745_v1  ;;  %15148 = vmatprep.mubr.msk.f32.mxu1 %vm18916_vm1, %v19070_v27 }
 0x2dd   : > { %v8430_v36 = vpop.f32.mrf.mxu0  ;;  %v7443_v24 = vadd.f32 %v17322_v12, %v7145_v51  ;;  %v8348_v53 = vadd.f32 %v8200_v22, %v8045_v33  ;;  %v8047_v52 = vadd.f32 %v17387_v17, %v7744_v31 }
 0x2de   : > { %v8648_v19 = vadd.f32 %v8430_v36, %v8345_v48  ;;  %v8342_v60 = vpop.f32.mrf.mxu1  ;;  %v8351_v38 = vadd.f32 %v8340_v18, %v8048_v34  ;;  %v17496_v48 = vld [vmem:[%s19069_s5] sm:$0xff] }
 0x2df   : > { %v8432_v40 = vpop.f32.mrf.mxu0  ;;  %v7746_v12 = vadd.f32 %v17360_v58, %v7443_v24  ;;  %v8350_v9 = vadd.f32 %v8271_v15, %v8047_v52  ;;  %v17477_v15 = vld [vmem:[%s19069_s5 + $0x8] sm:$0xff] }
 0x2e0   : > { %v8649_v8 = vadd.f32 %v8432_v40, %v8346_v25  ;;  %v8501_v30 = vpop.f32.mrf.mxu1  ;;  %v17436_v2 = vadd.f32 %v8660_v57, %v8648_v19 }
 0x2e1   : > { %v8650_v37 = vadd.f32 %v8501_v30, %v8347_v11  ;;  %v8572_v20 = vpop.f32.mrf.mxu0  ;;  %v8049_v13 = vadd.f32 %v17403_v44, %v7746_v12  ;;  %v17463_v44 = vld [vmem:[%s19069_s5 + $0x18] sm:$0xff]  ;;  %s19080_s5 = smov 86  }
 0x2e2   : > { %v8652_v6 = vadd.f32 %v8572_v20, %v8349_v59  ;;  %v8503_v3 = vpop.f32.mrf.mxu1  ;;  %v8670_v10 = vmax.f32 %v17436_v2, 0.0  ;;  %v17442_v56 = vadd.f32 %v8660_v57, %v8649_v8  ;;  %15130 = vmatpush3.msra.mxu0 %v17463_v44  ;;  %15141 = vmatpush3.msra.mxu1 %v17463_v44 }
 0x2e3   : > { %v17444_v62 = vadd.f32 %v8660_v57, %v8650_v37  ;;  %v8651_v49 = vadd.f32 %v8503_v3, %v8348_v53  ;;  %v8574_v0 = vpop.f32.mrf.mxu0  ;;  %v8352_v58 = vadd.f32 %v8342_v60, %v8049_v13  ;;  %15131 = vmatprep.subr.mxu0 %v19070_v27  ;;  %15142 = vmatprep.subr.mxu1 %v19070_v27 }
 0x2e4   : > { %8686 = vrot.lane.b32.xlu1 %v8670_v10, %s19068_s21  ;;  %v8643_v26 = vpop.f32.mrf.mxu1  ;;  %v17451_v43 = vadd.f32 %v8660_v57, %v8652_v6  ;;  %v8653_v4 = vadd.f32 %v8574_v0, %v8350_v9  ;;  %v8671_v45 = vmax.f32 %v17442_v56, 0.0  ;;  %15132 = vmatpush3.msra.mxu0 %v17468_v61 }
 0x2e5   : > { %v8672_v17 = vmax.f32 %v17444_v62, 0.0  ;;  %v8654_v54 = vadd.f32 %v8643_v26, %v8351_v38  ;;  %v8665_v23 = vadd.f32 %v8660_v57, %v8651_v49  ;;  %15133 = vmatprep.subr.mxu0 %v19070_v27  ;;  %15143 = vmatpush3.msra.mxu1 %v17468_v61 }
 0x2e6   : > { %v8645_v32 = vpop.f32.mrf.mxu1  ;;  %v8674_v22 = vmax.f32 %v17451_v43, 0.0  ;;  %v8667_v14 = vadd.f32 %v8660_v57, %v8653_v4  ;;  %15134 = vmatpush3.msra.mxu0 %v17477_v15  ;;  %15144 = vmatprep.subr.mxu1 %v19070_v27  ;;  %v17588_v43 = vld [vmem:[%s18841_s3 + $0x10] sm:$0xff] }
 0x2e7   : > { %8690 = vrot.lane.b32.xlu0 %v8672_v17, %s19068_s21  ;;  %v17458_v42 = vadd.f32 %v8660_v57, %v8654_v54  ;;  %v8673_v46 = vmax.f32 %v8665_v23, 0.0  ;;  %v8655_v55 = vadd.f32 %v8645_v32, %v8352_v58  ;;  %15135 = vmatprep.subr.mxu0 %v19070_v27  ;;  %v17596_v54 = vld [vmem:[%s18841_s3] sm:$0xff] }
 0x2e8   : > { %8688 = vrot.lane.b32.xlu1 %v8671_v45, %s19068_s21  ;;  %v8675_v41 = vmax.f32 %v8667_v14, 0.0  ;;  %15145 = vmatpush3.msra.mxu1 %v17477_v15 }
 0x2e9   : > { %v8676_v28 = vmax.f32 %v17458_v42, 0.0  ;;  %v8669_v50 = vadd.f32 %v8660_v57, %v8655_v55  ;;  %15146 = vmatprep.subr.mxu1 %v19070_v27  ;;  %15136 = vmatpush3.msra.mxu0 %v17496_v48 }
 0x2ea   : > { %15151 = vmatprep.subr.mxu0 %v19070_v27  ;;  %15147 = vmatpush3.msra.mxu1 %v17496_v48 }
 0x2eb   : > { %8694 = vrot.lane.b32.xlu0 %v8674_v22, %s19068_s21  ;;  %v8677_v35 = vmax.f32 %v8669_v50, 0.0  ;;  %15162 = vmatprep.subr.mxu1 %v19070_v27 }
 0x2ec   : > { %8692 = vrot.lane.b32.xlu1 %v8673_v46, %s19068_s21 }
 0x2ef   : > { %8698 = vrot.lane.b32.xlu0 %v8676_v28, %s19068_s21 }
 0x2f0   : > { %8696 = vrot.lane.b32.xlu1 %v8675_v41, %s19068_s21 }
 0x2f4   : > { %8700 = vrot.lane.b32.xlu1 %v8677_v35, %s19068_s21 }
 0x356   : > { %v8687_v18 = vpop.permute.xlu1 %8686 }
 0x359   : > { %v8691_v5 = vpop.permute.xlu0 %8690 }
 0x35a   : > { %v8689_v39 = vpop.permute.xlu1 %8688 }
 0x35b   : > { %v8702_v16 = vsel %vm2111_vm6, %v8687_v18, %v8689_v39  ;;  %v8703_v21 = vsel %vm2111_vm6, %v8689_v39, %v8691_v5 }
 0x35c   : > { %v8716_v29 = vmax.f32 %v8670_v10, %v8702_v16  ;;  %v8717_v36 = vmax.f32 %v8671_v45, %v8703_v21 }
 0x35d   : > { %v8695_v57 = vpop.permute.xlu0 %8694 }
 0x35e   : > { %8732 = vrot.lane.b32.xlu1 %v8717_v36, %s19071_s20  ;;  %8730 = vrot.lane.b32.xlu0 %v8716_v29, %s19071_s20  ;;  %v8693_v63 = vpop.permute.xlu1 %8692 }
 0x35f   : > { %v8704_v7 = vsel %vm2111_vm6, %v8691_v5, %v8693_v63  ;;  %v8705_v25 = vsel %vm2111_vm6, %v8693_v63, %v8695_v57 }
 0x360   : > { %v8718_v19 = vmax.f32 %v8672_v17, %v8704_v7  ;;  %v8719_v60 = vmax.f32 %v8673_v46, %v8705_v25 }
 0x361   : > { %v8699_v47 = vpop.permute.xlu0 %8698 }
 0x362   : > { %8736 = vrot.lane.b32.xlu1 %v8719_v60, %s19071_s20  ;;  %8734 = vrot.lane.b32.xlu0 %v8718_v19, %s19071_s20  ;;  %v8697_v51 = vpop.permute.xlu1 %8696 }
 0x363   : > { %v8706_v1 = vsel %vm2111_vm6, %v8695_v57, %v8697_v51  ;;  %v8707_v33 = vsel %vm2111_vm6, %v8697_v51, %v8699_v47 }
 0x364   : > { %v8720_v11 = vmax.f32 %v8674_v22, %v8706_v1  ;;  %v8721_v40 = vmax.f32 %v8675_v41, %v8707_v33 }
 0x366   : > { %8740 = vrot.lane.b32.xlu1 %v8721_v40, %s19071_s20  ;;  %8738 = vrot.lane.b32.xlu0 %v8720_v11, %s19071_s20  ;;  %v8701_v31 = vpop.permute.xlu1 %8700 }
 0x367   : > { %v8708_v59 = vsel %vm2111_vm6, %v8699_v47, %v8701_v31 }
 0x368   : > { %v8722_v8 = vmax.f32 %v8676_v28, %v8708_v59 }
 0x36a   : > { %8742 = vrot.lane.b32.xlu0 %v8722_v8, %s19071_s20 }
 0x3d0   : > { %v8731_v30 = vpop.permute.xlu0 %8730  ;;  %v8733_v2 = vpop.permute.xlu1 %8732 }
 0x3d1   : > { %v8744_v24 = vsel %vm471_vm0, %v8731_v30, %v8733_v2 }
 0x3d2   : > { %v8757_v34 = vmax.f32 %v8716_v29, %v8744_v24 }
 0x3d4   : > { %v8735_v53 = vpop.permute.xlu0 %8734  ;;  %8843 = vrot.lane.b32.xlu1 %v8757_v34, %s19072_s23  ;;  %15138 = vmatmul.mubr.msk.f32.vlgmr.msra.gmra.mxu0 %vm5471_vm14, %v8757_v34  ;;  %v8737_v37 = vpop.permute.xlu1 %8736 }
 0x3d5   : > { %v8745_v20 = vsel %vm471_vm0, %v8733_v2, %v8735_v53  ;;  %15152 = vmatpush3.msra.mxu0 %v17463_v44  ;;  %v8746_v52 = vsel %vm471_vm0, %v8735_v53, %v8737_v37  ;;  %15159 = vmatprep.mubr.msk.f32.mxu0 %vm18916_vm1, %v19070_v27 }
 0x3d6   : > { %v8758_v6 = vmax.f32 %v8717_v36, %v8745_v20  ;;  %v8759_v3 = vmax.f32 %v8718_v19, %v8746_v52  ;;  %15153 = vmatprep.subr.mxu0 %v19070_v27 }
 0x3d7   : > { %15154 = vmatpush3.msra.mxu0 %v17468_v61 }
 0x3d8   : > { %15155 = vmatprep.subr.mxu0 %v19070_v27  ;;  %v8739_v10 = vpop.permute.xlu0 %8738  ;;  %9002 = vrot.lane.b32.xlu0 %v8758_v6, %s19072_s23  ;;  %v8741_v56 = vpop.permute.xlu1 %8740 }
 0x3d9   : > { %v8747_v38 = vsel %vm471_vm0, %v8737_v37, %v8739_v10  ;;  %15156 = vmatpush3.msra.mxu0 %v17477_v15  ;;  %9161 = vrot.lane.b32.xlu1 %v8759_v3, %s19072_s23  ;;  %v8748_v62 = vsel %vm471_vm0, %v8739_v10, %v8741_v56 }
 0x3da   : > { %v8760_v49 = vmax.f32 %v8719_v60, %v8747_v38  ;;  %v8761_v0 = vmax.f32 %v8720_v11, %v8748_v62  ;;  %15157 = vmatprep.subr.mxu0 %v19070_v27 }
 0x3db   : > { %15158 = vmatpush3.msra.mxu0 %v17496_v48 }
 0x3dc   : > { %15160 = vmatmul.mubr.msk.f32.vlgmr.msra.gmra.mxu0 %vm5471_vm14, %v8758_v6  ;;  %15173 = vmatprep.subr.mxu0 %v19070_v27  ;;  %v8743_v12 = vpop.permute.xlu0 %8742 }
 0x3dd   : > { %v8749_v9 = vsel %vm471_vm0, %v8741_v56, %v8743_v12  ;;  %15174 = vmatpush3.msra.mxu0 %v17463_v44  ;;  %9320 = vrot.lane.b32.xlu0 %v8760_v49, %s19072_s23  ;;  %v8763_v17 = vmax.f32 %v8722_v8, %v8743_v12 }
 0x3de   : > { %v8762_v26 = vmax.f32 %v8721_v40, %v8749_v9  ;;  %9474 = vrot.lane.b32.xlu1 %v8761_v0, %s19072_s23  ;;  %15175 = vmatprep.subr.mxu0 %v19070_v27 }
 0x3df   : > { %15176 = vmatpush3.msra.mxu0 %v17468_v61  ;;  %15181 = vmatprep.mubr.msk.f32.mxu0 %vm18916_vm1, %v19070_v27 }
 0x3e0   : > { %15177 = vmatprep.subr.mxu0 %v19070_v27 }
 0x3e1   : > { %15178 = vmatpush3.msra.mxu0 %v17477_v15  ;;  %9631 = vrot.lane.b32.xlu0 %v8762_v26, %s19072_s23 }
 0x3e2   : > { %9788 = vrot.lane.b32.xlu1 %v8763_v17, %s19072_s23  ;;  %15179 = vmatprep.subr.mxu0 %v19070_v27 }
 0x3e3   : > { %15180 = vmatpush3.msra.mxu0 %v17496_v48 }
 0x3e4   : > { %15182 = vmatmul.mubr.msk.f32.vlgmr.msra.gmra.mxu0 %vm5471_vm14, %v8759_v3  ;;  %15195 = vmatprep.subr.mxu0 %v19070_v27 }
 0x3e5   : > { %15196 = vmatpush3.msra.mxu0 %v17463_v44  ;;  %15203 = vmatprep.mubr.msk.f32.mxu0 %vm18916_vm1, %v19070_v27 }
 0x3e6   : > { %15197 = vmatprep.subr.mxu0 %v19070_v27  ;;  %9879 = vrot.lane.b32.xlu1 %v17588_v43, %s19073_s0 }
 0x3e7   : > { %15198 = vmatpush3.msra.mxu0 %v17468_v61  ;;  %9877 = vrot.lane.b32.xlu0 %v17596_v54, %s19073_s0  ;;  %s19077_s0 = smov 92  }
 0x3e8   : > { %15199 = vmatprep.subr.mxu0 %v19070_v27 }
 0x3e9   : > { %15200 = vmatpush3.msra.mxu0 %v17477_v15 }
 0x3ea   : > { %15201 = vmatprep.subr.mxu0 %v19070_v27  ;;  %10062 = vrot.lane.b32.xlu1 %v17588_v43, %s19074_s2 }
 0x3eb   : > { %15202 = vmatpush3.msra.mxu0 %v17496_v48  ;;  %10060 = vrot.lane.b32.xlu0 %v17596_v54, %s19074_s2  ;;  %s19079_s2 = smov 80  }
 0x3ec   : > { %15204 = vmatmul.mubr.msk.f32.vlgmr.msra.gmra.mxu0 %vm5471_vm14, %v8760_v49  ;;  %15217 = vmatprep.subr.mxu0 %v19070_v27 }
 0x3ed   : > { %15218 = vmatpush3.msra.mxu0 %v17463_v44  ;;  %15225 = vmatprep.mubr.msk.f32.mxu0 %vm18916_vm1, %v19070_v27 }
 0x3ee   : > { %15219 = vmatprep.subr.mxu0 %v19070_v27  ;;  %10256 = vrot.lane.b32.xlu1 %v17596_v54, %s19075_s30 }
 0x3ef   : > { %15220 = vmatpush3.msra.mxu0 %v17468_v61  ;;  %10158 = vrot.lane.b32.xlu0 %v17596_v54, %s19076_s22 }
 0x3f0   : > { %15221 = vmatprep.subr.mxu0 %v19070_v27 }
 0x3f1   : > { %15222 = vmatpush3.msra.mxu0 %v17477_v15 }
 0x3f2   : > { %15223 = vmatprep.subr.mxu0 %v19070_v27  ;;  %10258 = vrot.lane.b32.xlu1 %v17588_v43, %s19075_s30  ;;  %s19081_s30 = smov 32  }
 0x3f3   : > { %15224 = vmatpush3.msra.mxu0 %v17496_v48  ;;  %10160 = vrot.lane.b32.xlu0 %v17588_v43, %s19076_s22 }
 0x3f4   : > { %15226 = vmatmul.mubr.msk.f32.vlgmr.msra.gmra.mxu0 %vm5471_vm14, %v8761_v0  ;;  %15239 = vmatprep.subr.mxu0 %v19070_v27 }
 0x3f5   : > { %15240 = vmatpush3.msra.mxu0 %v17463_v44  ;;  %15247 = vmatprep.mubr.msk.f32.mxu0 %vm18916_vm1, %v19070_v27 }
 0x3f6   : > { %15241 = vmatprep.subr.mxu0 %v19070_v27  ;;  %10453 = vrot.lane.b32.xlu1 %v17596_v54, %s19077_s0 }
 0x3f7   : > { %15242 = vmatpush3.msra.mxu0 %v17468_v61  ;;  %10354 = vrot.lane.b32.xlu0 %v17596_v54, %s19078_s1 }
 0x3f8   : > { %15243 = vmatprep.subr.mxu0 %v19070_v27 }
 0x3f9   : > { %15244 = vmatpush3.msra.mxu0 %v17477_v15 }
 0x3fa   : > { %15245 = vmatprep.subr.mxu0 %v19070_v27  ;;  %10455 = vrot.lane.b32.xlu1 %v17588_v43, %s19077_s0 }
 0x3fb   : > { %15246 = vmatpush3.msra.mxu0 %v17496_v48  ;;  %10356 = vrot.lane.b32.xlu0 %v17588_v43, %s19078_s1  ;;  %s18914_s1 = smov 16  }
 0x3fc   : > { %15248 = vmatmul.mubr.msk.f32.vlgmr.msra.gmra.mxu0 %vm5471_vm14, %v8762_v26  ;;  %15261 = vmatprep.subr.mxu0 %v19070_v27 }
 0x3fd   : > { %15262 = vmatpush3.msra.mxu0 %v17463_v44  ;;  %15269 = vmatprep.mubr.msk.f32.mxu0 %vm18916_vm1, %v19070_v27 }
 0x3fe   : > { %15263 = vmatprep.subr.mxu0 %v19070_v27  ;;  %10651 = vrot.lane.b32.xlu1 %v17596_v54, %s19079_s2 }
 0x3ff   : > { %15264 = vmatpush3.msra.mxu0 %v17468_v61  ;;  %10552 = vrot.lane.b32.xlu0 %v17596_v54, %s19080_s5 }
 0x400   : > { %15265 = vmatprep.subr.mxu0 %v19070_v27 }
 0x401   : > { %15266 = vmatpush3.msra.mxu0 %v17477_v15 }
 0x402   : > { %15267 = vmatprep.subr.mxu0 %v19070_v27 }
 0x403   : > { %15268 = vmatpush3.msra.mxu0 %v17496_v48 }
 0x404   : > { %15270 = vmatmul.mubr.msk.f32.vlgmr.msra.gmra.mxu0 %vm5471_vm14, %v8763_v17 }
 0x405   : > { %9962 = vmatprep.mubr.f32.mxu0 %v19070_v27 }
 0x446   : > { %v8844_v13 = vpop.permute.xlu1 %8843 }
 0x447   : > { %15149 = vmatmul.mubr.msk.f32.vlgmr.msra.gmra.mxu1 %vm5471_vm14, %v8844_v13 }
 0x448   : > { %15163 = vmatpush3.msra.mxu1 %v17463_v44  ;;  %15170 = vmatprep.mubr.msk.f32.mxu1 %vm18916_vm1, %v19070_v27 }
 0x449   : > { %15164 = vmatprep.subr.mxu1 %v19070_v27 }
 0x44a   : > { %15165 = vmatpush3.msra.mxu1 %v17468_v61  ;;  %v9003_v23 = vpop.permute.xlu0 %9002 }
 0x44b   : > { %15166 = vmatprep.subr.mxu1 %v19070_v27  ;;  %v9162_v4 = vpop.permute.xlu1 %9161 }
 0x44c   : > { %15167 = vmatpush3.msra.mxu1 %v17477_v15 }
 0x44d   : > { %15168 = vmatprep.subr.mxu1 %v19070_v27 }
 0x44e   : > { %15169 = vmatpush3.msra.mxu1 %v17496_v48 }
 0x44f   : > { %15171 = vmatmul.mubr.msk.f32.vlgmr.msra.gmra.mxu1 %vm5471_vm14, %v9003_v23  ;;  %15184 = vmatprep.subr.mxu1 %v19070_v27  ;;  %v9321_v45 = vpop.permute.xlu0 %9320 }
 0x450   : > { %15185 = vmatpush3.msra.mxu1 %v17463_v44  ;;  %15192 = vmatprep.mubr.msk.f32.mxu1 %vm18916_vm1, %v19070_v27  ;;  %v9475_v32 = vpop.permute.xlu1 %9474 }
 0x451   : > { %15186 = vmatprep.subr.mxu1 %v19070_v27 }
 0x452   : > { %15187 = vmatpush3.msra.mxu1 %v17468_v61 }
 0x453   : > { %15188 = vmatprep.subr.mxu1 %v19070_v27  ;;  %v9632_v58 = vpop.permute.xlu0 %9631 }
 0x454   : > { %15189 = vmatpush3.msra.mxu1 %v17477_v15  ;;  %v9789_v22 = vpop.permute.xlu1 %9788 }
 0x455   : > { %15190 = vmatprep.subr.mxu1 %v19070_v27 }
 0x456   : > { %15191 = vmatpush3.msra.mxu1 %v17496_v48 }
 0x457   : > { %15193 = vmatmul.mubr.msk.f32.vlgmr.msra.gmra.mxu1 %vm5471_vm14, %v9162_v4  ;;  %15206 = vmatprep.subr.mxu1 %v19070_v27 }
 0x458   : > { %15207 = vmatpush3.msra.mxu1 %v17463_v44  ;;  %15214 = vmatprep.mubr.msk.f32.mxu1 %vm18916_vm1, %v19070_v27  ;;  %v17741_v11 = vpop.permute.xlu1 %9879 }
 0x459   : > { %15208 = vmatprep.subr.mxu1 %v19070_v27  ;;  %v17737_v33 = vpop.permute.xlu0 %9877 }
 0x45a   : > { %15209 = vmatpush3.msra.mxu1 %v17468_v61 }
 0x45b   : > { %15210 = vmatprep.subr.mxu1 %v19070_v27 }
 0x45c   : > { %15211 = vmatpush3.msra.mxu1 %v17477_v15  ;;  %v17748_v31 = vpop.permute.xlu1 %10062 }
 0x45d   : > { %15212 = vmatprep.subr.mxu1 %v19070_v27  ;;  %v17745_v40 = vpop.permute.xlu0 %10060 }
 0x45e   : > { %15213 = vmatpush3.msra.mxu1 %v17496_v48 }
 0x45f   : > { %15215 = vmatmul.mubr.msk.f32.vlgmr.msra.gmra.mxu1 %vm5471_vm14, %v9321_v45  ;;  %15228 = vmatprep.subr.mxu1 %v19070_v27 }
 0x460   : > { %15229 = vmatpush3.msra.mxu1 %v17463_v44  ;;  %15236 = vmatprep.mubr.msk.f32.mxu1 %vm18916_vm1, %v19070_v27  ;;  %v17753_v8 = vpop.permute.xlu1 %10256 }
 0x461   : > { %15230 = vmatprep.subr.mxu1 %v19070_v27  ;;  %v17750_v59 = vpop.permute.xlu0 %10158 }
 0x462   : > { %15231 = vmatpush3.msra.mxu1 %v17468_v61 }
 0x463   : > { %15232 = vmatprep.subr.mxu1 %v19070_v27 }
 0x464   : > { %15233 = vmatpush3.msra.mxu1 %v17477_v15  ;;  %v17759_v2 = vpop.permute.xlu1 %10258 }
 0x465   : > { %15234 = vmatprep.subr.mxu1 %v19070_v27  ;;  %v17756_v30 = vpop.permute.xlu0 %10160 }
 0x466   : > { %15235 = vmatpush3.msra.mxu1 %v17496_v48 }
 0x467   : > { %15237 = vmatmul.mubr.msk.f32.vlgmr.msra.gmra.mxu1 %vm5471_vm14, %v9475_v32  ;;  %15250 = vmatprep.subr.mxu1 %v19070_v27 }
 0x468   : > { %15251 = vmatpush3.msra.mxu1 %v17463_v44  ;;  %15258 = vmatprep.mubr.msk.f32.mxu1 %vm18916_vm1, %v19070_v27  ;;  %v17763_v34 = vpop.permute.xlu1 %10453 }
 0x469   : > { %15252 = vmatprep.subr.mxu1 %v19070_v27  ;;  %v17761_v24 = vpop.permute.xlu0 %10354 }
 0x46a   : > { %15253 = vmatpush3.msra.mxu1 %v17468_v61 }
 0x46b   : > { %15254 = vmatprep.subr.mxu1 %v19070_v27 }
 0x46c   : > { %15255 = vmatpush3.msra.mxu1 %v17477_v15  ;;  %v17767_v37 = vpop.permute.xlu1 %10455 }
 0x46d   : > { %15256 = vmatprep.subr.mxu1 %v19070_v27  ;;  %v17765_v53 = vpop.permute.xlu0 %10356 }
 0x46e   : > { %15257 = vmatpush3.msra.mxu1 %v17496_v48 }
 0x46f   : > { %15259 = vmatmul.mubr.msk.f32.vlgmr.msra.gmra.mxu1 %vm5471_vm14, %v9632_v58  ;;  %15272 = vmatprep.subr.mxu1 %v19070_v27 }
 0x470   : > { %15273 = vmatpush3.msra.mxu1 %v17463_v44  ;;  %15280 = vmatprep.mubr.msk.f32.mxu1 %vm18916_vm1, %v19070_v27  ;;  %v17771_v52 = vpop.permute.xlu1 %10651  ;;  %vm9239_vm1 = vcmask 784000  }
 0x471   : > { %15274 = vmatprep.subr.mxu1 %v19070_v27  ;;  %v17769_v20 = vpop.permute.xlu0 %10552 }
 0x472   : > { %15275 = vmatpush3.msra.mxu1 %v17468_v61 }
 0x473   : > { %15276 = vmatprep.subr.mxu1 %v19070_v27 }
 0x474   : > { %15277 = vmatpush3.msra.mxu1 %v17477_v15 }
 0x475   : > { %15278 = vmatprep.subr.mxu1 %v19070_v27 }
 0x476   : > { %15279 = vmatpush3.msra.mxu1 %v17496_v48 }
 0x477   : > { %15281 = vmatmul.mubr.msk.f32.vlgmr.msra.gmra.mxu1 %vm5471_vm14, %v9789_v22  ;;  %vm8921_vm14 = vcmask 259200  }
 0x478   : > { %10047 = vmatprep.mubr.f32.mxu1 %v19070_v27 }
 0x494   : > { %v8837_v42 = vpop.f32.mrf.mxu0 }
 0x495   : > { %8842 = vst.msk [vmem:[#allocation2] sm:$0x3f] %vm8841_vm2, %v8837_v42 }
 0x496   : > { %v15139_v46 = vpop.f32.mrf.mxu0 }
 0x49c   : > { %v8992_v14 = vpop.f32.mrf.mxu0 }
 0x49d   : > { %8997 = vrot.lane.b32.xlu1 %v8992_v14, %s19081_s30 }
 0x49e   : > { %v15161_v55 = vpop.f32.mrf.mxu0 }
 0x4a4   : > { %v9151_v44 = vpop.f32.mrf.mxu0 }
 0x4a5   : > { %9156 = vrot.lane.b32.xlu1 %v9151_v44, %s19072_s23  ;;  %v9872_v44 = vld [vmem:[%s18841_s3 + $0x8] sm:$0xff] }
 0x4a6   : > { %v15183_v61 = vpop.f32.mrf.mxu0 }
 0x4ac   : > { %v9310_v15 = vpop.f32.mrf.mxu0 }
 0x4ad   : > { %9315 = vrot.lane.b32.xlu1 %v9310_v15, %s19068_s21 }
 0x4ae   : > { %v15205_v28 = vpop.f32.mrf.mxu0 }
 0x4b4   : > { %v9469_v41 = vpop.f32.mrf.mxu0 }
 0x4b5   : > { %9473 = vst.msk [vmem:[#allocation2 + $0x8] sm:$0x3f] %vm8841_vm2, %v9469_v41  ;;  %vm9159_vm2 = vcmask 652800  }
 0x4b6   : > { %v15227_v50 = vpop.f32.mrf.mxu0 }
 0x4bc   : > { %v9622_v35 = vpop.f32.mrf.mxu0 }
 0x4bd   : > { %9627 = vrot.lane.b32.xlu0 %v9622_v35, %s19081_s30  ;;  %v9874_v35 = vld [vmem:[%s18841_s3 + $0x18] sm:$0xff] }
 0x4be   : > { %v15249_v48 = vpop.f32.mrf.mxu0 }
 0x4c4   : > { %v9779_v18 = vpop.f32.mrf.mxu0 }
 0x4c5   : > { %9784 = vrot.lane.b32.xlu0 %v9779_v18, %s19072_s23 }
 0x4c6   : > { %v15271_v5 = vpop.f32.mrf.mxu0 }
 0x507   : > { %v8913_v39 = vpop.f32.mrf.mxu1 }
 0x508   : > { %8918 = vrot.lane.b32.xlu0 %v8913_v39, %s18914_s1 }
 0x509   : > { %v15150_v16 = vpop.f32.mrf.mxu1 }
 0x50f   : > { %v9072_v21 = vpop.f32.mrf.mxu1  ;;  %v8998_v3 = vpop.permute.xlu1 %8997 }
 0x510   : > { %9077 = vrot.lane.b32.xlu1 %v9072_v21, %s15813_s17 }
 0x511   : > { %v15172_v29 = vpop.f32.mrf.mxu1 }
 0x517   : > { %v9231_v36 = vpop.f32.mrf.mxu1  ;;  %v9157_v56 = vpop.permute.xlu1 %9156 }
 0x518   : > { %9236 = vrot.lane.b32.xlu1 %v9231_v36, %s19079_s2 }
 0x519   : > { %v15194_v57 = vpop.f32.mrf.mxu1 }
 0x51f   : > { %v9390_v63 = vpop.f32.mrf.mxu1  ;;  %v9316_v62 = vpop.permute.xlu1 %9315 }
 0x520   : > { %9395 = vrot.lane.b32.xlu1 %v9390_v63, %s18924_s27  ;;  %v12333_v63 = vld [vmem:[%s18842_s4] sm:$0xff] }
 0x521   : > { %v15216_v7 = vpop.f32.mrf.mxu1 }
 0x524   : > { %10653 = vrot.lane.b32.xlu1 %v17588_v43, %s19079_s2 }
 0x527   : > { %v9544_v25 = vpop.f32.mrf.mxu1 }
 0x528   : > { %9549 = vrot.lane.b32.xlu0 %v9544_v25, %s18914_s1  ;;  %10849 = vrot.lane.b32.xlu1 %v17596_v54, %s19082_s14  ;;  %s15815_s1 = smov 44  }
 0x529   : > { %v15238_v19 = vpop.f32.mrf.mxu1 }
 0x52a   : > { %v12334_v19 = vld [vmem:[%s18842_s4 + $0x8] sm:$0xff] }
 0x52c   : > { %10851 = vrot.lane.b32.xlu1 %v17588_v43, %s19082_s14  ;;  %s19084_s14 = smov 74  }
 0x52f   : > { %v9701_v60 = vpop.f32.mrf.mxu1  ;;  %v9628_v6 = vpop.permute.xlu0 %9627 }
 0x530   : > { %9706 = vrot.lane.b32.xlu0 %v9701_v60, %s15813_s17  ;;  %11045 = vrot.lane.b32.xlu1 %v17596_v54, %s19083_s19  ;;  %s15817_s17 = smov 38  }
 0x531   : > { %v15260_v47 = vpop.f32.mrf.mxu1 }
 0x534   : > { %11047 = vrot.lane.b32.xlu1 %v17588_v43, %s19083_s19  ;;  %s18921_s19 = smov 111  }
 0x537   : > { %v9858_v51 = vpop.f32.mrf.mxu1  ;;  %v9785_v10 = vpop.permute.xlu0 %9784 }
 0x538   : > { %9863 = vrot.lane.b32.xlu0 %v9858_v51, %s19079_s2  ;;  %11241 = vrot.lane.b32.xlu1 %v17596_v54, %s15815_s1 }
 0x539   : > { %v15282_v1 = vpop.f32.mrf.mxu1 }
 0x53c   : > { %10554 = vrot.lane.b32.xlu0 %v17588_v43, %s19080_s5  ;;  %11243 = vrot.lane.b32.xlu1 %v17588_v43, %s15815_s1  ;;  %s15816_s5 = smov 50   ;;  %s19085_s1 = smov 126  }
 0x540   : > { %10750 = vrot.lane.b32.xlu0 %v17596_v54, %s19084_s14  ;;  %11438 = vrot.lane.b32.xlu1 %v17596_v54, %s19081_s30 }
 0x544   : > { %10752 = vrot.lane.b32.xlu0 %v17588_v43, %s19084_s14  ;;  %s18920_s14 = smov 109  }
 0x548   : > { %10947 = vrot.lane.b32.xlu0 %v17596_v54, %s18953_s15 }
 0x54c   : > { %10949 = vrot.lane.b32.xlu0 %v17588_v43, %s18953_s15 }
 0x550   : > { %11143 = vrot.lane.b32.xlu0 %v17596_v54, %s15816_s5 }
 0x554   : > { %11145 = vrot.lane.b32.xlu0 %v17588_v43, %s15816_s5  ;;  %s19086_s5 = smov 94  }
 0x558   : > { %11339 = vrot.lane.b32.xlu0 %v17596_v54, %s15817_s17 }
 0x55c   : > { %11341 = vrot.lane.b32.xlu0 %v17588_v43, %s15817_s17  ;;  %s18922_s17 = smov 108  }
 0x57a   : > { %v8919_v38 = vpop.permute.xlu0 %8918 }
 0x57b   : > { %8922 = vst.msk [vmem:[#allocation2] sm:$0x3f] %vm8921_vm14, %v8919_v38 }
 0x57c   : > { %9001 = vst.msk [vmem:[#allocation2] sm:$0x3f] %vm9000_vm15, %v8998_v3 }
 0x582   : > { %v9078_v49 = vpop.permute.xlu1 %9077 }
 0x583   : > { %9081 = vst.msk [vmem:[#allocation2] sm:$0x3f] %vm9080_vm13, %v9078_v49 }
 0x584   : > { %9160 = vst.msk [vmem:[#allocation2] sm:$0x3f] %vm9159_vm2, %v9157_v56 }
 0x58a   : > { %v9237_v0 = vpop.permute.xlu1 %9236 }
 0x58b   : > { %9240 = vst.msk [vmem:[#allocation2] sm:$0x3f] %vm9239_vm1, %v9237_v0 }
 0x58c   : > { %9319 = vst.msk [vmem:[#allocation2] sm:$0x3f] %vm9318_vm12, %v9316_v62  ;;  %vm9893_vm12 = vcmask 1045504  }
 0x592   : > { %v9396_v12 = vpop.permute.xlu1 %9395 }
 0x593   : > { %9399 = vst.msk [vmem:[#allocation2] sm:$0x3f] %vm9398_vm11, %v9396_v12  ;;  %vm9867_vm11 = vcmask 1046272  }
 0x596   : > { %v17865_v32 = vpop.permute.xlu1 %10653 }
 0x59a   : > { %v17778_v9 = vld [vmem:[#allocation2] sm:$0x3f]  ;;  %v9550_v26 = vpop.permute.xlu0 %9549  ;;  %v17876_v22 = vpop.permute.xlu1 %10849 }
 0x59b   : > { %9552 = vst.msk [vmem:[#allocation2 + $0x8] sm:$0x3f] %vm8921_vm14, %v9550_v26  ;;  %10260 = vrot.lane.b32.xlu1 %v17778_v9, %s18955_s24  ;;  %9883 = vrot.lane.b32.xlu0 %v17778_v9, %s19071_s20  ;;  %vm10560_vm14 = vcmask 900096  }
 0x59c   : > { %9630 = vst.msk [vmem:[#allocation2 + $0x8] sm:$0x3f] %vm9000_vm15, %v9628_v6  ;;  %vm10758_vm15 = vcmask 883712  }
 0x59e   : > { %v17884_v46 = vpop.permute.xlu1 %10851 }
 0x59f   : > { %10457 = vrot.lane.b32.xlu1 %v17778_v9, %s18921_s19  ;;  %10064 = vrot.lane.b32.xlu0 %v17778_v9, %s19085_s1  ;;  %s19087_s19 = smov 95  }
 0x5a2   : > { %v9707_v17 = vpop.permute.xlu0 %9706  ;;  %v17896_v55 = vpop.permute.xlu1 %11045 }
 0x5a3   : > { %9709 = vst.msk [vmem:[#allocation2 + $0x8] sm:$0x3f] %vm9080_vm13, %v9707_v17  ;;  %10655 = vrot.lane.b32.xlu1 %v17778_v9, %s18920_s14  ;;  %10162 = vrot.lane.b32.xlu0 %v17778_v9, %s18952_s16  ;;  %s18923_s14 = smov 79   ;;  %vm19099_vm13 = vcmask 523264  }
 0x5a4   : > { %9787 = vst.msk [vmem:[#allocation2 + $0x8] sm:$0x3f] %vm9159_vm2, %v9785_v10  ;;  %vm19100_vm2 = vcmask 515072  }
 0x5a6   : > { %v17904_v15 = vpop.permute.xlu1 %11047 }
 0x5a7   : > { %10853 = vrot.lane.b32.xlu1 %v17778_v9, %s19068_s21  ;;  %10358 = vrot.lane.b32.xlu0 %v17778_v9, %s18924_s27  ;;  %s19089_s27 = smov 77  }
 0x5aa   : > { %v9864_v13 = vpop.permute.xlu0 %9863  ;;  %v17916_v41 = vpop.permute.xlu1 %11241 }
 0x5ab   : > { %9866 = vst.msk [vmem:[#allocation2 + $0x8] sm:$0x3f] %vm9239_vm1, %v9864_v13  ;;  %11049 = vrot.lane.b32.xlu1 %v17778_v9, %s19086_s5  ;;  %10556 = vrot.lane.b32.xlu0 %v17778_v9, %s19076_s22  ;;  %vm9888_vm1 = vcmask 48128  }
 0x5ac   : > { %9868 = vst.msk [vmem:[#allocation2 + $0x8] sm:$0x3f] %vm9867_vm11, %v19070_v27  ;;  %vm11942_vm11 = vcmask 15360  }
 0x5ae   : > { %v17858_v4 = vpop.permute.xlu0 %10554  ;;  %v17923_v50 = vpop.permute.xlu1 %11243 }
 0x5af   : > { %11245 = vrot.lane.b32.xlu1 %v17778_v9, %s19077_s0  ;;  %10754 = vrot.lane.b32.xlu0 %v17778_v9, %s18922_s17  ;;  %s19088_s17 = smov 93  }
 0x5b2   : > { %v17863_v45 = vpop.permute.xlu0 %10750  ;;  %v17936_v48 = vpop.permute.xlu1 %11438 }
 0x5b3   : > { %v17810_v23 = vld [vmem:[#allocation2 + $0x8] sm:$0x3f]  ;;  %11442 = vrot.lane.b32.xlu1 %v17778_v9, %s18923_s14  ;;  %10951 = vrot.lane.b32.xlu0 %v17778_v9, %s19087_s19  ;;  %s18928_s14 = smov 78  }
 0x5b4   : > { %14709 = vmatprep.subr.msk.mxu1 %vm9893_vm12, %v17810_v23 }
 0x5b5   : > { %14710 = vmatpush1.msk.msra.mxu1 %vm9893_vm12, %v17778_v9 }
 0x5b6   : > { %14711 = vmatmul.mubr.msk.f32.vlgmr.msra.gmra.mxu1 %vm9888_vm1, %v17596_v54  ;;  %v17874_v58 = vpop.permute.xlu0 %10752 }
 0x5b7   : > { %9885 = vrot.lane.b32.xlu1 %v17810_v23, %s19071_s20  ;;  %11147 = vrot.lane.b32.xlu0 %v17778_v9, %s19088_s17 }
 0x5b8   : > { %10053 = vmatprep.mubr.f32.mxu1 %v19070_v27 }
 0x5ba   : > { %14712 = vmatmul.mubr.msk.f32.gmra.mxu1 %vm9888_vm1, %v17588_v43  ;;  %v17882_v42 = vpop.permute.xlu0 %10947 }
 0x5bb   : > { %11440 = vrot.lane.b32.xlu1 %v17588_v43, %s19081_s30  ;;  %11343 = vrot.lane.b32.xlu0 %v17778_v9, %s19079_s2 }
 0x5bc   : > { %10239 = vmatprep.mubr.f32.mxu1 %v19070_v27 }
 0x5be   : > { %v17894_v14 = vpop.permute.xlu0 %10949 }
 0x5bf   : > { %10066 = vrot.lane.b32.xlu1 %v17810_v23, %s19085_s1  ;;  %11541 = vrot.lane.b32.xlu0 %v17778_v9, %s18928_s14  ;;  %s19090_s1 = smov 112   ;;  %s19091_s14 = smov 111  }
 0x5c2   : > { %v17902_v61 = vpop.permute.xlu0 %11143 }
 0x5c3   : > { %11640 = vrot.lane.b32.xlu1 %v17778_v9, %s19089_s27  ;;  %11537 = vrot.lane.b32.xlu0 %v17596_v54, %s15823_s25 }
 0x5c6   : > { %v17914_v28 = vpop.permute.xlu0 %11145 }
 0x5c7   : > { %10164 = vrot.lane.b32.xlu1 %v17810_v23, %s18952_s16  ;;  %10262 = vrot.lane.b32.xlu0 %v17810_v23, %s18955_s24  ;;  %s19092_s16 = smov 109  }
 0x5cb   : > { %11636 = vrot.lane.b32.xlu1 %v17596_v54, %s15824_s28  ;;  %11539 = vrot.lane.b32.xlu0 %v17588_v43, %s15823_s25  ;;  %s15826_s25 = smov 14  }
 0x5cf   : > { %10360 = vrot.lane.b32.xlu1 %v17810_v23, %s19090_s1  ;;  %10459 = vrot.lane.b32.xlu0 %v17810_v23, %s19091_s14  ;;  %s19094_s14 = smov 63  }
 0x5d3   : > { %11638 = vrot.lane.b32.xlu1 %v17588_v43, %s15824_s28  ;;  %11739 = vrot.lane.b32.xlu0 %v17778_v9, %s15825_s13  ;;  %s19093_s28 = smov 108  }
 0x5d7   : > { %10558 = vrot.lane.b32.xlu1 %v17810_v23, %s19076_s22  ;;  %10657 = vrot.lane.b32.xlu0 %v17810_v23, %s19092_s16  ;;  %s15827_s22 = smov 8   ;;  %s15828_s16 = smov 2  }
 0x5db   : > { %11838 = vrot.lane.b32.xlu1 %v17778_v9, %s19072_s23  ;;  %11735 = vrot.lane.b32.xlu0 %v17596_v54, %s15826_s25 }
 0x5df   : > { %10756 = vrot.lane.b32.xlu1 %v17810_v23, %s19093_s28  ;;  %10855 = vrot.lane.b32.xlu0 %v17810_v23, %s19068_s21  ;;  %s19106_s28 = sld [smem:[#allocation71_spill]] }
 0x5e3   : > { %11834 = vrot.lane.b32.xlu1 %v17596_v54, %s15827_s22  ;;  %11737 = vrot.lane.b32.xlu0 %v17588_v43, %s15826_s25  ;;  %s14906_s25 = sshll.u32 %s15923_s29, 4 }
 0x5e7   : > { %10953 = vrot.lane.b32.xlu1 %v17810_v23, %s19087_s19  ;;  %11051 = vrot.lane.b32.xlu0 %v17810_v23, %s19086_s5  ;;  %s18803_s19 = scalar_lea.hbm %s19106_s28, %s14906_s25 }
 0x5eb   : > { %11836 = vrot.lane.b32.xlu1 %v17588_v43, %s15827_s22  ;;  %11945 = vrot.lane.b32.xlu0 %v17778_v9, %s19094_s14 }
 0x5ef   : > { %11149 = vrot.lane.b32.xlu1 %v17810_v23, %s19088_s17  ;;  %11247 = vrot.lane.b32.xlu0 %v17810_v23, %s19077_s0  ;;  %s19095_s0 = smov 79   ;;  %s19096_s17 = smov 78  }
 0x5f3   : > { %11936 = vrot.lane.b32.xlu1 %v9872_v44, %s15828_s16  ;;  %11934 = vrot.lane.b32.xlu0 %v17596_v54, %s15828_s16  ;;  %v17921_v54 = vpop.permute.xlu0 %11339 }
 0x5f7   : > { %11345 = vrot.lane.b32.xlu1 %v17810_v23, %s19079_s2  ;;  %11444 = vrot.lane.b32.xlu0 %v17810_v23, %s19095_s0  ;;  %s15830_s2 = smov 24   ;;  %s15831_s0 = smov [#allocation4]  }
 0x5f8   : > { %s15712_s29 = sshll.u32 %s15831_s0, 4  ;;  %s15713_s29 = int_to_ptr.vmem [resolvable:$false] %s15712_s29 }
 0x5fb   : > { %11543 = vrot.lane.b32.xlu1 %v17810_v23, %s19096_s17  ;;  %12043 = vrot.lane.b32.xlu0 %v17778_v9, %s18953_s15  ;;  %s15714_s17 = scalar_lea.vmem %s15713_s29, 32 }
 0x5ff   : > { %11938 = vrot.lane.b32.xlu1 %v17588_v43, %s15828_s16  ;;  %11642 = vrot.lane.b32.xlu0 %v17810_v23, %s19089_s27  ;;  %v17934_v43 = vpop.permute.xlu0 %11341  ;;  %s19098_s27 = smov 60  }
 0x603   : > { %11741 = vrot.lane.b32.xlu1 %v17810_v23, %s15825_s13  ;;  %12039 = vrot.lane.b32.xlu0 %v9872_v44, %s18955_s24  ;;  %s19097_s13 = smov 61  }
 0x607   : > { %12041 = vrot.lane.b32.xlu1 %v9874_v35, %s18955_s24  ;;  %11840 = vrot.lane.b32.xlu0 %v17810_v23, %s19072_s23  ;;  %s15829_s24 = smov 118  }
 0x60b   : > { %11947 = vrot.lane.b32.xlu1 %v17810_v23, %s19094_s14  ;;  %11940 = vrot.lane.b32.xlu0 %v9874_v35, %s15828_s16  ;;  %s19107_s14 = smov %s19106_s28 }
 0x60d   : > { %v9884_v18 = vpop.permute.xlu0 %9883  ;;  %v10261_v5 = vpop.permute.xlu1 %10260 }
 0x60f   : > { %12045 = vrot.lane.b32.xlu1 %v17810_v23, %s18953_s15  ;;  %12141 = vrot.lane.b32.xlu0 %v17778_v9, %s19097_s13 }
 0x611   : > { %v10065_v39 = vpop.permute.xlu0 %10064  ;;  %v17944_v16 = vpop.permute.xlu1 %10457 }
 0x613   : > { %12239 = vrot.lane.b32.xlu1 %v17778_v9, %s19098_s27  ;;  %12137 = vrot.lane.b32.xlu0 %v9872_v44, %s15829_s24 }
 0x615   : > { %v10163_v21 = vpop.permute.xlu0 %10162  ;;  %v17948_v29 = vpop.permute.xlu1 %10655 }
 0x617   : > { %12143 = vrot.lane.b32.xlu1 %v17810_v23, %s19097_s13  ;;  %12241 = vrot.lane.b32.xlu0 %v17810_v23, %s19098_s27 }
 0x619   : > { %v10359_v36 = vpop.permute.xlu0 %10358  ;;  %v17954_v57 = vpop.permute.xlu1 %10853 }
 0x61b   : > { %12235 = vrot.lane.b32.xlu1 %v9872_v44, %s19090_s1  ;;  %12139 = vrot.lane.b32.xlu0 %v9874_v35, %s15829_s24 }
 0x61d   : > { %v17960_v7 = vpop.permute.xlu0 %10556  ;;  %v17962_v25 = vpop.permute.xlu1 %11049 }
 0x61f   : > { %12237 = vrot.lane.b32.xlu1 %v9874_v35, %s19090_s1  ;;  %12337 = vperm.xlu0 %15697, %v12333_v63  }
 0x621   : > { %v17968_v60 = vpop.permute.xlu0 %10754  ;;  %v17970_v47 = vpop.permute.xlu1 %11245 }
 0x623   : > { %12342 = vperm.xlu1 %15698, %v12334_v19  }
 0x625   : > { %v17972_v51 = vpop.permute.xlu0 %10951  ;;  %v17974_v1 = vpop.permute.xlu1 %11442 }
 0x629   : > { %v17976_v6 = vpop.permute.xlu0 %11147  ;;  %v9886_v3 = vpop.permute.xlu1 %9885 }
 0x62a   : > { %v9887_v10 = vsel %vm471_vm0, %v9884_v18, %v9886_v3  ;;  %14705 = vmatprep.subr.msk.mxu0 %vm9893_vm12, %v9886_v3 }
 0x62b   : > { %14706 = vmatpush1.msk.msra.mxu0 %vm9893_vm12, %v9887_v10 }
 0x62c   : > { %14707 = vmatmul.mubr.msk.f32.vlgmr.msra.gmra.mxu0 %vm9888_vm1, %v17737_v33 }
 0x62d   : > { %v17983_v56 = vpop.permute.xlu0 %11343  ;;  %v17985_v38 = vpop.permute.xlu1 %11440  ;;  %9968 = vmatprep.mubr.f32.mxu0 %v19070_v27 }
 0x630   : > { %14708 = vmatmul.mubr.msk.f32.gmra.mxu0 %vm9888_vm1, %v17741_v11 }
 0x631   : > { %v17990_v62 = vpop.permute.xlu0 %11541  ;;  %v10067_v49 = vpop.permute.xlu1 %10066  ;;  %10141 = vmatprep.mubr.f32.mxu0 %v19070_v27 }
 0x632   : > { %v10068_v0 = vsel %vm1103_vm3, %v10065_v39, %v10067_v49  ;;  %14713 = vmatprep.subr.msk.mxu0 %vm9893_vm12, %v10067_v49  ;;  %vm10461_vm3 = vcmask 908288  }
 0x633   : > { %14714 = vmatpush1.msk.msra.mxu0 %vm9893_vm12, %v10068_v0 }
 0x634   : > { %14715 = vmatmul.mubr.msk.f32.vlgmr.msra.gmra.mxu0 %vm9888_vm1, %v17745_v40 }
 0x635   : > { %v17998_v33 = vpop.permute.xlu0 %11537  ;;  %v18000_v12 = vpop.permute.xlu1 %11640  ;;  %10147 = vmatprep.mubr.f32.mxu0 %v19070_v27 }
 0x638   : > { %14716 = vmatmul.mubr.msk.f32.gmra.mxu0 %vm9888_vm1, %v17748_v31 }
 0x639   : > { %v10263_v11 = vpop.permute.xlu0 %10262  ;;  %v10165_v9 = vpop.permute.xlu1 %10164  ;;  %10337 = vmatprep.mubr.f32.mxu0 %v19070_v27 }
 0x63a   : > { %v10264_v26 = vsel %vm1775_vm5, %v10261_v5, %v10263_v11  ;;  %v10166_v17 = vsel %vm1439_vm4, %v10163_v21, %v10165_v9  ;;  %14717 = vmatprep.subr.msk.mxu1 %vm9893_vm12, %v10165_v9  ;;  %14721 = vmatprep.subr.msk.mxu0 %vm9893_vm12, %v10263_v11  ;;  %vm10362_vm4 = vcmask 916480   ;;  %vm10659_vm5 = vcmask 891904  }
 0x63b   : > { %14718 = vmatpush1.msk.msra.mxu1 %vm9893_vm12, %v10166_v17  ;;  %14722 = vmatpush1.msk.msra.mxu0 %vm9893_vm12, %v10264_v26 }
 0x63c   : > { %14719 = vmatmul.mubr.msk.f32.vlgmr.msra.gmra.mxu1 %vm9888_vm1, %v17750_v59  ;;  %14723 = vmatmul.mubr.msk.f32.vlgmr.msra.gmra.mxu0 %vm9888_vm1, %v17753_v8 }
 0x63d   : > { %v18016_v40 = vpop.permute.xlu0 %11539  ;;  %v18018_v31 = vpop.permute.xlu1 %11636  ;;  %10245 = vmatprep.mubr.f32.mxu1 %v19070_v27  ;;  %10343 = vmatprep.mubr.f32.mxu0 %v19070_v27 }
 0x640   : > { %14720 = vmatmul.mubr.msk.f32.gmra.mxu1 %vm9888_vm1, %v17756_v30  ;;  %14724 = vmatmul.mubr.msk.f32.gmra.mxu0 %vm9888_vm1, %v17759_v2 }
 0x641   : > { %v10460_v59 = vpop.permute.xlu0 %10459  ;;  %v10361_v13 = vpop.permute.xlu1 %10360  ;;  %10436 = vmatprep.mubr.f32.mxu1 %v19070_v27  ;;  %10535 = vmatprep.mubr.f32.mxu0 %v19070_v27 }
 0x642   : > { %v10462_v8 = vsel %vm10461_vm3, %v17944_v16, %v10460_v59  ;;  %v10363_v23 = vsel %vm10362_vm4, %v10359_v36, %v10361_v13  ;;  %14725 = vmatprep.subr.msk.mxu1 %vm9893_vm12, %v10361_v13  ;;  %14729 = vmatprep.subr.msk.mxu0 %vm9893_vm12, %v10460_v59  ;;  %vm19101_vm3 = vcmask 506880  }
 0x643   : > { %14726 = vmatpush1.msk.msra.mxu1 %vm9893_vm12, %v10363_v23  ;;  %14730 = vmatpush1.msk.msra.mxu0 %vm9893_vm12, %v10462_v8 }
 0x644   : > { %14727 = vmatmul.mubr.msk.f32.vlgmr.msra.gmra.mxu1 %vm9888_vm1, %v17761_v24  ;;  %14731 = vmatmul.mubr.msk.f32.vlgmr.msra.gmra.mxu0 %vm9888_vm1, %v17763_v34 }
 0x645   : > { %v18038_v30 = vpop.permute.xlu0 %11739  ;;  %v18040_v2 = vpop.permute.xlu1 %11638  ;;  %10442 = vmatprep.mubr.f32.mxu1 %v19070_v27  ;;  %10541 = vmatprep.mubr.f32.mxu0 %v19070_v27 }
 0x648   : > { %14728 = vmatmul.mubr.msk.f32.gmra.mxu1 %vm9888_vm1, %v17765_v53  ;;  %14732 = vmatmul.mubr.msk.f32.gmra.mxu0 %vm9888_vm1, %v17767_v37 }
 0x649   : > { %v10658_v24 = vpop.permute.xlu0 %10657  ;;  %v10559_v44 = vpop.permute.xlu1 %10558  ;;  %10634 = vmatprep.mubr.f32.mxu1 %v19070_v27  ;;  %10733 = vmatprep.mubr.f32.mxu0 %v19070_v27 }
 0x64a   : > { %v10660_v34 = vsel %vm10659_vm5, %v17948_v29, %v10658_v24  ;;  %v10561_v35 = vsel %vm10560_vm14, %v17960_v7, %v10559_v44  ;;  %14733 = vmatprep.subr.msk.mxu1 %vm9893_vm12, %v10559_v44  ;;  %14737 = vmatprep.subr.msk.mxu0 %vm9893_vm12, %v10658_v24  ;;  %vm19102_vm5 = vcmask 490496   ;;  %vm19103_vm14 = vcmask 498688  }
 0x64b   : > { %14734 = vmatpush1.msk.msra.mxu1 %vm9893_vm12, %v10561_v35  ;;  %14738 = vmatpush1.msk.msra.mxu0 %vm9893_vm12, %v10660_v34 }
 0x64c   : > { %14735 = vmatmul.mubr.msk.f32.vlgmr.msra.gmra.mxu1 %vm9888_vm1, %v17769_v20  ;;  %14739 = vmatmul.mubr.msk.f32.vlgmr.msra.gmra.mxu0 %vm9888_vm1, %v17771_v52 }
 0x64d   : > { %v18060_v53 = vpop.permute.xlu0 %11735  ;;  %v18062_v37 = vpop.permute.xlu1 %11838  ;;  %10640 = vmatprep.mubr.f32.mxu1 %v19070_v27  ;;  %10739 = vmatprep.mubr.f32.mxu0 %v19070_v27 }
 0x650   : > { %14736 = vmatmul.mubr.msk.f32.gmra.mxu1 %vm9888_vm1, %v17858_v4  ;;  %14740 = vmatmul.mubr.msk.f32.gmra.mxu0 %vm9888_vm1, %v17865_v32 }
 0x651   : > { %v10856_v18 = vpop.permute.xlu0 %10855  ;;  %v10757_v20 = vpop.permute.xlu1 %10756  ;;  %10832 = vmatprep.mubr.f32.mxu1 %v19070_v27  ;;  %10930 = vmatprep.mubr.f32.mxu0 %v19070_v27 }
 0x652   : > { %v10857_v52 = vsel %vm2111_vm6, %v17954_v57, %v10856_v18  ;;  %v10759_v5 = vsel %vm10758_vm15, %v17968_v60, %v10757_v20  ;;  %14741 = vmatprep.subr.msk.mxu1 %vm9893_vm12, %v10757_v20  ;;  %14745 = vmatprep.subr.msk.mxu0 %vm9893_vm12, %v10856_v18  ;;  %vm11446_vm6 = vcmask 646144   ;;  %vm12669_vm15 = vcmask 195712  }
 0x653   : > { %14742 = vmatpush1.msk.msra.mxu1 %vm9893_vm12, %v10759_v5  ;;  %14746 = vmatpush1.msk.msra.mxu0 %vm9893_vm12, %v10857_v52 }
 0x654   : > { %14743 = vmatmul.mubr.msk.f32.vlgmr.msra.gmra.mxu1 %vm9888_vm1, %v17863_v45  ;;  %14747 = vmatmul.mubr.msk.f32.vlgmr.msra.gmra.mxu0 %vm9888_vm1, %v17876_v22 }
 0x655   : > { %v18083_v4 = vpop.permute.xlu0 %11737  ;;  %v18085_v32 = vpop.permute.xlu1 %11834  ;;  %10838 = vmatprep.mubr.f32.mxu1 %v19070_v27  ;;  %10936 = vmatprep.mubr.f32.mxu0 %v19070_v27 }
 0x658   : > { %14744 = vmatmul.mubr.msk.f32.gmra.mxu1 %vm9888_vm1, %v17874_v58  ;;  %14748 = vmatmul.mubr.msk.f32.gmra.mxu0 %vm9888_vm1, %v17884_v46 }
 0x659   : > { %v11052_v39 = vpop.permute.xlu0 %11051  ;;  %v10954_v16 = vpop.permute.xlu1 %10953  ;;  %11028 = vmatprep.mubr.f32.mxu1 %v19070_v27  ;;  %11126 = vmatprep.mubr.f32.mxu0 %v19070_v27 }
 0x65a   : > { %v11053_v45 = vsel %vm2783_vm8, %v17962_v25, %v11052_v39  ;;  %v10955_v22 = vsel %vm2447_vm7, %v17972_v51, %v10954_v16  ;;  %14749 = vmatprep.subr.msk.mxu1 %vm9893_vm12, %v10954_v16  ;;  %14753 = vmatprep.subr.msk.mxu0 %vm9893_vm12, %v11052_v39  ;;  %vm11347_vm7 = vcmask 654336   ;;  %vm11545_vm8 = vcmask 637952  }
 0x65b   : > { %14750 = vmatpush1.msk.msra.mxu1 %vm9893_vm12, %v10955_v22  ;;  %14754 = vmatpush1.msk.msra.mxu0 %vm9893_vm12, %v11053_v45 }
 0x65c   : > { %14751 = vmatmul.mubr.msk.f32.vlgmr.msra.gmra.mxu1 %vm9888_vm1, %v17882_v42  ;;  %14755 = vmatmul.mubr.msk.f32.vlgmr.msra.gmra.mxu0 %vm9888_vm1, %v17896_v55 }
 0x65d   : > { %v18107_v58 = vpop.permute.xlu0 %11945  ;;  %v18109_v46 = vpop.permute.xlu1 %11836  ;;  %11034 = vmatprep.mubr.f32.mxu1 %v19070_v27  ;;  %11132 = vmatprep.mubr.f32.mxu0 %v19070_v27 }
 0x660   : > { %14752 = vmatmul.mubr.msk.f32.gmra.mxu1 %vm9888_vm1, %v17894_v14  ;;  %14756 = vmatmul.mubr.msk.f32.gmra.mxu0 %vm9888_vm1, %v17904_v15 }
 0x661   : > { %v11248_v21 = vpop.permute.xlu0 %11247  ;;  %v11150_v29 = vpop.permute.xlu1 %11149  ;;  %11224 = vmatprep.mubr.f32.mxu1 %v19070_v27  ;;  %11322 = vmatprep.mubr.f32.mxu0 %v19070_v27 }
 0x662   : > { %v11249_v42 = vsel %vm3455_vm10, %v17970_v47, %v11248_v21  ;;  %v11151_v55 = vsel %vm3119_vm9, %v17976_v6, %v11150_v29  ;;  %14757 = vmatprep.subr.msk.mxu1 %vm9893_vm12, %v11150_v29  ;;  %14761 = vmatprep.subr.msk.mxu0 %vm9893_vm12, %v11248_v21  ;;  %vm11644_vm9 = vcmask 629760   ;;  %vm11743_vm10 = vcmask 621568  }
 0x663   : > { %14758 = vmatpush1.msk.msra.mxu1 %vm9893_vm12, %v11151_v55  ;;  %14762 = vmatpush1.msk.msra.mxu0 %vm9893_vm12, %v11249_v42 }
 0x664   : > { %14759 = vmatmul.mubr.msk.f32.vlgmr.msra.gmra.mxu1 %vm9888_vm1, %v17902_v61  ;;  %14763 = vmatmul.mubr.msk.f32.vlgmr.msra.gmra.mxu0 %vm9888_vm1, %v17916_v41 }
 0x665   : > { %v18131_v14 = vpop.permute.xlu0 %11934  ;;  %v18133_v15 = vpop.permute.xlu1 %11936  ;;  %11230 = vmatprep.mubr.f32.mxu1 %v19070_v27  ;;  %11328 = vmatprep.mubr.f32.mxu0 %v19070_v27 }
 0x668   : > { %14760 = vmatmul.mubr.msk.f32.gmra.mxu1 %vm9888_vm1, %v17914_v28  ;;  %14764 = vmatmul.mubr.msk.f32.gmra.mxu0 %vm9888_vm1, %v17923_v50 }
 0x669   : > { %v11445_v61 = vpop.permute.xlu0 %11444  ;;  %v11346_v36 = vpop.permute.xlu1 %11345  ;;  %11421 = vmatprep.mubr.f32.mxu1 %v19070_v27  ;;  %11520 = vmatprep.mubr.f32.mxu0 %v19070_v27 }
 0x66a   : > { %v11447_v41 = vsel %vm11446_vm6, %v17974_v1, %v11445_v61  ;;  %v11348_v57 = vsel %vm11347_vm7, %v17983_v56, %v11346_v36  ;;  %14765 = vmatprep.subr.msk.mxu1 %vm9893_vm12, %v11346_v36  ;;  %14769 = vmatprep.subr.msk.mxu0 %vm9893_vm12, %v11445_v61  ;;  %vm12763_vm6 = vcmask 261312   ;;  %vm12855_vm7 = vcmask 326912  }
 0x66b   : > { %14766 = vmatpush1.msk.msra.mxu1 %vm9893_vm12, %v11348_v57  ;;  %14770 = vmatpush1.msk.msra.mxu0 %vm9893_vm12, %v11447_v41 }
 0x66c   : > { %14767 = vmatmul.mubr.msk.f32.vlgmr.msra.gmra.mxu1 %vm9888_vm1, %v17921_v54  ;;  %14771 = vmatmul.mubr.msk.f32.vlgmr.msra.gmra.mxu0 %vm9888_vm1, %v17936_v48 }
 0x66d   : > { %v12044_v28 = vpop.permute.xlu0 %12043  ;;  %v11544_v50 = vpop.permute.xlu1 %11543  ;;  %11427 = vmatprep.mubr.f32.mxu1 %v19070_v27  ;;  %11526 = vmatprep.mubr.f32.mxu0 %v19070_v27 }
 0x66e   : > { %v11546_v63 = vsel %vm11545_vm8, %v17990_v62, %v11544_v50  ;;  %14773 = vmatprep.subr.msk.mxu1 %vm9893_vm12, %v11544_v50  ;;  %v11943_v62 = vsel %vm11942_vm11, %v18131_v14, %v18133_v15  ;;  %vm12866_vm8 = vcmask 326656  }
 0x66f   : > { %14774 = vmatpush1.msk.msra.mxu1 %vm9893_vm12, %v11546_v63 }
 0x670   : > { %14768 = vmatmul.mubr.msk.f32.gmra.mxu1 %vm9888_vm1, %v17934_v43  ;;  %14772 = vmatmul.mubr.msk.f32.gmra.mxu0 %vm9888_vm1, %v17985_v38 }
 0x671   : > { %v11643_v54 = vpop.permute.xlu0 %11642  ;;  %v11939_v48 = vpop.permute.xlu1 %11938  ;;  %11619 = vmatprep.mubr.f32.mxu1 %v19070_v27  ;;  %11718 = vmatprep.mubr.f32.mxu0 %v19070_v27 }
 0x672   : > { %v11645_v7 = vsel %vm11644_vm9, %v18000_v12, %v11643_v54  ;;  %14777 = vmatprep.subr.msk.mxu0 %vm9893_vm12, %v11643_v54 }
 0x673   : > { %14778 = vmatpush1.msk.msra.mxu0 %vm9893_vm12, %v11645_v7 }
 0x674   : > { %14775 = vmatmul.mubr.msk.f32.vlgmr.msra.gmra.mxu1 %vm9888_vm1, %v17998_v33  ;;  %14779 = vmatmul.mubr.msk.f32.vlgmr.msra.gmra.mxu0 %vm9888_vm1, %v18018_v31 }
 0x675   : > { %v12040_v43 = vpop.permute.xlu0 %12039  ;;  %v11742_v25 = vpop.permute.xlu1 %11741  ;;  %11625 = vmatprep.mubr.f32.mxu1 %v19070_v27  ;;  %11724 = vmatprep.mubr.f32.mxu0 %v19070_v27 }
 0x676   : > { %v11744_v19 = vsel %vm11743_vm10, %v18038_v30, %v11742_v25  ;;  %14781 = vmatprep.subr.msk.mxu1 %vm9893_vm12, %v11742_v25  ;;  %v10049_v13 = vpop.f32.mrf.mxu1 }
 0x677   : > { %14782 = vmatpush1.msk.msra.mxu1 %vm9893_vm12, %v11744_v19 }
 0x678   : > { %14776 = vmatmul.mubr.msk.f32.gmra.mxu1 %vm9888_vm1, %v18016_v40  ;;  %14780 = vmatmul.mubr.msk.f32.gmra.mxu0 %vm9888_vm1, %v18040_v2  ;;  %v10051_v30 = vpop.f32.mrf.mxu1 }
 0x679   : > { %v11841_v60 = vpop.permute.xlu0 %11840  ;;  %v12042_v47 = vpop.permute.xlu1 %12041  ;;  %11817 = vmatprep.mubr.f32.mxu1 %v19070_v27  ;;  %11915 = vmatprep.mubr.f32.mxu0 %v19070_v27 }
 0x67a   : > { %v11842_v51 = vsel %vm19099_vm13, %v18062_v37, %v11841_v60  ;;  %14785 = vmatprep.subr.msk.mxu0 %vm9893_vm12, %v11841_v60  ;;  %v10055_v44 = vpop.f32.mrf.mxu1 }
 0x67b   : > { %14786 = vmatpush1.msk.msra.mxu0 %vm9893_vm12, %v11842_v51 }
 0x67c   : > { %14783 = vmatmul.mubr.msk.f32.vlgmr.msra.gmra.mxu1 %vm9888_vm1, %v18060_v53  ;;  %14787 = vmatmul.mubr.msk.f32.vlgmr.msra.gmra.mxu0 %vm9888_vm1, %v18085_v32  ;;  %v10057_v53 = vpop.f32.mrf.mxu1 }
 0x67d   : > { %v11941_v1 = vpop.permute.xlu0 %11940  ;;  %v11948_v6 = vpop.permute.xlu1 %11947  ;;  %11823 = vmatprep.mubr.f32.mxu1 %v19070_v27  ;;  %11921 = vmatprep.mubr.f32.mxu0 %v19070_v27 }
 0x67e   : > { %v11949_v3 = vsel %vm19100_vm2, %v18107_v58, %v11948_v6  ;;  %14789 = vmatprep.subr.msk.mxu1 %vm9893_vm12, %v11948_v6  ;;  %v11944_v33 = vsel %vm11942_vm11, %v11939_v48, %v11941_v1 }
 0x67f   : > { %14790 = vmatpush1.msk.msra.mxu1 %vm9893_vm12, %v11949_v3 }
 0x680   : > { %14784 = vmatmul.mubr.msk.f32.gmra.mxu1 %vm9888_vm1, %v18083_v4  ;;  %14788 = vmatmul.mubr.msk.f32.gmra.mxu0 %vm9888_vm1, %v18109_v46 }
 0x681   : > { %v12142_v10 = vpop.permute.xlu0 %12141  ;;  %v12046_v56 = vpop.permute.xlu1 %12045  ;;  %12022 = vmatprep.mubr.f32.mxu1 %v19070_v27  ;;  %12120 = vmatprep.mubr.f32.mxu0 %v19070_v27 }
 0x682   : > { %v12047_v38 = vsel %vm19101_vm3, %v12044_v28, %v12046_v56  ;;  %14793 = vmatprep.subr.msk.mxu0 %vm9893_vm12, %v12046_v56 }
 0x683   : > { %14794 = vmatpush1.msk.msra.mxu0 %vm9893_vm12, %v12047_v38 }
 0x684   : > { %14791 = vmatmul.mubr.msk.f32.vlgmr.msra.gmra.mxu1 %vm9888_vm1, %v11943_v62  ;;  %14795 = vmatmul.mubr.msk.f32.vlgmr.msra.gmra.mxu0 %vm9888_vm1, %v12040_v43 }
 0x685   : > { %v12138_v49 = vpop.permute.xlu0 %12137  ;;  %v12240_v0 = vpop.permute.xlu1 %12239  ;;  %12028 = vmatprep.mubr.f32.mxu1 %v19070_v27  ;;  %12126 = vmatprep.mubr.f32.mxu0 %v19070_v27 }
 0x688   : > { %14792 = vmatmul.mubr.msk.f32.gmra.mxu1 %vm9888_vm1, %v11944_v33  ;;  %14796 = vmatmul.mubr.msk.f32.gmra.mxu0 %vm9888_vm1, %v12042_v47 }
 0x689   : > { %v12242_v12 = vpop.permute.xlu0 %12241  ;;  %v12144_v11 = vpop.permute.xlu1 %12143  ;;  %12218 = vmatprep.mubr.f32.mxu1 %v19070_v27  ;;  %12316 = vmatprep.mubr.f32.mxu0 %v19070_v27 }
 0x68a   : > { %v12243_v9 = vsel %vm19102_vm5, %v12240_v0, %v12242_v12  ;;  %v12145_v26 = vsel %vm19103_vm14, %v12142_v10, %v12144_v11  ;;  %14797 = vmatprep.subr.msk.mxu1 %vm9893_vm12, %v12144_v11  ;;  %14801 = vmatprep.subr.msk.mxu0 %vm9893_vm12, %v12242_v12 }
 0x68b   : > { %14798 = vmatpush1.msk.msra.mxu1 %vm9893_vm12, %v12145_v26  ;;  %14802 = vmatpush1.msk.msra.mxu0 %vm9893_vm12, %v12243_v9  ;;  %vm12399_vm12 = vcmask 130048  }
 0x68c   : > { %14799 = vmatmul.mubr.msk.f32.vlgmr.msra.gmra.mxu1 %vm9888_vm1, %v12138_v49 }
 0x68d   : > { %v12236_v17 = vpop.permute.xlu1 %12235  ;;  %v12140_v40 = vpop.permute.xlu0 %12139  ;;  %12224 = vmatprep.mubr.f32.mxu1 %v19070_v27 }
 0x68e   : > { %14803 = vmatmul.mubr.msk.f32.vlgmr.msra.gmra.mxu0 %vm9888_vm1, %v12236_v17 }
 0x68f   : > { %12322 = vmatprep.mubr.f32.mxu0 %v19070_v27 }
 0x690   : > { %14800 = vmatmul.mubr.msk.f32.gmra.mxu1 %vm9888_vm1, %v12140_v40 }
 0x691   : > { %v12238_v31 = vpop.permute.xlu1 %12237 }
 0x692   : > { %14804 = vmatmul.mubr.msk.f32.gmra.mxu0 %vm9888_vm1, %v12238_v31  ;;  %vm12481_vm1 = vcmask 64512  }
 0x6ec   : > { %v9964_v59 = vpop.f32.mrf.mxu0 }
 0x6ed   : > { %v10050_v61 = vadd.f32 %v10049_v13, %v9964_v59 }
 0x6ee   : > { %v9966_v8 = vpop.f32.mrf.mxu0 }
 0x6ef   : > { %v10052_v57 = vadd.f32 %v10051_v30, %v9966_v8 }
 0x6f0   : > { %v9970_v23 = vpop.f32.mrf.mxu0 }
 0x6f1   : > { %v10056_v54 = vadd.f32 %v10055_v44, %v9970_v23 }
 0x6f2   : > { %v9972_v2 = vpop.f32.mrf.mxu0 }
 0x6f3   : > { %v10058_v19 = vadd.f32 %v10057_v53, %v9972_v2 }
 0x6f4   : > { %v10143_v24 = vpop.f32.mrf.mxu0 }
 0x6f5   : > { %v10154_v28 = vadd.f32 %v10143_v24, %v10050_v61 }
 0x6f6   : > { %v10145_v34 = vpop.f32.mrf.mxu0 }
 0x6f7   : > { %v10155_v48 = vadd.f32 %v10145_v34, %v10052_v57 }
 0x6f8   : > { %v10149_v35 = vpop.f32.mrf.mxu0 }
 0x6f9   : > { %v10156_v60 = vadd.f32 %v10149_v35, %v10056_v54 }
 0x6fa   : > { %v10151_v37 = vpop.f32.mrf.mxu0 }
 0x6fb   : > { %v10157_v6 = vadd.f32 %v10151_v37, %v10058_v19 }
 0x6fc   : > { %v10241_v18 = vpop.f32.mrf.mxu1  ;;  %v10339_v20 = vpop.f32.mrf.mxu0 }
 0x6fd   : > { %v10252_v7 = vadd.f32 %v10241_v18, %v10154_v28 }
 0x6fe   : > { %v10243_v52 = vpop.f32.mrf.mxu1  ;;  %v10341_v5 = vpop.f32.mrf.mxu0 }
 0x6ff   : > { %v10253_v47 = vadd.f32 %v10243_v52, %v10155_v48  ;;  %v10350_v3 = vadd.f32 %v10339_v20, %v10252_v7 }
 0x700   : > { %v10247_v4 = vpop.f32.mrf.mxu1  ;;  %v10345_v32 = vpop.f32.mrf.mxu0 }
 0x701   : > { %v10254_v10 = vadd.f32 %v10247_v4, %v10156_v60  ;;  %v10351_v62 = vadd.f32 %v10341_v5, %v10253_v47 }
 0x702   : > { %v10249_v39 = vpop.f32.mrf.mxu1  ;;  %v10347_v16 = vpop.f32.mrf.mxu0 }
 0x703   : > { %v10255_v49 = vadd.f32 %v10249_v39, %v10157_v6  ;;  %v10352_v11 = vadd.f32 %v10345_v32, %v10254_v10 }
 0x704   : > { %v10438_v45 = vpop.f32.mrf.mxu1  ;;  %v10537_v22 = vpop.f32.mrf.mxu0 }
 0x705   : > { %v10449_v0 = vadd.f32 %v10438_v45, %v10350_v3  ;;  %v10353_v40 = vadd.f32 %v10347_v16, %v10255_v49 }
 0x706   : > { %v10440_v58 = vpop.f32.mrf.mxu1  ;;  %v10539_v46 = vpop.f32.mrf.mxu0 }
 0x707   : > { %v10450_v9 = vadd.f32 %v10440_v58, %v10351_v62  ;;  %v10548_v31 = vadd.f32 %v10537_v22, %v10449_v0 }
 0x708   : > { %v10444_v21 = vpop.f32.mrf.mxu1  ;;  %v10543_v29 = vpop.f32.mrf.mxu0 }
 0x709   : > { %v10451_v59 = vadd.f32 %v10444_v21, %v10352_v11  ;;  %v10549_v23 = vadd.f32 %v10539_v46, %v10450_v9 }
 0x70a   : > { %v10446_v42 = vpop.f32.mrf.mxu1  ;;  %v10545_v55 = vpop.f32.mrf.mxu0 }
 0x70b   : > { %v10452_v30 = vadd.f32 %v10446_v42, %v10353_v40  ;;  %v10550_v34 = vadd.f32 %v10543_v29, %v10451_v59 }
 0x70c   : > { %v10636_v14 = vpop.f32.mrf.mxu1  ;;  %v10735_v15 = vpop.f32.mrf.mxu0 }
 0x70d   : > { %v10647_v2 = vadd.f32 %v10636_v14, %v10548_v31  ;;  %v10551_v18 = vadd.f32 %v10545_v55, %v10452_v30 }
 0x70e   : > { %v10638_v36 = vpop.f32.mrf.mxu1  ;;  %v10737_v41 = vpop.f32.mrf.mxu0 }
 0x70f   : > { %v10648_v35 = vadd.f32 %v10638_v36, %v10549_v23  ;;  %v10746_v20 = vadd.f32 %v10735_v15, %v10647_v2 }
 0x710   : > { %v10642_v50 = vpop.f32.mrf.mxu1  ;;  %v10741_v63 = vpop.f32.mrf.mxu0 }
 0x711   : > { %v10649_v52 = vadd.f32 %v10642_v50, %v10550_v34  ;;  %v10747_v32 = vadd.f32 %v10737_v41, %v10648_v35 }
 0x712   : > { %v10644_v43 = vpop.f32.mrf.mxu1  ;;  %v10743_v25 = vpop.f32.mrf.mxu0 }
 0x713   : > { %v10650_v39 = vadd.f32 %v10644_v43, %v10551_v18  ;;  %v10748_v58 = vadd.f32 %v10741_v63, %v10649_v52 }
 0x714   : > { %v10834_v51 = vpop.f32.mrf.mxu1  ;;  %v10932_v1 = vpop.f32.mrf.mxu0 }
 0x715   : > { %v10845_v16 = vadd.f32 %v10834_v51, %v10746_v20  ;;  %v10749_v14 = vadd.f32 %v10743_v25, %v10650_v39 }
 0x716   : > { %v10836_v56 = vpop.f32.mrf.mxu1  ;;  %v10934_v38 = vpop.f32.mrf.mxu0 }
 0x717   : > { %v10846_v46 = vadd.f32 %v10836_v56, %v10747_v32  ;;  %v10943_v61 = vadd.f32 %v10932_v1, %v10845_v16 }
 0x718   : > { %v10840_v33 = vpop.f32.mrf.mxu1  ;;  %v10938_v12 = vpop.f32.mrf.mxu0 }
 0x719   : > { %v10847_v29 = vadd.f32 %v10840_v33, %v10748_v58  ;;  %v10944_v28 = vadd.f32 %v10934_v38, %v10846_v46 }
 0x71a   : > { %v10842_v26 = vpop.f32.mrf.mxu1  ;;  %v10940_v17 = vpop.f32.mrf.mxu0 }
 0x71b   : > { %v10848_v55 = vadd.f32 %v10842_v26, %v10749_v14  ;;  %v10945_v48 = vadd.f32 %v10938_v12, %v10847_v29 }
 0x71c   : > { %v11030_v13 = vpop.f32.mrf.mxu1  ;;  %v11128_v8 = vpop.f32.mrf.mxu0 }
 0x71d   : > { %v11041_v15 = vadd.f32 %v11030_v13, %v10943_v61  ;;  %v10946_v19 = vadd.f32 %v10940_v17, %v10848_v55 }
 0x71e   : > { %v11032_v24 = vpop.f32.mrf.mxu1  ;;  %v11130_v44 = vpop.f32.mrf.mxu0 }
 0x71f   : > { %v11042_v41 = vadd.f32 %v11032_v24, %v10944_v28  ;;  %v11139_v60 = vadd.f32 %v11128_v8, %v11041_v15 }
 0x720   : > { %v11036_v53 = vpop.f32.mrf.mxu1  ;;  %v11134_v37 = vpop.f32.mrf.mxu0 }
 0x721   : > { %v11043_v63 = vadd.f32 %v11036_v53, %v10945_v48  ;;  %v11140_v6 = vadd.f32 %v11130_v44, %v11042_v41 }
 0x722   : > { %v11038_v5 = vpop.f32.mrf.mxu1  ;;  %v11136_v4 = vpop.f32.mrf.mxu0 }
 0x723   : > { %v11044_v25 = vadd.f32 %v11038_v5, %v10946_v19  ;;  %v11141_v56 = vadd.f32 %v11134_v37, %v11043_v63 }
 0x724   : > { %v11226_v45 = vpop.f32.mrf.mxu1  ;;  %v11324_v22 = vpop.f32.mrf.mxu0 }
 0x725   : > { %v11237_v1 = vadd.f32 %v11226_v45, %v11139_v60  ;;  %v11142_v0 = vadd.f32 %v11136_v4, %v11044_v25 }
 0x726   : > { %v11228_v21 = vpop.f32.mrf.mxu1  ;;  %v11326_v42 = vpop.f32.mrf.mxu0 }
 0x727   : > { %v11238_v38 = vadd.f32 %v11228_v21, %v11140_v6  ;;  %v11335_v33 = vadd.f32 %v11324_v22, %v11237_v1 }
 0x728   : > { %v11232_v36 = vpop.f32.mrf.mxu1  ;;  %v11330_v57 = vpop.f32.mrf.mxu0 }
 0x729   : > { %v11239_v12 = vadd.f32 %v11232_v36, %v11141_v56  ;;  %v11336_v26 = vadd.f32 %v11326_v42, %v11238_v38 }
 0x72a   : > { %v11234_v50 = vpop.f32.mrf.mxu1  ;;  %v11332_v54 = vpop.f32.mrf.mxu0 }
 0x72b   : > { %v11240_v17 = vadd.f32 %v11234_v50, %v11142_v0  ;;  %v11337_v13 = vadd.f32 %v11330_v57, %v11239_v12  ;;  %v12338_v12 = vpop.permute.xlu0 %12337 }
 0x72c   : > { %v11423_v7 = vpop.f32.mrf.mxu1  ;;  %v11522_v43 = vpop.f32.mrf.mxu0 }
 0x72d   : > { %v11434_v40 = vadd.f32 %v11423_v7, %v11335_v33  ;;  %v11338_v2 = vadd.f32 %v11332_v54, %v11240_v17 }
 0x72e   : > { %v11425_v47 = vpop.f32.mrf.mxu1  ;;  %v11524_v51 = vpop.f32.mrf.mxu0 }
 0x72f   : > { %v11435_v8 = vadd.f32 %v11425_v47, %v11336_v26  ;;  %v11533_v24 = vadd.f32 %v11522_v43, %v11434_v40 }
 0x730   : > { %v11429_v3 = vpop.f32.mrf.mxu1  ;;  %v11528_v10 = vpop.f32.mrf.mxu0 }
 0x731   : > { %v11436_v44 = vadd.f32 %v11429_v3, %v11337_v13  ;;  %v11534_v53 = vadd.f32 %v11524_v51, %v11435_v8 }
 0x732   : > { %v11431_v62 = vpop.f32.mrf.mxu1  ;;  %v11530_v49 = vpop.f32.mrf.mxu0 }
 0x733   : > { %v11437_v37 = vadd.f32 %v11431_v62, %v11338_v2  ;;  %v11535_v5 = vadd.f32 %v11528_v10, %v11436_v44 }
 0x734   : > { %v11621_v11 = vpop.f32.mrf.mxu1  ;;  %v11720_v9 = vpop.f32.mrf.mxu0 }
 0x735   : > { %v11632_v18 = vadd.f32 %v11621_v11, %v11533_v24  ;;  %v11536_v16 = vadd.f32 %v11530_v49, %v11437_v37 }
 0x736   : > { %v11623_v31 = vpop.f32.mrf.mxu1  ;;  %v11722_v59 = vpop.f32.mrf.mxu0 }
 0x737   : > { %v11633_v4 = vadd.f32 %v11623_v31, %v11534_v53  ;;  %v11731_v45 = vadd.f32 %v11720_v9, %v11632_v18 }
 0x738   : > { %v11627_v23 = vpop.f32.mrf.mxu1  ;;  %v11726_v30 = vpop.f32.mrf.mxu0 }
 0x739   : > { %v11634_v22 = vadd.f32 %v11627_v23, %v11535_v5  ;;  %v11732_v21 = vadd.f32 %v11722_v59, %v11633_v4  ;;  %v12343_v23 = vpop.permute.xlu1 %12342 }
 0x73a   : > { %v11629_v34 = vpop.f32.mrf.mxu1  ;;  %v11728_v35 = vpop.f32.mrf.mxu0 }
 0x73b   : > { %v11635_v42 = vadd.f32 %v11629_v34, %v11536_v16  ;;  %v11733_v36 = vadd.f32 %v11726_v30, %v11634_v22 }
 0x73c   : > { %v11819_v20 = vpop.f32.mrf.mxu1  ;;  %v11917_v52 = vpop.f32.mrf.mxu0 }
 0x73d   : > { %v11830_v14 = vadd.f32 %v11819_v20, %v11731_v45  ;;  %v11734_v15 = vadd.f32 %v11728_v35, %v11635_v42 }
 0x73e   : > { %v11821_v32 = vpop.f32.mrf.mxu1  ;;  %v11919_v39 = vpop.f32.mrf.mxu0 }
 0x73f   : > { %v11831_v57 = vadd.f32 %v11821_v32, %v11732_v21  ;;  %v11928_v50 = vadd.f32 %v11917_v52, %v11830_v14  ;;  %v12398_v32 = vld [vmem:[%s18844_s6 + $0x8] sm:$0xff] }
 0x740   : > { %v11825_v58 = vpop.f32.mrf.mxu1  ;;  %v11923_v46 = vpop.f32.mrf.mxu0  ;;  %15283 = vmatprep.subr.mxu1 %v12398_v32  ;;  %15297 = vmatprep.subr.mxu0 %v12398_v32 }
 0x741   : > { %v11832_v54 = vadd.f32 %v11825_v58, %v11733_v36  ;;  %v11929_v7 = vadd.f32 %v11919_v39, %v11831_v57  ;;  %15284 = vmatpush3.msra.mxu1 %v12398_v32  ;;  %v12397_v39 = vld [vmem:[%s18844_s6] sm:$0xff]  ;;  %15298 = vmatpush3.msra.mxu0 %v12398_v32 }
 0x742   : > { %v11827_v61 = vpop.f32.mrf.mxu1  ;;  %v11925_v29 = vpop.f32.mrf.mxu0  ;;  %15285 = vmatprep.subr.mxu1 %v12397_v39  ;;  %15299 = vmatprep.subr.mxu0 %v12397_v39 }
 0x743   : > { %v11833_v43 = vadd.f32 %v11827_v61, %v11734_v15  ;;  %v11930_v47 = vadd.f32 %v11923_v46, %v11832_v54  ;;  %15286 = vmatpush3.msra.mxu1 %v12397_v39  ;;  %15300 = vmatpush3.msra.mxu0 %v12397_v39 }
 0x744   : > { %v12024_v28 = vpop.f32.mrf.mxu1  ;;  %v12122_v55 = vpop.f32.mrf.mxu0  ;;  %15290 = vmatprep.subr.mxu1 %v12398_v32  ;;  %15311 = vmatprep.subr.mxu0 %v12398_v32 }
 0x745   : > { %v12035_v19 = vadd.f32 %v12024_v28, %v11928_v50  ;;  %v11931_v25 = vadd.f32 %v11925_v29, %v11833_v43 }
 0x746   : > { %v12026_v48 = vpop.f32.mrf.mxu1  ;;  %v12124_v41 = vpop.f32.mrf.mxu0 }
 0x747   : > { %v12036_v51 = vadd.f32 %v12026_v48, %v11929_v7  ;;  %v12133_v1 = vadd.f32 %v12122_v55, %v12035_v19 }
 0x748   : > { %v12030_v60 = vpop.f32.mrf.mxu1  ;;  %v12128_v63 = vpop.f32.mrf.mxu0 }
 0x749   : > { %v12037_v3 = vadd.f32 %v12030_v60, %v11930_v47  ;;  %v12134_v38 = vadd.f32 %v12124_v41, %v12036_v51 }
 0x74a   : > { %v12032_v6 = vpop.f32.mrf.mxu1  ;;  %v12130_v10 = vpop.f32.mrf.mxu0 }
 0x74b   : > { %v12038_v62 = vadd.f32 %v12032_v6, %v11931_v25  ;;  %v12135_v11 = vadd.f32 %v12128_v63, %v12037_v3  ;;  %v12864_v3 = vld [vmem:[%s18845_s7 + $0x18] sm:$0xff] }
 0x74c   : > { %v12220_v56 = vpop.f32.mrf.mxu1 }
 0x74d   : > { %v12231_v49 = vadd.f32 %v12220_v56, %v12133_v1  ;;  %v12136_v31 = vadd.f32 %v12130_v10, %v12038_v62  ;;  %v12865_v1 = vld [vmem:[%s18845_s7 + $0x20] sm:$0xff]  ;;  %v14820_v10 = vld [vmem:[%s18845_s7 + $0x48] sm:$0xff]  ;;  %v12863_v62 = vld [vmem:[%s18845_s7 + $0x10] sm:$0xff] }
 0x74e   : > { %v12222_v0 = vpop.f32.mrf.mxu1  ;;  %v12318_v33 = vpop.f32.mrf.mxu0  ;;  %v14819_v56 = vld [vmem:[%s18845_s7 + $0x40] sm:$0xff] }
 0x74f   : > { %v12232_v9 = vadd.f32 %v12222_v0, %v12134_v38  ;;  %v12329_v26 = vadd.f32 %v12318_v33, %v12231_v49  ;;  %v12862_v0 = vld [vmem:[%s18845_s7 + $0x8] sm:$0xff]  ;;  %v14818_v33 = vld [vmem:[%s18845_s7 + $0x38] sm:$0xff] }
 0x750   : > { %v12226_v17 = vpop.f32.mrf.mxu1  ;;  %v12320_v40 = vpop.f32.mrf.mxu0 }
 0x751   : > { %v12345_v59 = vadd.f32 %v12338_v12, %v12329_v26  ;;  %v12233_v13 = vadd.f32 %v12226_v17, %v12135_v11  ;;  %v12330_v8 = vadd.f32 %v12320_v40, %v12232_v9  ;;  %v14817_v11 = vld [vmem:[%s18845_s7 + $0x30] sm:$0xff]  ;;  %v12861_v9 = vld [vmem:[%s18845_s7] sm:$0xff]  ;;  %v14816_v17 = vld [vmem:[%s18845_s7 + $0x28] sm:$0xff] }
 0x752   : > { %v12228_v30 = vpop.f32.mrf.mxu1  ;;  %v12324_v2 = vpop.f32.mrf.mxu0 }
 0x753   : > { %v12349_v24 = vmax.f32 %v12345_v59, 0.0  ;;  %v12346_v44 = vadd.f32 %v12338_v12, %v12330_v8  ;;  %v12234_v34 = vadd.f32 %v12228_v30, %v12136_v31  ;;  %v12331_v35 = vadd.f32 %v12324_v2, %v12233_v13 }
 0x754   : > { %v12326_v53 = vpop.f32.mrf.mxu0 }
 0x755   : > { %v12350_v37 = vmax.f32 %v12346_v44, 0.0  ;;  %v12332_v18 = vadd.f32 %v12326_v53, %v12234_v34  ;;  %v12347_v20 = vadd.f32 %v12343_v23, %v12331_v35  ;;  %12357 = vrot.lane.b32.xlu0 %v12349_v24, %s19090_s1  ;;  %v14826_v53 = vld [vmem:[%s18845_s7 + $0x70] sm:$0xff] }
 0x757   : > { %v12348_v52 = vadd.f32 %v12343_v23, %v12332_v18  ;;  %v12351_v5 = vmax.f32 %v12347_v20, 0.0  ;;  %12359 = vrot.lane.b32.xlu1 %v12350_v37, %s19090_s1  ;;  %v14825_v20 = vld [vmem:[%s18845_s7 + $0x68] sm:$0xff] }
 0x759   : > { %v12352_v4 = vmax.f32 %v12348_v52, 0.0  ;;  %12361 = vrot.lane.b32.xlu0 %v12351_v5, %s19090_s1  ;;  %v14832_v52 = vld [vmem:[%s18845_s7 + $0x98] sm:$0xff] }
 0x75b   : > { %12363 = vrot.lane.b32.xlu1 %v12352_v4, %s19090_s1 }
 0x7c7   : > { %v12358_v16 = vpop.permute.xlu0 %12357 }
 0x7c9   : > { %v12360_v45 = vpop.permute.xlu1 %12359 }
 0x7ca   : > { %v12365_v22 = vsel %vm10362_vm4, %v12358_v16, %v12360_v45  ;;  %v12372_v58 = vmax.f32 %v12350_v37, %v12360_v45  ;;  %v14822_v16 = vld [vmem:[%s18845_s7 + $0x50] sm:$0xff]  ;;  %v14829_v45 = vld [vmem:[%s18845_s7 + $0x80] sm:$0xff] }
 0x7cb   : > { %v12371_v46 = vmax.f32 %v12349_v24, %v12365_v22  ;;  %v12362_v21 = vpop.permute.xlu0 %12361 }
 0x7cc   : > { %12381 = vrot.lane.b32.xlu1 %v12372_v58, %s19071_s20 }
 0x7cd   : > { %12379 = vrot.lane.b32.xlu0 %v12371_v46, %s19071_s20  ;;  %v12364_v42 = vpop.permute.xlu1 %12363 }
 0x7ce   : > { %v12366_v14 = vsel %vm10362_vm4, %v12362_v21, %v12364_v42  ;;  %v12374_v61 = vmax.f32 %v12352_v4, %v12364_v42  ;;  %vm12575_vm4 = vcmask 130112   ;;  %v14831_v4 = vld [vmem:[%s18845_s7 + $0x90] sm:$0xff]  ;;  %v14837_v42 = vld [vmem:[%s18845_s7 + $0xb8] sm:$0xff] }
 0x7cf   : > { %v12373_v29 = vmax.f32 %v12351_v5, %v12366_v14  ;;  %v14824_v5 = vld [vmem:[%s18845_s7 + $0x60] sm:$0xff]  ;;  %v14844_v14 = vld [vmem:[%s18845_s7 + $0xe8] sm:$0xff] }
 0x7d0   : > { %12385 = vrot.lane.b32.xlu1 %v12374_v61, %s19071_s20 }
 0x7d1   : > { %12383 = vrot.lane.b32.xlu0 %v12373_v29, %s19071_s20  ;;  %s19105_s20 = smov 16  }
 0x83e   : > { %v12382_v36 = vpop.permute.xlu1 %12381 }
 0x83f   : > { %v12380_v57 = vpop.permute.xlu0 %12379  ;;  %v12394_v19 = vmax.f32 %v12372_v58, %v12382_v36  ;;  %v14828_v58 = vld [vmem:[%s18845_s7 + $0x78] sm:$0xff] }
 0x840   : > { %v12387_v28 = vsel %vm471_vm0, %v12380_v57, %v12382_v36  ;;  %v14835_v36 = vld [vmem:[%s18845_s7 + $0xa8] sm:$0xff]  ;;  %v14842_v57 = vld [vmem:[%s18845_s7 + $0xd8] sm:$0xff] }
 0x841   : > { %v12393_v55 = vmax.f32 %v12371_v46, %v12387_v28  ;;  %v14838_v46 = vld [vmem:[%s18845_s7 + $0xc0] sm:$0xff] }
 0x842   : > { %v12386_v15 = vpop.permute.xlu1 %12385  ;;  %v14834_v28 = vld [vmem:[%s18845_s7 + $0xa0] sm:$0xff] }
 0x843   : > { %v12384_v50 = vpop.permute.xlu0 %12383  ;;  %12484 = vrot.lane.b32.xlu0 %v12393_v55, %s19068_s21  ;;  %15287 = vmatprep.mubr.msk.f32.mxu1 %vm12399_vm12, %v12393_v55  ;;  %v12396_v47 = vmax.f32 %v12374_v61, %v12386_v15  ;;  %v14836_v61 = vld [vmem:[%s18845_s7 + $0xb0] sm:$0xff] }
 0x844   : > { %v12388_v54 = vsel %vm471_vm0, %v12384_v50, %v12386_v15  ;;  %vm19104_vm0 = vmmov 0   ;;  %v14840_v50 = vld [vmem:[%s18845_s7 + $0xc8] sm:$0xff] }
 0x845   : > { %v12395_v48 = vmax.f32 %v12373_v29, %v12388_v54  ;;  %v14843_v29 = vld [vmem:[%s18845_s7 + $0xe0] sm:$0xff]  ;;  %v14850_v54 = vld [vmem:[%s18845_s7 + $0x110] sm:$0xff] }
 0x847   : > { %12578 = vrot.lane.b32.xlu0 %v12393_v55, %s19072_s23  ;;  %12486 = vrot.lane.b32.xlu1 %v12395_v48, %s19068_s21 }
 0x848   : > { %15288 = vmatmul.mubr.msk.f32.vlgmr.msra.gmra.mxu1 %vm12399_vm12, %v12395_v48 }
 0x849   : > { %15291 = vmatpush3.msra.mxu1 %v12398_v32 }
 0x84a   : > { %15292 = vmatprep.subr.mxu1 %v12397_v39 }
 0x84b   : > { %12672 = vrot.lane.b32.xlu0 %v12393_v55, %s19081_s30  ;;  %12580 = vrot.lane.b32.xlu1 %v12395_v48, %s19072_s23  ;;  %v14841_v55 = vld [vmem:[%s18845_s7 + $0xd0] sm:$0xff] }
 0x84c   : > { %15293 = vmatpush3.msra.mxu1 %v12397_v39 }
 0x84d   : > { %15304 = vmatprep.subr.mxu1 %v12398_v32 }
 0x84f   : > { %12674 = vrot.lane.b32.xlu1 %v12395_v48, %s19081_s30 }
 0x8b5   : > { %v12485_v41 = vpop.permute.xlu0 %12484 }
 0x8b6   : > { %15294 = vmatprep.mubr.msk.f32.mxu1 %vm12399_vm12, %v12485_v41  ;;  %v14849_v41 = vld [vmem:[%s18845_s7 + $0x108] sm:$0xff] }
 0x8b9   : > { %v12579_v7 = vpop.permute.xlu0 %12578  ;;  %v12487_v43 = vpop.permute.xlu1 %12486 }
 0x8ba   : > { %15295 = vmatmul.mubr.msk.f32.vlgmr.msra.gmra.mxu1 %vm12399_vm12, %v12487_v43  ;;  %15301 = vmatprep.mubr.msk.f32.mxu0 %vm12399_vm12, %v12579_v7  ;;  %v14856_v7 = vld [vmem:[%s18845_s7 + $0x138] sm:$0xff]  ;;  %v14848_v43 = vld [vmem:[%s18845_s7 + $0x100] sm:$0xff] }
 0x8bb   : > { %15305 = vmatpush3.msra.mxu1 %v12398_v32 }
 0x8bc   : > { %15306 = vmatprep.subr.mxu1 %v12397_v39 }
 0x8bd   : > { %v12673_v60 = vpop.permute.xlu0 %12672  ;;  %v12581_v63 = vpop.permute.xlu1 %12580  ;;  %15307 = vmatpush3.msra.mxu1 %v12397_v39 }
 0x8be   : > { %15302 = vmatmul.mubr.msk.f32.vlgmr.msra.gmra.mxu0 %vm12399_vm12, %v12581_v63  ;;  %15308 = vmatprep.mubr.msk.f32.mxu1 %vm12399_vm12, %v12673_v60  ;;  %v14847_v60 = vld [vmem:[%s18845_s7 + $0xf8] sm:$0xff]  ;;  %v14854_v63 = vld [vmem:[%s18845_s7 + $0x128] sm:$0xff] }
 0x8bf   : > { %15312 = vmatpush3.msra.mxu0 %v12398_v32  ;;  %15315 = vmatprep.mubr.msk.f32.mxu0 %vm12399_vm12, %v12394_v19  ;;  %v14823_v32 = vld [vmem:[%s18845_s7 + $0x58] sm:$0xff]  ;;  %v14855_v19 = vld [vmem:[%s18845_s7 + $0x130] sm:$0xff] }
 0x8c0   : > { %15313 = vmatprep.subr.mxu0 %v12397_v39  ;;  %15318 = vmatprep.subr.mxu1 %v19070_v27 }
 0x8c1   : > { %15314 = vmatpush3.msra.mxu0 %v12397_v39  ;;  %v12675_v51 = vpop.permute.xlu1 %12674  ;;  %v14830_v39 = vld [vmem:[%s18845_s7 + $0x88] sm:$0xff] }
 0x8c2   : > { %15309 = vmatmul.mubr.msk.f32.vlgmr.msra.gmra.mxu1 %vm12399_vm12, %v12675_v51  ;;  %15316 = vmatmul.mubr.msk.f32.vlgmr.msra.gmra.mxu0 %vm12399_vm12, %v12396_v47  ;;  %v14846_v47 = vld [vmem:[%s18845_s7 + $0xf0] sm:$0xff]  ;;  %v14853_v51 = vld [vmem:[%s18845_s7 + $0x120] sm:$0xff] }
 0x8c3   : > { %15331 = vmatprep.subr.mxu0 %v19070_v27  ;;  %15328 = vmatprep.mubr.msk.f32.mxu1 %vm19104_vm0, %v19070_v27 }
 0x8c4   : > { %15341 = vmatprep.mubr.msk.f32.mxu0 %vm19104_vm0, %v19070_v27  ;;  %15319 = vmatpush3.msra.mxu1 %v12865_v1  ;;  %v14862_v1 = vld [vmem:[%s18845_s7 + $0x160] sm:$0xff] }
 0x8c5   : > { %15320 = vmatprep.subr.mxu1 %v19070_v27  ;;  %15332 = vmatpush3.msra.mxu0 %v14820_v10  ;;  %v14861_v10 = vld [vmem:[%s18845_s7 + $0x158] sm:$0xff] }
 0x8c6   : > { %15321 = vmatpush3.msra.mxu1 %v12864_v3  ;;  %15333 = vmatprep.subr.mxu0 %v19070_v27 }
 0x8c7   : > { %15322 = vmatprep.subr.mxu1 %v19070_v27  ;;  %15334 = vmatpush3.msra.mxu0 %v14819_v56  ;;  %v14868_v56 = vld [vmem:[%s18845_s7 + $0x188] sm:$0xff] }
 0x8c8   : > { %15323 = vmatpush3.msra.mxu1 %v12863_v62  ;;  %15335 = vmatprep.subr.mxu0 %v19070_v27  ;;  %v14867_v62 = vld [vmem:[%s18845_s7 + $0x180] sm:$0xff] }
 0x8c9   : > { %15324 = vmatprep.subr.mxu1 %v19070_v27  ;;  %15336 = vmatpush3.msra.mxu0 %v14818_v33  ;;  %v14858_v33 = vld [vmem:[%s18845_s7 + $0x140] sm:$0xff] }
 0x8ca   : > { %15325 = vmatpush3.msra.mxu1 %v12862_v0  ;;  %15337 = vmatprep.subr.mxu0 %v19070_v27  ;;  %v14866_v0 = vld [vmem:[%s18845_s7 + $0x178] sm:$0xff] }
 0x8cb   : > { %15326 = vmatprep.subr.mxu1 %v19070_v27  ;;  %15338 = vmatpush3.msra.mxu0 %v14817_v11 }
 0x8cc   : > { %15327 = vmatpush3.msra.mxu1 %v12861_v9  ;;  %15339 = vmatprep.subr.mxu0 %v19070_v27  ;;  %v14864_v9 = vld [vmem:[%s18845_s7 + $0x168] sm:$0xff] }
 0x8cd   : > { %15344 = vmatprep.subr.mxu1 %v19070_v27  ;;  %15340 = vmatpush3.msra.mxu0 %v14816_v17 }
 0x8ce   : > { %15357 = vmatprep.subr.mxu0 %v19070_v27 }
 0x908   : > { %v15289_v6 = vpop.f32.mrf.mxu1 }
 0x909   : > { %12483 = vst.msk [vmem:[#allocation3 + $0x8] sm:$0xff] %vm12481_vm1, %v15289_v6 }
 0x90a   : > { %v12472_v25 = vpop.f32.mrf.mxu1 }
 0x90b   : > { %12482 = vst.msk [vmem:[#allocation3] sm:$0xff] %vm12481_vm1, %v12472_v25  ;;  %v14852_v25 = vld [vmem:[%s18845_s7 + $0x118] sm:$0xff] }
 0x97a   : > { %v15296_v38 = vpop.f32.mrf.mxu1 }
 0x97c   : > { %v12558_v49 = vpop.f32.mrf.mxu1 }
 0x97d   : > { %12569 = vrot.lane.b32.xlu0 %v12558_v49, %s15827_s22  ;;  %v14859_v49 = vld [vmem:[%s18845_s7 + $0x148] sm:$0xff] }
 0x97e   : > { %v15303_v12 = vpop.f32.mrf.mxu0 }
 0x980   : > { %v12652_v26 = vpop.f32.mrf.mxu0 }
 0x981   : > { %12663 = vrot.lane.b32.xlu1 %v12652_v26, %s19105_s20  ;;  %v14874_v26 = vld [vmem:[%s18845_s7 + $0x1b0] sm:$0xff] }
 0x982   : > { %v15310_v40 = vpop.f32.mrf.mxu1  ;;  %v15317_v31 = vpop.f32.mrf.mxu0 }
 0x984   : > { %v12746_v59 = vpop.f32.mrf.mxu1  ;;  %v12838_v13 = vpop.f32.mrf.mxu0 }
 0x985   : > { %12849 = vrot.lane.b32.xlu1 %v12838_v13, %s19081_s30  ;;  %12757 = vrot.lane.b32.xlu0 %v12746_v59, %s15830_s2  ;;  %v14872_v59 = vld [vmem:[%s18845_s7 + $0x1a0] sm:$0xff]  ;;  %v14879_v13 = vld [vmem:[%s18845_s7 + $0x1d0] sm:$0xff] }
 0x989   : > { %12665 = vrot.lane.b32.xlu1 %v15303_v12, %s19105_s20  ;;  %12571 = vrot.lane.b32.xlu0 %v15296_v38, %s15827_s22  ;;  %v14860_v38 = vld [vmem:[%s18845_s7 + $0x150] sm:$0xff] }
 0x98a   : > { %v14865_v12 = vld [vmem:[%s18845_s7 + $0x170] sm:$0xff] }
 0x98d   : > { %12851 = vrot.lane.b32.xlu1 %v15317_v31, %s19081_s30  ;;  %12759 = vrot.lane.b32.xlu0 %v15310_v40, %s15830_s2  ;;  %v14873_v40 = vld [vmem:[%s18845_s7 + $0x1a8] sm:$0xff]  ;;  %v14880_v31 = vld [vmem:[%s18845_s7 + $0x1d8] sm:$0xff]  ;;  %s431_s2 = sand.u32 1, %s15760_s26  }
 0x98e   : > { %s432_s13 = scalar_lea.vmem [#allocation4], %s431_s2  ;;  %s14319_s5 = scalar_lea.sflag [#allocation5], %s431_s2 }
 0x98f   : > { %s14331_s27 = sshll.u32 %s432_s13, 4  ;;  %s14332_s27 = int_to_ptr.vmem [resolvable:$true] %s14331_s27 }
 0x990   : > { %s15708_s16 = scalar_lea.vmem %s14332_s27, 16  ;;  %p15715_p0 = scmp.lt.s32.totalorder %s14332_s27, %s15713_s29 }
 0x991   : > { %p15709_p11 = scmp.ne.s32.totalorder %s14332_s27, %s15708_s16  ;;  %p15716_p1 = scmp.lt.s32.totalorder %s15714_s17, %s15708_s16 }
 0x993   : > { %p15710_p12 = pnand %p15709_p11, %p15940_p5  ;;  %p15717_p2 = por %p15716_p1, %p15715_p0 }
 0x995   : > { %p15711_p13 = pneg %p15710_p12 }
 0x997   : > { %p15718_p3 = pnand %p15717_p2, %p15711_p13 }
 0x9ef   : > { %v12570_v8 = vpop.permute.xlu0 %12569 }
 0x9f0   : > { %12576 = vst.msk [vmem:[#allocation3] sm:$0xff] %vm12575_vm4, %v12570_v8  ;;  %v14871_v8 = vld [vmem:[%s18845_s7 + $0x198] sm:$0xff] }
 0x9f3   : > { %v12664_v23 = vpop.permute.xlu1 %12663 }
 0x9f4   : > { %12670 = vst.msk [vmem:[#allocation3] sm:$0xff] %vm12669_vm15, %v12664_v23  ;;  %v14878_v23 = vld [vmem:[%s18845_s7 + $0x1c8] sm:$0xff] }
 0x9f7   : > { %v12850_v30 = vpop.permute.xlu1 %12849  ;;  %v12758_v2 = vpop.permute.xlu0 %12757 }
 0x9f8   : > { %12764 = vst.msk [vmem:[#allocation3] sm:$0xff] %vm12763_vm6, %v12758_v2  ;;  %v14877_v2 = vld [vmem:[%s18845_s7 + $0x1c0] sm:$0xff] }
 0x9f9   : > { %12856 = vst.msk [vmem:[#allocation3] sm:$0xff] %vm12855_vm7, %v12850_v30  ;;  %v14870_v30 = vld [vmem:[%s18845_s7 + $0x190] sm:$0xff] }
 0x9fb   : > { %v12666_v24 = vpop.permute.xlu1 %12665  ;;  %v12572_v44 = vpop.permute.xlu0 %12571 }
 0x9fc   : > { %12577 = vst.msk [vmem:[#allocation3 + $0x8] sm:$0xff] %vm12575_vm4, %v12572_v44  ;;  %v14876_v44 = vld [vmem:[%s18845_s7 + $0x1b8] sm:$0xff] }
 0x9fd   : > { %12671 = vst.msk [vmem:[#allocation3 + $0x8] sm:$0xff] %vm12669_vm15, %v12666_v24 }
 0x9ff   : > { %v12852_v34 = vpop.permute.xlu1 %12851  ;;  %v12760_v35 = vpop.permute.xlu0 %12759 }
 0xa00   : > { %12765 = vst.msk [vmem:[#allocation3 + $0x8] sm:$0xff] %vm12763_vm6, %v12760_v35  ;;  %v18318_v37 = vld [vmem:[#allocation3] sm:$0xff] }
 0xa01   : > { %12857 = vst.msk [vmem:[#allocation3 + $0x8] sm:$0xff] %vm12855_vm7, %v12852_v34  ;;  %15329 = vmatmul.mubr.msk.f32.vlgmr.msra.gmra.mxu1 %vm12866_vm8, %v18318_v37  ;;  %v12947_v18 = vrot.slane %v18318_v37, 1  ;;  %v13027_v22 = vrot.slane %v18318_v37, 2  ;;  %v13107_v21 = vrot.slane %v18318_v37, 3  ;;  %v13187_v15 = vrot.slane %v18318_v37, 4  ;;  %v14886_v34 = vld [vmem:[%s18845_s7 + $0x200] sm:$0xff] }
 0xa02   : > { %15345 = vmatpush3.msra.mxu1 %v14826_v53  ;;  %15354 = vmatprep.mubr.msk.f32.mxu1 %vm19104_vm0, %v19070_v27  ;;  %v13267_v48 = vrot.slane %v18318_v37, 5  ;;  %v13347_v6 = vrot.slane %v18318_v37, 6  ;;  %v13427_v3 = vrot.slane %v18318_v37, 7  ;;  %v14885_v53 = vld [vmem:[%s18845_s7 + $0x1f8] sm:$0xff]  ;;  %v14892_v37 = vld [vmem:[%s18845_s7 + $0x228] sm:$0xff] }
 0xa03   : > { %15346 = vmatprep.subr.mxu1 %v19070_v27  ;;  %15342 = vmatmul.mubr.msk.f32.vlgmr.msra.gmra.mxu0 %vm12866_vm8, %v12947_v18  ;;  %v14884_v18 = vld [vmem:[%s18845_s7 + $0x1f0] sm:$0xff] }
 0xa04   : > { %15347 = vmatpush3.msra.mxu1 %v14825_v20  ;;  %15358 = vmatpush3.msra.mxu0 %v14832_v52  ;;  %v14891_v20 = vld [vmem:[%s18845_s7 + $0x220] sm:$0xff]  ;;  %v14883_v52 = vld [vmem:[%s18845_s7 + $0x1e8] sm:$0xff] }
 0xa05   : > { %15348 = vmatprep.subr.mxu1 %v19070_v27  ;;  %15359 = vmatprep.subr.mxu0 %v19070_v27 }
 0xa06   : > { %15349 = vmatpush3.msra.mxu1 %v14824_v5  ;;  %15360 = vmatpush3.msra.mxu0 %v14831_v4  ;;  %v14890_v5 = vld [vmem:[%s18845_s7 + $0x218] sm:$0xff]  ;;  %v14882_v4 = vld [vmem:[%s18845_s7 + $0x1e0] sm:$0xff] }
 0xa07   : > { %15350 = vmatprep.subr.mxu1 %v19070_v27  ;;  %15361 = vmatprep.subr.mxu0 %v19070_v27 }
 0xa08   : > { %15351 = vmatpush3.msra.mxu1 %v14823_v32  ;;  %15362 = vmatpush3.msra.mxu0 %v14830_v39  ;;  %v18499_v11 = vld [vmem:[#allocation3 + $0x8] sm:$0xff]  ;;  %v14889_v32 = vld [vmem:[%s18845_s7 + $0x210] sm:$0xff] }
 0xa09   : > { %15352 = vmatprep.subr.mxu1 %v19070_v27  ;;  %15363 = vmatprep.subr.mxu0 %v19070_v27  ;;  %v13587_v17 = vrot.slane %v18499_v11, 1  ;;  %v13667_v24 = vrot.slane %v18499_v11, 2  ;;  %v13747_v35 = vrot.slane %v18499_v11, 3  ;;  %v13827_v39 = vrot.slane %v18499_v11, 4 }
 0xa0a   : > { %15353 = vmatpush3.msra.mxu1 %v14822_v16  ;;  %15364 = vmatpush3.msra.mxu0 %v14829_v45  ;;  %v14888_v16 = vld [vmem:[%s18845_s7 + $0x208] sm:$0xff]  ;;  %v14898_v45 = vld [vmem:[%s18845_s7 + $0x250] sm:$0xff] }
 0xa0b   : > { %15355 = vmatmul.mubr.msk.f32.vlgmr.msra.gmra.mxu1 %vm12866_vm8, %v13027_v22  ;;  %15365 = vmatprep.subr.mxu0 %v19070_v27  ;;  %v13907_v22 = vrot.slane %v18499_v11, 5 }
 0xa0c   : > { %15370 = vmatprep.subr.mxu1 %v19070_v27  ;;  %15366 = vmatpush3.msra.mxu0 %v14828_v58  ;;  %v14897_v58 = vld [vmem:[%s18845_s7 + $0x248] sm:$0xff] }
 0xa0d   : > { %15367 = vmatprep.mubr.msk.f32.mxu0 %vm19104_vm0, %v19070_v27  ;;  %15371 = vmatpush3.msra.mxu1 %v14838_v46  ;;  %v14904_v46 = vld [vmem:[%s18845_s7 + $0x278] sm:$0xff] }
 0xa0e   : > { %15368 = vmatmul.mubr.msk.f32.vlgmr.msra.gmra.mxu0 %vm12866_vm8, %v13107_v21  ;;  %15372 = vmatprep.subr.mxu1 %v19070_v27  ;;  %v14896_v21 = vld [vmem:[%s18845_s7 + $0x240] sm:$0xff] }
 0xa0f   : > { %15383 = vmatprep.subr.mxu0 %v19070_v27  ;;  %15373 = vmatpush3.msra.mxu1 %v14837_v42  ;;  %v14903_v42 = vld [vmem:[%s18845_s7 + $0x270] sm:$0xff] }
 0xa10   : > { %15384 = vmatpush3.msra.mxu0 %v14844_v14  ;;  %15374 = vmatprep.subr.mxu1 %v19070_v27  ;;  %v14895_v14 = vld [vmem:[%s18845_s7 + $0x238] sm:$0xff] }
 0xa11   : > { %15385 = vmatprep.subr.mxu0 %v19070_v27  ;;  %15375 = vmatpush3.msra.mxu1 %v14836_v61  ;;  %v14902_v61 = vld [vmem:[%s18845_s7 + $0x268] sm:$0xff] }
 0xa12   : > { %15386 = vmatpush3.msra.mxu0 %v14843_v29  ;;  %15376 = vmatprep.subr.mxu1 %v19070_v27  ;;  %v14894_v29 = vld [vmem:[%s18845_s7 + $0x230] sm:$0xff] }
 0xa13   : > { %15387 = vmatprep.subr.mxu0 %v19070_v27  ;;  %15377 = vmatpush3.msra.mxu1 %v14835_v36  ;;  %v14901_v36 = vld [vmem:[%s18845_s7 + $0x260] sm:$0xff] }
 0xa14   : > { %15388 = vmatpush3.msra.mxu0 %v14842_v57  ;;  %15378 = vmatprep.subr.mxu1 %v19070_v27  ;;  %v13987_v57 = vrot.slane %v18499_v11, 6 }
 0xa15   : > { %15389 = vmatprep.subr.mxu0 %v19070_v27  ;;  %15379 = vmatpush3.msra.mxu1 %v14834_v28  ;;  %v14900_v28 = vld [vmem:[%s18845_s7 + $0x258] sm:$0xff] }
 0xa16   : > { %15380 = vmatprep.mubr.msk.f32.mxu1 %vm19104_vm0, %v19070_v27  ;;  %15390 = vmatpush3.msra.mxu0 %v14841_v55  ;;  %v14067_v55 = vrot.slane %v18499_v11, 7 }
 0xa17   : > { %15381 = vmatmul.mubr.msk.f32.vlgmr.msra.gmra.mxu1 %vm12866_vm8, %v13187_v15  ;;  %15391 = vmatprep.subr.mxu0 %v19070_v27  ;;  %v14157_v15 = vld [vmem:[%s18847_s9 + $0x78] sm:$0xff] }
 0xa18   : > { %15396 = vmatprep.subr.mxu1 %v19070_v27  ;;  %15392 = vmatpush3.msra.mxu0 %v14840_v50  ;;  %v14156_v50 = vld [vmem:[%s18847_s9 + $0x70] sm:$0xff] }
 0xa19   : > { %15393 = vmatprep.mubr.msk.f32.mxu0 %vm19104_vm0, %v19070_v27  ;;  %15397 = vmatpush3.msra.mxu1 %v14850_v54  ;;  %v14155_v54 = vld [vmem:[%s18847_s9 + $0x68] sm:$0xff] }
 0xa1a   : > { %15394 = vmatmul.mubr.msk.f32.vlgmr.msra.gmra.mxu0 %vm12866_vm8, %v13267_v48  ;;  %15398 = vmatprep.subr.mxu1 %v19070_v27  ;;  %v14154_v48 = vld [vmem:[%s18847_s9 + $0x60] sm:$0xff] }
 0xa1b   : > { %15409 = vmatprep.subr.mxu0 %v19070_v27  ;;  %15399 = vmatpush3.msra.mxu1 %v14849_v41  ;;  %v14153_v41 = vld [vmem:[%s18847_s9 + $0x58] sm:$0xff] }
 0xa1c   : > { %15410 = vmatpush3.msra.mxu0 %v14856_v7  ;;  %15400 = vmatprep.subr.mxu1 %v19070_v27  ;;  %v14152_v7 = vld [vmem:[%s18847_s9 + $0x50] sm:$0xff] }
 0xa1d   : > { %15411 = vmatprep.subr.mxu0 %v19070_v27  ;;  %15401 = vmatpush3.msra.mxu1 %v14848_v43  ;;  %v14151_v43 = vld [vmem:[%s18847_s9 + $0x48] sm:$0xff] }
 0xa1e   : > { %15412 = vmatpush3.msra.mxu0 %v14855_v19  ;;  %15402 = vmatprep.subr.mxu1 %v19070_v27  ;;  %v14150_v19 = vld [vmem:[%s18847_s9 + $0x40] sm:$0xff] }
 0xa1f   : > { %15413 = vmatprep.subr.mxu0 %v19070_v27  ;;  %15403 = vmatpush3.msra.mxu1 %v14847_v60  ;;  %v14149_v60 = vld [vmem:[%s18847_s9 + $0x38] sm:$0xff] }
 0xa20   : > { %15414 = vmatpush3.msra.mxu0 %v14854_v63  ;;  %15404 = vmatprep.subr.mxu1 %v19070_v27  ;;  %v14148_v63 = vld [vmem:[%s18847_s9 + $0x30] sm:$0xff] }
 0xa21   : > { %15415 = vmatprep.subr.mxu0 %v19070_v27  ;;  %15405 = vmatpush3.msra.mxu1 %v14846_v47  ;;  %v14147_v47 = vld [vmem:[%s18847_s9 + $0x28] sm:$0xff] }
 0xa22   : > { %15406 = vmatprep.mubr.msk.f32.mxu1 %vm19104_vm0, %v19070_v27  ;;  %15416 = vmatpush3.msra.mxu0 %v14853_v51  ;;  %v14146_v51 = vld [vmem:[%s18847_s9 + $0x20] sm:$0xff] }
 0xa23   : > { %15407 = vmatmul.mubr.msk.f32.vlgmr.msra.gmra.mxu1 %vm12866_vm8, %v13347_v6  ;;  %15417 = vmatprep.subr.mxu0 %v19070_v27  ;;  %v14145_v6 = vld [vmem:[%s18847_s9 + $0x18] sm:$0xff] }
 0xa24   : > { %15422 = vmatprep.subr.mxu1 %v19070_v27  ;;  %15418 = vmatpush3.msra.mxu0 %v14852_v25  ;;  %v14144_v25 = vld [vmem:[%s18847_s9 + $0x10] sm:$0xff] }
 0xa25   : > { %15419 = vmatprep.mubr.msk.f32.mxu0 %vm19104_vm0, %v19070_v27  ;;  %15423 = vmatpush3.msra.mxu1 %v14862_v1  ;;  %v14143_v1 = vld [vmem:[%s18847_s9 + $0x8] sm:$0xff] }
 0xa26   : > { %15420 = vmatmul.mubr.msk.f32.vlgmr.msra.gmra.mxu0 %vm12866_vm8, %v13427_v3  ;;  %15424 = vmatprep.subr.mxu1 %v19070_v27  ;;  %v14142_v3 = vld [vmem:[%s18847_s9] sm:$0xff] }
 0xa27   : > { %15435 = vmatprep.subr.mxu0 %v19070_v27  ;;  %15425 = vmatpush3.msra.mxu1 %v14861_v10  ;;  %v14245_v10 = vld [vmem:[%s18849_s11 + $0x78] sm:$0xff] }
 0xa28   : > { %15436 = vmatpush3.msra.mxu0 %v14868_v56  ;;  %15426 = vmatprep.subr.mxu1 %v19070_v27  ;;  %v14244_v56 = vld [vmem:[%s18849_s11 + $0x70] sm:$0xff] }
 0xa29   : > { %15437 = vmatprep.subr.mxu0 %v19070_v27  ;;  %15427 = vmatpush3.msra.mxu1 %v14860_v38  ;;  %v14243_v38 = vld [vmem:[%s18849_s11 + $0x68] sm:$0xff] }
 0xa2a   : > { %15438 = vmatpush3.msra.mxu0 %v14867_v62  ;;  %15428 = vmatprep.subr.mxu1 %v19070_v27  ;;  %v14242_v62 = vld [vmem:[%s18849_s11 + $0x60] sm:$0xff] }
 0xa2b   : > { %15439 = vmatprep.subr.mxu0 %v19070_v27  ;;  %15429 = vmatpush3.msra.mxu1 %v14859_v49  ;;  %v14241_v49 = vld [vmem:[%s18849_s11 + $0x58] sm:$0xff] }
 0xa2c   : > { %15440 = vmatpush3.msra.mxu0 %v14866_v0  ;;  %15430 = vmatprep.subr.mxu1 %v19070_v27  ;;  %v14240_v0 = vld [vmem:[%s18849_s11 + $0x50] sm:$0xff] }
 0xa2d   : > { %15441 = vmatprep.subr.mxu0 %v19070_v27  ;;  %15431 = vmatpush3.msra.mxu1 %v14858_v33  ;;  %v14239_v33 = vld [vmem:[%s18849_s11 + $0x48] sm:$0xff] }
 0xa2e   : > { %15432 = vmatprep.mubr.msk.f32.mxu1 %vm19104_vm0, %v19070_v27  ;;  %15442 = vmatpush3.msra.mxu0 %v14865_v12  ;;  %v14238_v12 = vld [vmem:[%s18849_s11 + $0x40] sm:$0xff] }
 0xa2f   : > { %15433 = vmatmul.mubr.msk.f32.vlgmr.msra.gmra.mxu1 %vm12866_vm8, %v18499_v11  ;;  %15443 = vmatprep.subr.mxu0 %v19070_v27  ;;  %v14237_v11 = vld [vmem:[%s18849_s11 + $0x38] sm:$0xff] }
 0xa30   : > { %15448 = vmatprep.subr.mxu1 %v19070_v27  ;;  %15444 = vmatpush3.msra.mxu0 %v14864_v9  ;;  %v14236_v9 = vld [vmem:[%s18849_s11 + $0x30] sm:$0xff] }
 0xa31   : > { %15445 = vmatprep.mubr.msk.f32.mxu0 %vm19104_vm0, %v19070_v27  ;;  %15449 = vmatpush3.msra.mxu1 %v14874_v26  ;;  %v14235_v26 = vld [vmem:[%s18849_s11 + $0x28] sm:$0xff] }
 0xa32   : > { %15446 = vmatmul.mubr.msk.f32.vlgmr.msra.gmra.mxu0 %vm12866_vm8, %v13587_v17  ;;  %15450 = vmatprep.subr.mxu1 %v19070_v27  ;;  %v14234_v17 = vld [vmem:[%s18849_s11 + $0x20] sm:$0xff] }
 0xa33   : > { %15461 = vmatprep.subr.mxu0 %v19070_v27  ;;  %15451 = vmatpush3.msra.mxu1 %v14873_v40  ;;  %v14233_v40 = vld [vmem:[%s18849_s11 + $0x18] sm:$0xff] }
 0xa34   : > { %15462 = vmatpush3.msra.mxu0 %v14880_v31  ;;  %15452 = vmatprep.subr.mxu1 %v19070_v27 }
 0xa35   : > { %15463 = vmatprep.subr.mxu0 %v19070_v27  ;;  %15453 = vmatpush3.msra.mxu1 %v14872_v59 }
 0xa36   : > { %15464 = vmatpush3.msra.mxu0 %v14879_v13  ;;  %15454 = vmatprep.subr.mxu1 %v19070_v27 }
 0xa37   : > { %15465 = vmatprep.subr.mxu0 %v19070_v27  ;;  %15455 = vmatpush3.msra.mxu1 %v14871_v8 }
 0xa38   : > { %15466 = vmatpush3.msra.mxu0 %v14878_v23  ;;  %15456 = vmatprep.subr.mxu1 %v19070_v27 }
 0xa39   : > { %15467 = vmatprep.subr.mxu0 %v19070_v27  ;;  %15457 = vmatpush3.msra.mxu1 %v14870_v30 }
 0xa3a   : > { %15458 = vmatprep.mubr.msk.f32.mxu1 %vm19104_vm0, %v19070_v27  ;;  %15468 = vmatpush3.msra.mxu0 %v14877_v2 }
 0xa3b   : > { %15459 = vmatmul.mubr.msk.f32.vlgmr.msra.gmra.mxu1 %vm12866_vm8, %v13667_v24  ;;  %15469 = vmatprep.subr.mxu0 %v19070_v27 }
 0xa3c   : > { %15474 = vmatprep.subr.mxu1 %v19070_v27  ;;  %15470 = vmatpush3.msra.mxu0 %v14876_v44 }
 0xa3d   : > { %15471 = vmatprep.mubr.msk.f32.mxu0 %vm19104_vm0, %v19070_v27  ;;  %15475 = vmatpush3.msra.mxu1 %v14886_v34 }
 0xa3e   : > { %15472 = vmatmul.mubr.msk.f32.vlgmr.msra.gmra.mxu0 %vm12866_vm8, %v13747_v35  ;;  %15476 = vmatprep.subr.mxu1 %v19070_v27 }
 0xa3f   : > { %15487 = vmatprep.subr.mxu0 %v19070_v27  ;;  %15477 = vmatpush3.msra.mxu1 %v14885_v53 }
 0xa40   : > { %15488 = vmatpush3.msra.mxu0 %v14892_v37  ;;  %15478 = vmatprep.subr.mxu1 %v19070_v27 }
 0xa41   : > { %15489 = vmatprep.subr.mxu0 %v19070_v27  ;;  %15479 = vmatpush3.msra.mxu1 %v14884_v18 }
 0xa42   : > { %15490 = vmatpush3.msra.mxu0 %v14891_v20  ;;  %15480 = vmatprep.subr.mxu1 %v19070_v27 }
 0xa43   : > { %15491 = vmatprep.subr.mxu0 %v19070_v27  ;;  %15481 = vmatpush3.msra.mxu1 %v14883_v52  ;;  %v12860_v52 = vld [vmem:[%s18846_s8] sm:$0x1] }
 0xa44   : > { %15492 = vmatpush3.msra.mxu0 %v14890_v5  ;;  %15482 = vmatprep.subr.mxu1 %v19070_v27 }
 0xa45   : > { %15493 = vmatprep.subr.mxu0 %v19070_v27  ;;  %15483 = vmatpush3.msra.mxu1 %v14882_v4 }
 0xa46   : > { %15484 = vmatprep.mubr.msk.f32.mxu1 %vm19104_vm0, %v19070_v27  ;;  %15494 = vmatpush3.msra.mxu0 %v14889_v32 }
 0xa47   : > { %15485 = vmatmul.mubr.msk.f32.vlgmr.msra.gmra.mxu1 %vm12866_vm8, %v13827_v39  ;;  %15495 = vmatprep.subr.mxu0 %v19070_v27 }
 0xa48   : > { %15500 = vmatprep.subr.mxu1 %v19070_v27  ;;  %15496 = vmatpush3.msra.mxu0 %v14888_v16 }
 0xa49   : > { %15497 = vmatprep.mubr.msk.f32.mxu0 %vm19104_vm0, %v19070_v27  ;;  %15501 = vmatpush3.msra.mxu1 %v14898_v45 }
 0xa4a   : > { %15498 = vmatmul.mubr.msk.f32.vlgmr.msra.gmra.mxu0 %vm12866_vm8, %v13907_v22  ;;  %15502 = vmatprep.subr.mxu1 %v19070_v27 }
 0xa4b   : > { %15513 = vmatprep.subr.mxu0 %v19070_v27  ;;  %15503 = vmatpush3.msra.mxu1 %v14897_v58 }
 0xa4c   : > { %15514 = vmatpush3.msra.mxu0 %v14904_v46  ;;  %15504 = vmatprep.subr.mxu1 %v19070_v27 }
 0xa4d   : > { %15515 = vmatprep.subr.mxu0 %v19070_v27  ;;  %15505 = vmatpush3.msra.mxu1 %v14896_v21 }
 0xa4e   : > { %15516 = vmatpush3.msra.mxu0 %v14903_v42  ;;  %15506 = vmatprep.subr.mxu1 %v19070_v27 }
 0xa4f   : > { %15517 = vmatprep.subr.mxu0 %v19070_v27  ;;  %15507 = vmatpush3.msra.mxu1 %v14895_v14 }
 0xa50   : > { %15518 = vmatpush3.msra.mxu0 %v14902_v61  ;;  %15508 = vmatprep.subr.mxu1 %v19070_v27 }
 0xa51   : > { %15519 = vmatprep.subr.mxu0 %v19070_v27  ;;  %15509 = vmatpush3.msra.mxu1 %v14894_v29 }
 0xa52   : > { %15510 = vmatprep.mubr.msk.f32.mxu1 %vm19104_vm0, %v19070_v27  ;;  %15520 = vmatpush3.msra.mxu0 %v14901_v36 }
 0xa53   : > { %15511 = vmatmul.mubr.msk.f32.vlgmr.msra.gmra.mxu1 %vm12866_vm8, %v13987_v57  ;;  %15521 = vmatprep.subr.mxu0 %v19070_v27 }
 0xa54   : > { %15522 = vmatpush3.msra.mxu0 %v14900_v28  ;;  %15523 = vmatprep.mubr.msk.f32.mxu0 %vm19104_vm0, %v19070_v27 }
 0xa55   : > { %15524 = vmatmul.mubr.msk.f32.vlgmr.msra.gmra.mxu0 %vm12866_vm8, %v14067_v55  ;;  %15526 = vmatprep.subr.mxu1 %v19070_v27 }
 0xa56   : > { %15558 = vmatprep.mubr.msk.f32.mxu1 %vm19104_vm0, %v19070_v27  ;;  %15561 = vmatprep.subr.mxu0 %v19070_v27 }
 0xa57   : > { %15593 = vmatprep.mubr.msk.f32.mxu0 %vm19104_vm0, %v19070_v27  ;;  %15527 = vmatpush3.msra.mxu1 %v14157_v15 }
 0xa58   : > { %15528 = vmatprep.subr.mxu1 %v19070_v27  ;;  %15562 = vmatpush3.msra.mxu0 %v14245_v10  ;;  %v14232_v10 = vld [vmem:[%s18849_s11 + $0x10] sm:$0xff] }
 0xa59   : > { %15529 = vmatpush3.msra.mxu1 %v14156_v50  ;;  %15563 = vmatprep.subr.mxu0 %v19070_v27 }
 0xa5a   : > { %15530 = vmatprep.subr.mxu1 %v19070_v27  ;;  %15564 = vmatpush3.msra.mxu0 %v14244_v56  ;;  %v14231_v56 = vld [vmem:[%s18849_s11 + $0x8] sm:$0xff] }
 0xa5b   : > { %15531 = vmatpush3.msra.mxu1 %v14155_v54  ;;  %15565 = vmatprep.subr.mxu0 %v19070_v27 }
 0xa5c   : > { %15532 = vmatprep.subr.mxu1 %v19070_v27  ;;  %15566 = vmatpush3.msra.mxu0 %v14243_v38  ;;  %v14230_v38 = vld [vmem:[%s18849_s11] sm:$0xff] }
 0xa5d   : > { %15533 = vmatpush3.msra.mxu1 %v14154_v48  ;;  %15567 = vmatprep.subr.mxu0 %v19070_v27 }
 0xa5e   : > { %15534 = vmatprep.subr.mxu1 %v19070_v27  ;;  %15568 = vmatpush3.msra.mxu0 %v14242_v62  ;;  %v14158_v62 = vld [vmem:[%s18848_s10] sm:$0x1] }
 0xa5f   : > { %15535 = vmatpush3.msra.mxu1 %v14153_v41  ;;  %15569 = vmatprep.subr.mxu0 %v19070_v27 }
 0xa60   : > { %15536 = vmatprep.subr.mxu1 %v19070_v27  ;;  %15570 = vmatpush3.msra.mxu0 %v14241_v49 }
 0xa61   : > { %15537 = vmatpush3.msra.mxu1 %v14152_v7  ;;  %15571 = vmatprep.subr.mxu0 %v19070_v27 }
 0xa62   : > { %15538 = vmatprep.subr.mxu1 %v19070_v27  ;;  %15572 = vmatpush3.msra.mxu0 %v14240_v0 }
 0xa63   : > { %15539 = vmatpush3.msra.mxu1 %v14151_v43  ;;  %15573 = vmatprep.subr.mxu0 %v19070_v27 }
 0xa64   : > { %15540 = vmatprep.subr.mxu1 %v19070_v27  ;;  %15574 = vmatpush3.msra.mxu0 %v14239_v33 }
 0xa65   : > { %15541 = vmatpush3.msra.mxu1 %v14150_v19  ;;  %15575 = vmatprep.subr.mxu0 %v19070_v27 }
 0xa66   : > { %15542 = vmatprep.subr.mxu1 %v19070_v27  ;;  %15576 = vmatpush3.msra.mxu0 %v14238_v12 }
 0xa67   : > { %15543 = vmatpush3.msra.mxu1 %v14149_v60  ;;  %15577 = vmatprep.subr.mxu0 %v19070_v27 }
 0xa68   : > { %15544 = vmatprep.subr.mxu1 %v19070_v27  ;;  %15578 = vmatpush3.msra.mxu0 %v14237_v11 }
 0xa69   : > { %15545 = vmatpush3.msra.mxu1 %v14148_v63  ;;  %15579 = vmatprep.subr.mxu0 %v19070_v27 }
 0xa6a   : > { %15546 = vmatprep.subr.mxu1 %v19070_v27  ;;  %15580 = vmatpush3.msra.mxu0 %v14236_v9 }
 0xa6b   : > { %15547 = vmatpush3.msra.mxu1 %v14147_v47  ;;  %15581 = vmatprep.subr.mxu0 %v19070_v27 }
 0xa6c   : > { %15548 = vmatprep.subr.mxu1 %v19070_v27  ;;  %15582 = vmatpush3.msra.mxu0 %v14235_v26 }
 0xa6d   : > { %15549 = vmatpush3.msra.mxu1 %v14146_v51  ;;  %15583 = vmatprep.subr.mxu0 %v19070_v27 }
 0xa6e   : > { %15550 = vmatprep.subr.mxu1 %v19070_v27  ;;  %15584 = vmatpush3.msra.mxu0 %v14234_v17 }
 0xa6f   : > { %15551 = vmatpush3.msra.mxu1 %v14145_v6  ;;  %15585 = vmatprep.subr.mxu0 %v19070_v27 }
 0xa70   : > { %15552 = vmatprep.subr.mxu1 %v19070_v27  ;;  %15586 = vmatpush3.msra.mxu0 %v14233_v40 }
 0xa71   : > { %15553 = vmatpush3.msra.mxu1 %v14144_v25  ;;  %15587 = vmatprep.subr.mxu0 %v19070_v27 }
 0xa72   : > { %15554 = vmatprep.subr.mxu1 %v19070_v27  ;;  %15588 = vmatpush3.msra.mxu0 %v14232_v10 }
 0xa73   : > { %15555 = vmatpush3.msra.mxu1 %v14143_v1  ;;  %15589 = vmatprep.subr.mxu0 %v19070_v27 }
 0xa74   : > { %15556 = vmatprep.subr.mxu1 %v19070_v27  ;;  %15590 = vmatpush3.msra.mxu0 %v14231_v56 }
 0xa75   : > { %15557 = vmatpush3.msra.mxu1 %v14142_v3  ;;  %15591 = vmatprep.subr.mxu0 %v19070_v27  ;;  %v14246_v27 = vld [vmem:[%s18850_s12] sm:$0x1] }
 0xa76   : > { %15592 = vmatpush3.msra.mxu0 %v14230_v38 }
 0xac1   : > { %v12936_v31 = vpop.f32.mrf.mxu1 }
 0xac2   : > { %v12940_v4 = vadd.f32 %v12936_v31, %v12860_v52 }
 0xac3   : > { %v15330_v59 = vpop.f32.mrf.mxu1  ;;  %v13016_v13 = vpop.f32.mrf.mxu0 }
 0xac4   : > { %v13020_v32 = vadd.f32 %v13016_v13, %v12940_v4 }
 0xac5   : > { %v15343_v8 = vpop.f32.mrf.mxu0 }
 0xacb   : > { %v13096_v23 = vpop.f32.mrf.mxu1 }
 0xacc   : > { %v13100_v16 = vadd.f32 %v13096_v23, %v13020_v32 }
 0xacd   : > { %v15356_v30 = vpop.f32.mrf.mxu1 }
 0xace   : > { %v13176_v2 = vpop.f32.mrf.mxu0 }
 0xacf   : > { %v13180_v58 = vadd.f32 %v13176_v2, %v13100_v16 }
 0xad0   : > { %v15369_v24 = vpop.f32.mrf.mxu0 }
 0xad7   : > { %v13256_v44 = vpop.f32.mrf.mxu1 }
 0xad8   : > { %v13260_v21 = vadd.f32 %v13256_v44, %v13180_v58 }
 0xad9   : > { %v15382_v34 = vpop.f32.mrf.mxu1 }
 0xada   : > { %v13336_v35 = vpop.f32.mrf.mxu0 }
 0xadb   : > { %v13340_v42 = vadd.f32 %v13336_v35, %v13260_v21 }
 0xadc   : > { %v15395_v53 = vpop.f32.mrf.mxu0 }
 0xae3   : > { %v13416_v37 = vpop.f32.mrf.mxu1 }
 0xae4   : > { %v13420_v61 = vadd.f32 %v13416_v37, %v13340_v42 }
 0xae5   : > { %v15408_v18 = vpop.f32.mrf.mxu1 }
 0xae6   : > { %v13496_v20 = vpop.f32.mrf.mxu0 }
 0xae7   : > { %v13500_v57 = vadd.f32 %v13496_v20, %v13420_v61 }
 0xae8   : > { %v15421_v5 = vpop.f32.mrf.mxu0 }
 0xaef   : > { %v13576_v39 = vpop.f32.mrf.mxu1 }
 0xaf0   : > { %v13580_v55 = vadd.f32 %v13576_v39, %v13500_v57 }
 0xaf1   : > { %v15434_v45 = vpop.f32.mrf.mxu1 }
 0xaf2   : > { %v13656_v22 = vpop.f32.mrf.mxu0 }
 0xaf3   : > { %v13660_v15 = vadd.f32 %v13656_v22, %v13580_v55 }
 0xaf4   : > { %v15447_v46 = vpop.f32.mrf.mxu0 }
 0xafb   : > { %v13736_v14 = vpop.f32.mrf.mxu1 }
 0xafc   : > { %v13740_v54 = vadd.f32 %v13736_v14, %v13660_v15 }
 0xafd   : > { %v15460_v29 = vpop.f32.mrf.mxu1 }
 0xafe   : > { %v13816_v36 = vpop.f32.mrf.mxu0 }
 0xaff   : > { %v13820_v7 = vadd.f32 %v13816_v36, %v13740_v54 }
 0xb00   : > { %v15473_v28 = vpop.f32.mrf.mxu0 }
 0xb07   : > { %v13896_v50 = vpop.f32.mrf.mxu1 }
 0xb08   : > { %v13900_v19 = vadd.f32 %v13896_v50, %v13820_v7 }
 0xb09   : > { %v15486_v48 = vpop.f32.mrf.mxu1 }
 0xb0a   : > { %v13976_v41 = vpop.f32.mrf.mxu0 }
 0xb0b   : > { %v13980_v60 = vadd.f32 %v13976_v41, %v13900_v19 }
 0xb0c   : > { %v15499_v43 = vpop.f32.mrf.mxu0 }
 0xb13   : > { %v14056_v63 = vpop.f32.mrf.mxu1 }
 0xb14   : > { %v14060_v47 = vadd.f32 %v14056_v63, %v13980_v60 }
 0xb15   : > { %v15512_v51 = vpop.f32.mrf.mxu1  ;;  %v14136_v6 = vpop.f32.mrf.mxu0 }
 0xb16   : > { %v14140_v25 = vadd.f32 %v14136_v6, %v14060_v47 }
 0xb17   : > { %v15525_v1 = vpop.f32.mrf.mxu0 }
 0xb18   : > { %v14141_v3 = vmax.f32 %v14140_v25, 0.0 }
 0xb1a   : > { %15559 = vmatmul.mubr.f32.vlgmr.msra.gmra.mxu1 %v14141_v3 }
 0xbda   : > { %v14225_v49 = vpop.f32.mrf.mxu1 }
 0xbdb   : > { %v14226_v0 = vadd.f32 %v14225_v49, %v14158_v62 }
 0xbdc   : > { %v15560_v33 = vpop.f32.mrf.mxu1 }
 0xbdd   : > { %v14229_v12 = vmax.f32 %v14226_v0, 0.0 }
 0xbdf   : > { %15594 = vmatmul.mubr.f32.vlgmr.msra.gmra.mxu0 %v14229_v12 }
 0xc9f   : > { %v14313_v11 = vpop.f32.mrf.mxu0 }
 0xca0   : > { %v14314_v9 = vadd.f32 %v14313_v11, %v14246_v27 }
 0xca1   : > { %v15595_v26 = vpop.f32.mrf.mxu0 }
 0xca2   : > { %14317 = vst [vmem:[%s432_s13] sm:$0x1] %v14314_v9 }
 0xca3   : > { %15721 = shalt.err (!%p15718_p3)
}
 0xca4   : > { %s15722_s21 = scalar_lea.hbm %s18803_s19, 16  ;;  %s15726_s1 = scalar_lea.hbm %s19107_s14, 32 }
 0xca5   : > { %p15723_p4 = scmp.ne.s32.totalorder %s18803_s19, %s15722_s21  ;;  %p15727_p9 = scmp.lt.s32.totalorder %s18803_s19, %s19107_s14 }
 0xca6   : > { %p15728_p10 = scmp.lt.s32.totalorder %s15726_s1, %s15722_s21 }
 0xca7   : > { %p15724_p7 = pnand %p15723_p4, %p15940_p5 }
 0xca8   : > { %p15729_p11 = por %p15728_p10, %p15727_p9 }
 0xca9   : > { %p15725_p8 = pneg %p15724_p7 }
 0xcab   : > { %p15730_p12 = pnand %p15729_p11, %p15725_p8 }
 0xcad   : > { %15733 = shalt.err (!%p15730_p12)
}
 0xcae   : > { %15597 = dma.vmem_to_hbm [thread:$0]  (%p15940_p5), %s14332_s27, 16, %s18803_s19, %s14319_s5  }
 0xcaf PF: > { %s19108_s22 = sld [smem:[#allocation9_spill]] }
 0xcb0   : > { %s19109_s25 = sld [smem:[#allocation7_spill]] }
 0xcb5   : > { %p15603_p13 = scmp.ge.s32.totalorder %s19108_s22, 2 }
 0xcb6   : > { %s14343_s24 = sand.u32 1, %s19109_s25  }
 0xcb7   : > { %p15600_p0 = pnand %p15603_p13, %p15944_p6  ;;  %s14344_s15 = scalar_lea.sflag [#allocation5], %s14343_s24 }
 0xcb9   : > { %p15601_p1 = pneg %p15600_p0 }
 0xcbb   : > { %15751 = dma.done.wait (%p15601_p1), %s14344_s15, 16  }
 0xcbc   : > { %15753 = vsyncadd (%p15601_p1), %s14344_s15, 4294967280  ;;  %s19111_s28 = sld [smem:[#allocation10_spill]]  ;;  %s19114_s25 = smov %s15760_s26 }
 0xcbd   : > { %s19112_s16 = sld [smem:[#allocation8_spill]] }
 0xcbe   : > { %s19113_s27 = sld [smem:[#allocation11_spill]] }
 0xcc2   : > { %p23_p2 = scmp.ge.s32.totalorder %s19111_s28, 4  }
 0xcc3   : > { %s19115_s26 = smov %s19112_s16 }
 0xcc4   :  { %25 = sbr.rel (!%p23_p2) target bundleno = 9 (0x9), region = 122 }
 0xcc9   :  { %14348 = vsyncpa [#allocation5], 1 }
 0xcca   :  { %14350 = vsyncpa [#allocation5 + $0x1], 1 }

</bundles_post_ra>
